<compile_context>
chip_gen: v6e
topology: v6e:2x2x1
jax: 0.10.0
libtpu: 0.0.40
codegen_flags: <defaults>
</compile_context>

<pallas_src>
import functools

import jax
import jax.numpy as jnp
from jax.experimental import pallas as pl
from jax.experimental.pallas import tpu as pltpu


def _make_fused_kernel(B, H, W, C):
    """Fused 4-block encoder for a chunk of B samples (NHWC, channels-last)."""
    H1, W1 = H // 2, W // 2
    H2, W2 = H1 // 2, W1 // 2
    H3, W3 = H2 // 2, W2 // 2

    def zero_halo(ref):
        # Zero only the 1-pixel halo ring; the interior is fully overwritten
        # every grid step, so the full-buffer re-zeroing of the old version is
        # unnecessary store traffic.
        _, Hp, Wp, _ = ref.shape
        z_row = jnp.zeros((B, 1, Wp, C), ref.dtype)
        z_col = jnp.zeros((B, Hp, 1, C), ref.dtype)
        ref[:, 0:1, :, :] = z_row
        ref[:, Hp - 1:Hp, :, :] = z_row
        ref[:, :, 0:1, :] = z_col
        ref[:, :, Wp - 1:Wp, :] = z_col

    def store_interior(ref, val):
        # Single f32 -> bf16 cast per block, on the (4x smaller) pooled value.
        hi, wi = val.shape[1], val.shape[2]
        ref[:, 1:1 + hi, 1:1 + wi, :] = val.astype(ref.dtype)

    def bias_relu_pool(acc, b_ref, Hc, Wc):
        # acc: (B*Hc*Wc, C) f32 conv accumulator.  BN scale is folded into the
        # conv weights at init time, so only bias-add + ReLU remain here.
        y = jnp.maximum(acc + b_ref[...], 0.0)
        # 2x2 max-pool, one axis at a time (cheap VPU maxes, no 5-D reshape).
        y = y.reshape(B, Hc // 2, 2, Wc, C)
        y = jnp.max(y, axis=2)
        y = y.reshape(B, Hc // 2, Wc // 2, 2, C)
        y = jnp.max(y, axis=3)
        return y  # (B, Hc//2, Wc//2, C) f32

    def conv3x3(xpad_ref, wp_ref, wl_ref, Hc, Wc):
        # 3x3 conv over a zero-padded bf16 activation (B, Hc+2, Wc+2, C).
        # Only 3 W-shifted slabs are materialized (dy slicing along the major H
        # axis is free); taps are packed pairwise along K so the MXU sees
        # (Mr, 2C) @ (2C, C) matmuls (4 of them) plus one (Mr, C) @ (C, C).
        Mr = B * Hc * Wc
        xpad = xpad_ref[...]                                    # bf16
        sl = [xpad[:, :, dx:dx + Wc, :] for dx in range(3)]     # (B, Hc+2, Wc, C)

        def slab(t):
            dy, dx = divmod(t, 3)
            return sl[dx][:, dy:dy + Hc].reshape(Mr, C)

        acc = jnp.dot(slab(8), wl_ref[...],
                      preferred_element_type=jnp.float32)
        for p in range(4):
            lhs = jnp.concatenate([slab(2 * p), slab(2 * p + 1)], axis=-1)
            acc = acc + jnp.dot(lhs, wp_ref[p],
                                preferred_element_type=jnp.float32)
        return acc  # (Mr, C) f32

    def kernel(p1_ref, w1_ref, b1_ref,
               wp2_ref, wl2_ref, b2_ref,
               wp3_ref, wl3_ref, b3_ref,
               wp4_ref, wl4_ref, b4_ref,
               o_ref, a1_ref, a2_ref, a3_ref):
        zero_halo(a1_ref)
        zero_halo(a2_ref)
        zero_halo(a3_ref)

        # ---- Block 1 (Cin=1): dense im2col matmul on the MXU ----
        patches = p1_ref[...].reshape(B * H * W, 9)             # bf16
        acc1 = jnp.dot(patches, w1_ref[...],
                       preferred_element_type=jnp.float32)
        store_interior(a1_ref, bias_relu_pool(acc1, b1_ref, H, W))

        # ---- Block 2 ----
        acc2 = conv3x3(a1_ref, wp2_ref, wl2_ref, H1, W1)
        store_interior(a2_ref, bias_relu_pool(acc2, b2_ref, H1, W1))

        # ---- Block 3 ----
        acc3 = conv3x3(a2_ref, wp3_ref, wl3_ref, H2, W2)
        store_interior(a3_ref, bias_relu_pool(acc3, b3_ref, H2, W2))

        # ---- Block 4 ----
        acc4 = conv3x3(a3_ref, wp4_ref, wl4_ref, H3, W3)
        o_ref[...] = bias_relu_pool(acc4, b4_ref, H3, W3).astype(o_ref.dtype)

    return kernel


def _fused_encoder_call(patches, flat_params, B, H, W, C):
    Npad = patches.shape[0]
    H1, W1 = H // 2, W // 2
    H2, W2 = H // 4, W // 4
    H3, W3 = H // 8, W // 8
    H4, W4 = H // 16, W // 16

    kernel = _make_fused_kernel(B, H, W, C)

    b_spec = pl.BlockSpec((1, C), lambda n: (0, 0))
    wp_spec = pl.BlockSpec((4, 2 * C, C), lambda n: (0, 0, 0))
    wl_spec = pl.BlockSpec((C, C), lambda n: (0, 0))
    in_specs = [
        pl.BlockSpec((B, H * W, 9), lambda n: (n, 0, 0)),   # block-1 im2col (bf16)
        pl.BlockSpec((9, C), lambda n: (0, 0)), b_spec,     # block 1 params
        wp_spec, wl_spec, b_spec,                           # block 2 params
        wp_spec, wl_spec, b_spec,                           # block 3 params
        wp_spec, wl_spec, b_spec,                           # block 4 params
    ]

    return pl.pallas_call(
        kernel,
        out_shape=jax.ShapeDtypeStruct((Npad, H4, W4, C), jnp.float32),
        grid_spec=pltpu.PrefetchScalarGridSpec(
            num_scalar_prefetch=0,
            grid=(Npad // B,),
            in_specs=in_specs,
            out_specs=pl.BlockSpec((B, H4, W4, C), lambda n: (n, 0, 0, 0)),
            scratch_shapes=[
                # Zero-padded inter-block activations, resident in VMEM (bf16).
                pltpu.VMEM((B, H1 + 2, W1 + 2, C), jnp.bfloat16),
                pltpu.VMEM((B, H2 + 2, W2 + 2, C), jnp.bfloat16),
                pltpu.VMEM((B, H3 + 2, W3 + 2, C), jnp.bfloat16),
            ],
        ),
        compiler_params=pltpu.CompilerParams(
            dimension_semantics=("parallel",),
            vmem_limit_bytes=64 * 1024 * 1024),
    )(patches, *flat_params)


def init_protonet_params(key, hidden=128, eps=1e-5):
    """Deterministic synthetic parameters; BN folded into the conv weights/bias.

    Block 1: (w1 (9, C) bf16, bias (1, C) f32)
    Blocks 2-4: (w_pairs (4, 2C, C) bf16, w_last (C, C) bf16, bias (1, C) f32)
    where w_pairs[p] stacks taps (2p, 2p+1) along the contraction dim.
    """
    params = []
    cin = 1
    for _ in range(4):
        cout = hidden
        key, k_w, k_b, k_g, k_beta = jax.random.split(key, 5)
        # PyTorch conv weight layout (Cout, Cin, 3, 3).
        w_pt = jax.random.normal(k_w, (cout, cin, 3, 3), jnp.float32) * 0.05
        conv_b = jax.random.normal(k_b, (cout,), jnp.float32) * 0.05
        gamma = 1.0 + 0.1 * jax.random.normal(k_g, (cout,), jnp.float32)
        beta = 0.1 * jax.random.normal(k_beta, (cout,), jnp.float32)
        run_mean = jnp.zeros((cout,), jnp.float32)
        run_var = jnp.ones((cout,), jnp.float32)

        inv_std = 1.0 / jnp.sqrt(run_var + eps)
        scale = gamma * inv_std                               # (Cout,)
        bias = (conv_b - run_mean) * scale + beta             # (Cout,)

        # Tap-major (9, Cin, Cout), tap index = dy*3+dx, with BN scale folded
        # into the output channels of the conv weights.
        w9 = jnp.transpose(w_pt, (2, 3, 1, 0)).reshape(9, cin, cout) * scale
        if cin == 1:
            w1 = w9.reshape(9, cout).astype(jnp.bfloat16)
            params.append((w1, bias.reshape(1, cout)))
        else:
            wp = jnp.stack(
                [jnp.concatenate([w9[2 * p], w9[2 * p + 1]], axis=0)
                 for p in range(4)], axis=0).astype(jnp.bfloat16)   # (4, 2C, C)
            wl = w9[8].astype(jnp.bfloat16)                          # (C, C)
            params.append((wp, wl, bias.reshape(1, cout)))
        cin = cout
    return params


def _pick_block_batch(N, H, W, C, cap):
    """Pick B from a VMEM budget (sized for v7x's 64 MiB per-TC VMEM)."""
    acc_f32 = H * W * C * 4                                   # block-1 accumulator
    pooled = (H // 2) * (W // 2) * C * 4                      # pooled f32 value
    act_bf16 = (((H // 2 + 2) * (W // 2 + 2))
                + ((H // 4 + 2) * (W // 4 + 2))
                + ((H // 8 + 2) * (W // 8 + 2))) * C * 2      # bf16 scratch
    patches = 2 * H * W * 9 * 2                               # double-buffered bf16
    per_sample = acc_f32 + pooled + act_bf16 + patches
    budget = 40 * 1024 * 1024
    b = max(1, min(cap, budget // per_sample))
    b = min(b, N)
    if N >= 2:
        # Keep >= 2 grid steps so the "parallel" axis can shard across both
        # v7x TensorCores.
        b = min(b, -(-N // 2))
    return int(b)


@functools.partial(jax.jit, static_argnames=("block_batch",))
def protonet_forward(x, params, block_batch=32):
    """x: (num_samples, seq_len, mel_bins) -> (num_samples, features)."""
    N, H, W = x.shape
    # Four 2x max-pools: this implementation requires spatial dims % 16 == 0.
    assert H % 16 == 0 and W % 16 == 0, (H, W)
    C = params[0][0].shape[-1]

    B = _pick_block_batch(N, H, W, C, block_batch)
    n_chunks = -(-N // B)
    Npad = n_chunks * B
    if Npad != N:
        x = jnp.pad(x, ((0, Npad - N), (0, 0), (0, 0)))

    # Host-side im2col of the Cin=1 input, emitted directly in bf16 so block 1
    # runs as a single dense MXU matmul inside the fused kernel.
    xp = jnp.pad(x, ((0, 0), (1, 1), (1, 1)))
    cols = [xp[:, dy:dy + H, dx:dx + W] for dy in range(3) for dx in range(3)]
    patches = jnp.stack(cols, axis=-1).reshape(Npad, H * W, 9).astype(jnp.bfloat16)

    flat_params = []
    flat_params += list(params[0])
    for p in params[1:]:
        flat_params += list(p)

    out = _fused_encoder_call(patches, flat_params, B, H, W, C)
    out = out[:N]
    # Match PyTorch's x.view(N, -1) on an NCHW tensor: flatten channel-major.
    return jnp.transpose(out, (0, 3, 1, 2)).reshape(N, -1)


if __name__ == "__main__":
    key = jax.random.PRNGKey(0)
    key, k_x, k_p = jax.random.split(key, 3)

    # (num_samples, seq_len, mel_bins); 16x16 spatial -> four 2x pools -> 1x1,
    # so the flattened output is (2, 128).
    x = jax.random.normal(k_x, (2, 16, 16), jnp.float32)
    params = init_protonet_params(k_p)

    out = protonet_forward(x, params)
    out = jax.block_until_ready(out)

    assert out.shape == (2, 128), out.shape
    assert jnp.all(jnp.isfinite(out))
    print("KERNEL_OK")
</pallas_src>

<mosaic_0001>
module attributes {stable_mosaic.version = 11 : i64} {
  func.func @kernel(%arg0: i32, %arg1: memref<1x256x9xbf16, #tpu.memory_space<vmem>>, %arg2: memref<9x128xbf16, #tpu.memory_space<vmem>>, %arg3: memref<1x128xf32, #tpu.memory_space<vmem>>, %arg4: memref<4x256x128xbf16, #tpu.memory_space<vmem>>, %arg5: memref<128x128xbf16, #tpu.memory_space<vmem>>, %arg6: memref<1x128xf32, #tpu.memory_space<vmem>>, %arg7: memref<4x256x128xbf16, #tpu.memory_space<vmem>>, %arg8: memref<128x128xbf16, #tpu.memory_space<vmem>>, %arg9: memref<1x128xf32, #tpu.memory_space<vmem>>, %arg10: memref<4x256x128xbf16, #tpu.memory_space<vmem>>, %arg11: memref<128x128xbf16, #tpu.memory_space<vmem>>, %arg12: memref<1x128xf32, #tpu.memory_space<vmem>>, %arg13: memref<1x1x1x128xf32, #tpu.memory_space<vmem>>, %arg14: memref<1x10x10x128xbf16, #tpu.memory_space<vmem>>, %arg15: memref<1x6x6x128xbf16, #tpu.memory_space<vmem>>, %arg16: memref<1x4x4x128xbf16, #tpu.memory_space<vmem>>) attributes {dimension_semantics = [#tpu.dimension_semantics<parallel>], iteration_bounds = array<i64: 2>, scalar_prefetch = 0 : i64, scratch_operands = 3 : i64, tpu.core_type = #tpu.core_type<tc>, window_params = [{transform_indices = @transform_0, window_bounds = array<i64: 1, 256, 9>}, {pipeline_mode = #tpu.pipeline_mode<synchronous>, transform_indices = @transform_1, window_bounds = array<i64: 9, 128>}, {pipeline_mode = #tpu.pipeline_mode<synchronous>, transform_indices = @transform_2, window_bounds = array<i64: 1, 128>}, {pipeline_mode = #tpu.pipeline_mode<synchronous>, transform_indices = @transform_3, window_bounds = array<i64: 4, 256, 128>}, {pipeline_mode = #tpu.pipeline_mode<synchronous>, transform_indices = @transform_4, window_bounds = array<i64: 128, 128>}, {pipeline_mode = #tpu.pipeline_mode<synchronous>, transform_indices = @transform_5, window_bounds = array<i64: 1, 128>}, {pipeline_mode = #tpu.pipeline_mode<synchronous>, transform_indices = @transform_6, window_bounds = array<i64: 4, 256, 128>}, {pipeline_mode = #tpu.pipeline_mode<synchronous>, transform_indices = @transform_7, window_bounds = array<i64: 128, 128>}, {pipeline_mode = #tpu.pipeline_mode<synchronous>, transform_indices = @transform_8, window_bounds = array<i64: 1, 128>}, {pipeline_mode = #tpu.pipeline_mode<synchronous>, transform_indices = @transform_9, window_bounds = array<i64: 4, 256, 128>}, {pipeline_mode = #tpu.pipeline_mode<synchronous>, transform_indices = @transform_10, window_bounds = array<i64: 128, 128>}, {pipeline_mode = #tpu.pipeline_mode<synchronous>, transform_indices = @transform_11, window_bounds = array<i64: 1, 128>}, {transform_indices = @transform_12, window_bounds = array<i64: 1, 1, 1, 128>}]} {
    %cst = arith.constant 0.000000e+00 : bf16
    %0 = vector.broadcast %cst : bf16 to vector<1x1x10x128xbf16>
    %cst_0 = arith.constant 0.000000e+00 : bf16
    %1 = vector.broadcast %cst_0 : bf16 to vector<1x10x1x128xbf16>
    %c0 = arith.constant 0 : index
    %c0_1 = arith.constant 0 : index
    %c0_2 = arith.constant 0 : index
    %c0_3 = arith.constant 0 : index
    %2 = vector.load %arg14[%c0, %c0_1, %c0_2, %c0_3] : memref<1x10x10x128xbf16, #tpu.memory_space<vmem>>, vector<1x1x10x128xbf16>
    tpu.vector_store %arg14[%c0, %c0_1, %c0_2, %c0_3], %0 {strides = array<i32>} : memref<1x10x10x128xbf16, #tpu.memory_space<vmem>>, vector<1x1x10x128xbf16>,
    %c0_4 = arith.constant 0 : index
    %c9 = arith.constant 9 : index
    %c0_5 = arith.constant 0 : index
    %c0_6 = arith.constant 0 : index
    %3 = vector.load %arg14[%c0_4, %c9, %c0_5, %c0_6] : memref<1x10x10x128xbf16, #tpu.memory_space<vmem>>, vector<1x1x10x128xbf16>
    tpu.vector_store %arg14[%c0_4, %c9, %c0_5, %c0_6], %0 {strides = array<i32>} : memref<1x10x10x128xbf16, #tpu.memory_space<vmem>>, vector<1x1x10x128xbf16>,
    %c0_7 = arith.constant 0 : index
    %c0_8 = arith.constant 0 : index
    %c0_9 = arith.constant 0 : index
    %c0_10 = arith.constant 0 : index
    %4 = vector.load %arg14[%c0_7, %c0_8, %c0_9, %c0_10] : memref<1x10x10x128xbf16, #tpu.memory_space<vmem>>, vector<1x10x1x128xbf16>
    tpu.vector_store %arg14[%c0_7, %c0_8, %c0_9, %c0_10], %1 {strides = array<i32>} : memref<1x10x10x128xbf16, #tpu.memory_space<vmem>>, vector<1x10x1x128xbf16>,
    %c0_11 = arith.constant 0 : index
    %c0_12 = arith.constant 0 : index
    %c9_13 = arith.constant 9 : index
    %c0_14 = arith.constant 0 : index
    %5 = vector.load %arg14[%c0_11, %c0_12, %c9_13, %c0_14] : memref<1x10x10x128xbf16, #tpu.memory_space<vmem>>, vector<1x10x1x128xbf16>
    tpu.vector_store %arg14[%c0_11, %c0_12, %c9_13, %c0_14], %1 {strides = array<i32>} : memref<1x10x10x128xbf16, #tpu.memory_space<vmem>>, vector<1x10x1x128xbf16>,
    %cst_15 = arith.constant 0.000000e+00 : bf16
    %6 = vector.broadcast %cst_15 : bf16 to vector<1x1x6x128xbf16>
    %cst_16 = arith.constant 0.000000e+00 : bf16
    %7 = vector.broadcast %cst_16 : bf16 to vector<1x6x1x128xbf16>
    %c0_17 = arith.constant 0 : index
    %c0_18 = arith.constant 0 : index
    %c0_19 = arith.constant 0 : index
    %c0_20 = arith.constant 0 : index
    %8 = vector.load %arg15[%c0_17, %c0_18, %c0_19, %c0_20] : memref<1x6x6x128xbf16, #tpu.memory_space<vmem>>, vector<1x1x6x128xbf16>
    tpu.vector_store %arg15[%c0_17, %c0_18, %c0_19, %c0_20], %6 {strides = array<i32>} : memref<1x6x6x128xbf16, #tpu.memory_space<vmem>>, vector<1x1x6x128xbf16>,
    %c0_21 = arith.constant 0 : index
    %c5 = arith.constant 5 : index
    %c0_22 = arith.constant 0 : index
    %c0_23 = arith.constant 0 : index
    %9 = vector.load %arg15[%c0_21, %c5, %c0_22, %c0_23] : memref<1x6x6x128xbf16, #tpu.memory_space<vmem>>, vector<1x1x6x128xbf16>
    tpu.vector_store %arg15[%c0_21, %c5, %c0_22, %c0_23], %6 {strides = array<i32>} : memref<1x6x6x128xbf16, #tpu.memory_space<vmem>>, vector<1x1x6x128xbf16>,
    %c0_24 = arith.constant 0 : index
    %c0_25 = arith.constant 0 : index
    %c0_26 = arith.constant 0 : index
    %c0_27 = arith.constant 0 : index
    %10 = vector.load %arg15[%c0_24, %c0_25, %c0_26, %c0_27] : memref<1x6x6x128xbf16, #tpu.memory_space<vmem>>, vector<1x6x1x128xbf16>
    tpu.vector_store %arg15[%c0_24, %c0_25, %c0_26, %c0_27], %7 {strides = array<i32>} : memref<1x6x6x128xbf16, #tpu.memory_space<vmem>>, vector<1x6x1x128xbf16>,
    %c0_28 = arith.constant 0 : index
    %c0_29 = arith.constant 0 : index
    %c5_30 = arith.constant 5 : index
    %c0_31 = arith.constant 0 : index
    %11 = vector.load %arg15[%c0_28, %c0_29, %c5_30, %c0_31] : memref<1x6x6x128xbf16, #tpu.memory_space<vmem>>, vector<1x6x1x128xbf16>
    tpu.vector_store %arg15[%c0_28, %c0_29, %c5_30, %c0_31], %7 {strides = array<i32>} : memref<1x6x6x128xbf16, #tpu.memory_space<vmem>>, vector<1x6x1x128xbf16>,
    %cst_32 = arith.constant 0.000000e+00 : bf16
    %12 = vector.broadcast %cst_32 : bf16 to vector<1x1x4x128xbf16>
    %cst_33 = arith.constant 0.000000e+00 : bf16
    %13 = vector.broadcast %cst_33 : bf16 to vector<1x4x1x128xbf16>
    %c0_34 = arith.constant 0 : index
    %c0_35 = arith.constant 0 : index
    %c0_36 = arith.constant 0 : index
    %c0_37 = arith.constant 0 : index
    %14 = vector.load %arg16[%c0_34, %c0_35, %c0_36, %c0_37] : memref<1x4x4x128xbf16, #tpu.memory_space<vmem>>, vector<1x1x4x128xbf16>
    tpu.vector_store %arg16[%c0_34, %c0_35, %c0_36, %c0_37], %12 {strides = array<i32>} : memref<1x4x4x128xbf16, #tpu.memory_space<vmem>>, vector<1x1x4x128xbf16>,
    %c0_38 = arith.constant 0 : index
    %c3 = arith.constant 3 : index
    %c0_39 = arith.constant 0 : index
    %c0_40 = arith.constant 0 : index
    %15 = vector.load %arg16[%c0_38, %c3, %c0_39, %c0_40] : memref<1x4x4x128xbf16, #tpu.memory_space<vmem>>, vector<1x1x4x128xbf16>
    tpu.vector_store %arg16[%c0_38, %c3, %c0_39, %c0_40], %12 {strides = array<i32>} : memref<1x4x4x128xbf16, #tpu.memory_space<vmem>>, vector<1x1x4x128xbf16>,
    %c0_41 = arith.constant 0 : index
    %c0_42 = arith.constant 0 : index
    %c0_43 = arith.constant 0 : index
    %c0_44 = arith.constant 0 : index
    %16 = vector.load %arg16[%c0_41, %c0_42, %c0_43, %c0_44] : memref<1x4x4x128xbf16, #tpu.memory_space<vmem>>, vector<1x4x1x128xbf16>
    tpu.vector_store %arg16[%c0_41, %c0_42, %c0_43, %c0_44], %13 {strides = array<i32>} : memref<1x4x4x128xbf16, #tpu.memory_space<vmem>>, vector<1x4x1x128xbf16>,
    %c0_45 = arith.constant 0 : index
    %c0_46 = arith.constant 0 : index
    %c3_47 = arith.constant 3 : index
    %c0_48 = arith.constant 0 : index
    %17 = vector.load %arg16[%c0_45, %c0_46, %c3_47, %c0_48] : memref<1x4x4x128xbf16, #tpu.memory_space<vmem>>, vector<1x4x1x128xbf16>
    tpu.vector_store %arg16[%c0_45, %c0_46, %c3_47, %c0_48], %13 {strides = array<i32>} : memref<1x4x4x128xbf16, #tpu.memory_space<vmem>>, vector<1x4x1x128xbf16>,
    %c0_49 = arith.constant 0 : index
    %c0_50 = arith.constant 0 : index
    %c0_51 = arith.constant 0 : index
    %18 = vector.load %arg1[%c0_49, %c0_50, %c0_51] : memref<1x256x9xbf16, #tpu.memory_space<vmem>>, vector<1x256x9xbf16>
    %19 = vector.shape_cast %18 : vector<1x256x9xbf16> to vector<256x9xbf16>
    %c0_52 = arith.constant 0 : index
    %c0_53 = arith.constant 0 : index
    %20 = vector.load %arg2[%c0_52, %c0_53] : memref<9x128xbf16, #tpu.memory_space<vmem>>, vector<9x128xbf16>
    %cst_54 = arith.constant dense<0.000000e+00> : vector<256x128xf32>
    %21 = tpu.matmul %19, %20, %cst_54 {dimension_numbers = #tpu.dot_dimension_numbers<[1], [0], [0], [1], [0, 0, 1, 1], [], []>} : vector<256x9xbf16>, vector<9x128xbf16>, vector<256x128xf32> -> vector<256x128xf32>
    %c0_55 = arith.constant 0 : index
    %c0_56 = arith.constant 0 : index
    %22 = vector.load %arg3[%c0_55, %c0_56] : memref<1x128xf32, #tpu.memory_space<vmem>>, vector<1x128xf32>
    %23 = vector.broadcast %22 : vector<1x128xf32> to vector<256x128xf32>
    %24 = arith.addf %21, %23 : vector<256x128xf32>
    %cst_57 = arith.constant 0.000000e+00 : f32
    %25 = vector.broadcast %cst_57 : f32 to vector<256x128xf32>
    %26 = arith.maximumf %24, %25 : vector<256x128xf32>
    %27 = vector.shape_cast %26 : vector<256x128xf32> to vector<1x8x2x16x128xf32>
    %cst_58 = arith.constant dense<0xFF800000> : vector<1x8x16x128xf32>
    %28 = vector.multi_reduction <maximumf>, %27, %cst_58 [2] : vector<1x8x2x16x128xf32> to vector<1x8x16x128xf32>
    %29 = vector.shape_cast %28 : vector<1x8x16x128xf32> to vector<1x8x8x2x128xf32>
    %cst_59 = arith.constant dense<0xFF800000> : vector<1x8x8x128xf32>
    %30 = vector.multi_reduction <maximumf>, %29, %cst_59 [3] : vector<1x8x8x2x128xf32> to vector<1x8x8x128xf32>
    %31 = arith.truncf %30 : vector<1x8x8x128xf32> to vector<1x8x8x128xbf16>
    %c0_60 = arith.constant 0 : index
    %c1 = arith.constant 1 : index
    %c1_61 = arith.constant 1 : index
    %c0_62 = arith.constant 0 : index
    %32 = vector.load %arg14[%c0_60, %c1, %c1_61, %c0_62] : memref<1x10x10x128xbf16, #tpu.memory_space<vmem>>, vector<1x8x8x128xbf16>
    tpu.vector_store %arg14[%c0_60, %c1, %c1_61, %c0_62], %31 {strides = array<i32>} : memref<1x10x10x128xbf16, #tpu.memory_space<vmem>>, vector<1x8x8x128xbf16>,
    %c0_63 = arith.constant 0 : index
    %c0_64 = arith.constant 0 : index
    %c0_65 = arith.constant 0 : index
    %c0_66 = arith.constant 0 : index
    %33 = vector.load %arg14[%c0_63, %c0_64, %c0_65, %c0_66] : memref<1x10x10x128xbf16, #tpu.memory_space<vmem>>, vector<1x10x10x128xbf16>
    %34 = vector.extract_strided_slice %33 {offsets = [0, 0, 0, 0], sizes = [1, 10, 8, 128], strides = [1, 1, 1, 1]} : vector<1x10x10x128xbf16> to vector<1x10x8x128xbf16>
    %35 = vector.extract_strided_slice %33 {offsets = [0, 0, 1, 0], sizes = [1, 10, 8, 128], strides = [1, 1, 1, 1]} : vector<1x10x10x128xbf16> to vector<1x10x8x128xbf16>
    %36 = vector.extract_strided_slice %33 {offsets = [0, 0, 2, 0], sizes = [1, 10, 8, 128], strides = [1, 1, 1, 1]} : vector<1x10x10x128xbf16> to vector<1x10x8x128xbf16>
    %37 = vector.extract_strided_slice %36 {offsets = [0, 2, 0, 0], sizes = [1, 8, 8, 128], strides = [1, 1, 1, 1]} : vector<1x10x8x128xbf16> to vector<1x8x8x128xbf16>
    %38 = vector.shape_cast %37 : vector<1x8x8x128xbf16> to vector<64x128xbf16>
    %c0_67 = arith.constant 0 : index
    %c0_68 = arith.constant 0 : index
    %39 = vector.load %arg5[%c0_67, %c0_68] : memref<128x128xbf16, #tpu.memory_space<vmem>>, vector<128x128xbf16>
    %cst_69 = arith.constant dense<0.000000e+00> : vector<64x128xf32>
    %40 = tpu.matmul %38, %39, %cst_69 {dimension_numbers = #tpu.dot_dimension_numbers<[1], [0], [0], [1], [0, 0, 1, 1], [], []>} : vector<64x128xbf16>, vector<128x128xbf16>, vector<64x128xf32> -> vector<64x128xf32>
    %41 = vector.extract_strided_slice %34 {offsets = [0, 0, 0, 0], sizes = [1, 8, 8, 128], strides = [1, 1, 1, 1]} : vector<1x10x8x128xbf16> to vector<1x8x8x128xbf16>
    %42 = vector.shape_cast %41 : vector<1x8x8x128xbf16> to vector<64x128xbf16>
    %43 = vector.extract_strided_slice %35 {offsets = [0, 0, 0, 0], sizes = [1, 8, 8, 128], strides = [1, 1, 1, 1]} : vector<1x10x8x128xbf16> to vector<1x8x8x128xbf16>
    %44 = vector.shape_cast %43 : vector<1x8x8x128xbf16> to vector<64x128xbf16>
    %45 = tpu.concatenate %42, %44 in 1 : vector<64x128xbf16>, vector<64x128xbf16> -> vector<64x256xbf16>
    %c0_70 = arith.constant 0 : index
    %c0_71 = arith.constant 0 : index
    %c0_72 = arith.constant 0 : index
    %46 = vector.load %arg4[%c0_70, %c0_71, %c0_72] : memref<4x256x128xbf16, #tpu.memory_space<vmem>>, vector<1x256x128xbf16>
    %47 = vector.shape_cast %46 : vector<1x256x128xbf16> to vector<256x128xbf16>
    %cst_73 = arith.constant dense<0.000000e+00> : vector<64x128xf32>
    %48 = tpu.matmul %45, %47, %cst_73 {dimension_numbers = #tpu.dot_dimension_numbers<[1], [0], [0], [1], [0, 0, 1, 1], [], []>} : vector<64x256xbf16>, vector<256x128xbf16>, vector<64x128xf32> -> vector<64x128xf32>
    %49 = arith.addf %40, %48 : vector<64x128xf32>
    %50 = vector.extract_strided_slice %36 {offsets = [0, 0, 0, 0], sizes = [1, 8, 8, 128], strides = [1, 1, 1, 1]} : vector<1x10x8x128xbf16> to vector<1x8x8x128xbf16>
    %51 = vector.shape_cast %50 : vector<1x8x8x128xbf16> to vector<64x128xbf16>
    %52 = vector.extract_strided_slice %34 {offsets = [0, 1, 0, 0], sizes = [1, 8, 8, 128], strides = [1, 1, 1, 1]} : vector<1x10x8x128xbf16> to vector<1x8x8x128xbf16>
    %53 = vector.shape_cast %52 : vector<1x8x8x128xbf16> to vector<64x128xbf16>
    %54 = tpu.concatenate %51, %53 in 1 : vector<64x128xbf16>, vector<64x128xbf16> -> vector<64x256xbf16>
    %c1_74 = arith.constant 1 : index
    %c0_75 = arith.constant 0 : index
    %c0_76 = arith.constant 0 : index
    %55 = vector.load %arg4[%c1_74, %c0_75, %c0_76] : memref<4x256x128xbf16, #tpu.memory_space<vmem>>, vector<1x256x128xbf16>
    %56 = vector.shape_cast %55 : vector<1x256x128xbf16> to vector<256x128xbf16>
    %cst_77 = arith.constant dense<0.000000e+00> : vector<64x128xf32>
    %57 = tpu.matmul %54, %56, %cst_77 {dimension_numbers = #tpu.dot_dimension_numbers<[1], [0], [0], [1], [0, 0, 1, 1], [], []>} : vector<64x256xbf16>, vector<256x128xbf16>, vector<64x128xf32> -> vector<64x128xf32>
    %58 = arith.addf %49, %57 : vector<64x128xf32>
    %59 = vector.extract_strided_slice %35 {offsets = [0, 1, 0, 0], sizes = [1, 8, 8, 128], strides = [1, 1, 1, 1]} : vector<1x10x8x128xbf16> to vector<1x8x8x128xbf16>
    %60 = vector.shape_cast %59 : vector<1x8x8x128xbf16> to vector<64x128xbf16>
    %61 = vector.extract_strided_slice %36 {offsets = [0, 1, 0, 0], sizes = [1, 8, 8, 128], strides = [1, 1, 1, 1]} : vector<1x10x8x128xbf16> to vector<1x8x8x128xbf16>
    %62 = vector.shape_cast %61 : vector<1x8x8x128xbf16> to vector<64x128xbf16>
    %63 = tpu.concatenate %60, %62 in 1 : vector<64x128xbf16>, vector<64x128xbf16> -> vector<64x256xbf16>
    %c2 = arith.constant 2 : index
    %c0_78 = arith.constant 0 : index
    %c0_79 = arith.constant 0 : index
    %64 = vector.load %arg4[%c2, %c0_78, %c0_79] : memref<4x256x128xbf16, #tpu.memory_space<vmem>>, vector<1x256x128xbf16>
    %65 = vector.shape_cast %64 : vector<1x256x128xbf16> to vector<256x128xbf16>
    %cst_80 = arith.constant dense<0.000000e+00> : vector<64x128xf32>
    %66 = tpu.matmul %63, %65, %cst_80 {dimension_numbers = #tpu.dot_dimension_numbers<[1], [0], [0], [1], [0, 0, 1, 1], [], []>} : vector<64x256xbf16>, vector<256x128xbf16>, vector<64x128xf32> -> vector<64x128xf32>
    %67 = arith.addf %58, %66 : vector<64x128xf32>
    %68 = vector.extract_strided_slice %34 {offsets = [0, 2, 0, 0], sizes = [1, 8, 8, 128], strides = [1, 1, 1, 1]} : vector<1x10x8x128xbf16> to vector<1x8x8x128xbf16>
    %69 = vector.shape_cast %68 : vector<1x8x8x128xbf16> to vector<64x128xbf16>
    %70 = vector.extract_strided_slice %35 {offsets = [0, 2, 0, 0], sizes = [1, 8, 8, 128], strides = [1, 1, 1, 1]} : vector<1x10x8x128xbf16> to vector<1x8x8x128xbf16>
    %71 = vector.shape_cast %70 : vector<1x8x8x128xbf16> to vector<64x128xbf16>
    %72 = tpu.concatenate %69, %71 in 1 : vector<64x128xbf16>, vector<64x128xbf16> -> vector<64x256xbf16>
    %c3_81 = arith.constant 3 : index
    %c0_82 = arith.constant 0 : index
    %c0_83 = arith.constant 0 : index
    %73 = vector.load %arg4[%c3_81, %c0_82, %c0_83] : memref<4x256x128xbf16, #tpu.memory_space<vmem>>, vector<1x256x128xbf16>
    %74 = vector.shape_cast %73 : vector<1x256x128xbf16> to vector<256x128xbf16>
    %cst_84 = arith.constant dense<0.000000e+00> : vector<64x128xf32>
    %75 = tpu.matmul %72, %74, %cst_84 {dimension_numbers = #tpu.dot_dimension_numbers<[1], [0], [0], [1], [0, 0, 1, 1], [], []>} : vector<64x256xbf16>, vector<256x128xbf16>, vector<64x128xf32> -> vector<64x128xf32>
    %76 = arith.addf %67, %75 : vector<64x128xf32>
    %c0_85 = arith.constant 0 : index
    %c0_86 = arith.constant 0 : index
    %77 = vector.load %arg6[%c0_85, %c0_86] : memref<1x128xf32, #tpu.memory_space<vmem>>, vector<1x128xf32>
    %78 = vector.broadcast %77 : vector<1x128xf32> to vector<64x128xf32>
    %79 = arith.addf %76, %78 : vector<64x128xf32>
    %cst_87 = arith.constant 0.000000e+00 : f32
    %80 = vector.broadcast %cst_87 : f32 to vector<64x128xf32>
    %81 = arith.maximumf %79, %80 : vector<64x128xf32>
    %82 = vector.shape_cast %81 : vector<64x128xf32> to vector<1x4x2x8x128xf32>
    %cst_88 = arith.constant dense<0xFF800000> : vector<1x4x8x128xf32>
    %83 = vector.multi_reduction <maximumf>, %82, %cst_88 [2] : vector<1x4x2x8x128xf32> to vector<1x4x8x128xf32>
    %84 = vector.shape_cast %83 : vector<1x4x8x128xf32> to vector<1x4x4x2x128xf32>
    %cst_89 = arith.constant dense<0xFF800000> : vector<1x4x4x128xf32>
    %85 = vector.multi_reduction <maximumf>, %84, %cst_89 [3] : vector<1x4x4x2x128xf32> to vector<1x4x4x128xf32>
    %86 = arith.truncf %85 : vector<1x4x4x128xf32> to vector<1x4x4x128xbf16>
    %c0_90 = arith.constant 0 : index
    %c1_91 = arith.constant 1 : index
    %c1_92 = arith.constant 1 : index
    %c0_93 = arith.constant 0 : index
    %87 = vector.load %arg15[%c0_90, %c1_91, %c1_92, %c0_93] : memref<1x6x6x128xbf16, #tpu.memory_space<vmem>>, vector<1x4x4x128xbf16>
    tpu.vector_store %arg15[%c0_90, %c1_91, %c1_92, %c0_93], %86 {strides = array<i32>} : memref<1x6x6x128xbf16, #tpu.memory_space<vmem>>, vector<1x4x4x128xbf16>,
    %c0_94 = arith.constant 0 : index
    %c0_95 = arith.constant 0 : index
    %c0_96 = arith.constant 0 : index
    %c0_97 = arith.constant 0 : index
    %88 = vector.load %arg15[%c0_94, %c0_95, %c0_96, %c0_97] : memref<1x6x6x128xbf16, #tpu.memory_space<vmem>>, vector<1x6x6x128xbf16>
    %89 = vector.extract_strided_slice %88 {offsets = [0, 0, 0, 0], sizes = [1, 6, 4, 128], strides = [1, 1, 1, 1]} : vector<1x6x6x128xbf16> to vector<1x6x4x128xbf16>
    %90 = vector.extract_strided_slice %88 {offsets = [0, 0, 1, 0], sizes = [1, 6, 4, 128], strides = [1, 1, 1, 1]} : vector<1x6x6x128xbf16> to vector<1x6x4x128xbf16>
    %91 = vector.extract_strided_slice %88 {offsets = [0, 0, 2, 0], sizes = [1, 6, 4, 128], strides = [1, 1, 1, 1]} : vector<1x6x6x128xbf16> to vector<1x6x4x128xbf16>
    %92 = vector.extract_strided_slice %91 {offsets = [0, 2, 0, 0], sizes = [1, 4, 4, 128], strides = [1, 1, 1, 1]} : vector<1x6x4x128xbf16> to vector<1x4x4x128xbf16>
    %93 = vector.shape_cast %92 : vector<1x4x4x128xbf16> to vector<16x128xbf16>
    %c0_98 = arith.constant 0 : index
    %c0_99 = arith.constant 0 : index
    %94 = vector.load %arg8[%c0_98, %c0_99] : memref<128x128xbf16, #tpu.memory_space<vmem>>, vector<128x128xbf16>
    %cst_100 = arith.constant dense<0.000000e+00> : vector<16x128xf32>
    %95 = tpu.matmul %93, %94, %cst_100 {dimension_numbers = #tpu.dot_dimension_numbers<[1], [0], [0], [1], [0, 0, 1, 1], [], []>} : vector<16x128xbf16>, vector<128x128xbf16>, vector<16x128xf32> -> vector<16x128xf32>
    %96 = vector.extract_strided_slice %89 {offsets = [0, 0, 0, 0], sizes = [1, 4, 4, 128], strides = [1, 1, 1, 1]} : vector<1x6x4x128xbf16> to vector<1x4x4x128xbf16>
    %97 = vector.shape_cast %96 : vector<1x4x4x128xbf16> to vector<16x128xbf16>
    %98 = vector.extract_strided_slice %90 {offsets = [0, 0, 0, 0], sizes = [1, 4, 4, 128], strides = [1, 1, 1, 1]} : vector<1x6x4x128xbf16> to vector<1x4x4x128xbf16>
    %99 = vector.shape_cast %98 : vector<1x4x4x128xbf16> to vector<16x128xbf16>
    %100 = tpu.concatenate %97, %99 in 1 : vector<16x128xbf16>, vector<16x128xbf16> -> vector<16x256xbf16>
    %c0_101 = arith.constant 0 : index
    %c0_102 = arith.constant 0 : index
    %c0_103 = arith.constant 0 : index
    %101 = vector.load %arg7[%c0_101, %c0_102, %c0_103] : memref<4x256x128xbf16, #tpu.memory_space<vmem>>, vector<1x256x128xbf16>
    %102 = vector.shape_cast %101 : vector<1x256x128xbf16> to vector<256x128xbf16>
    %cst_104 = arith.constant dense<0.000000e+00> : vector<16x128xf32>
    %103 = tpu.matmul %100, %102, %cst_104 {dimension_numbers = #tpu.dot_dimension_numbers<[1], [0], [0], [1], [0, 0, 1, 1], [], []>} : vector<16x256xbf16>, vector<256x128xbf16>, vector<16x128xf32> -> vector<16x128xf32>
    %104 = arith.addf %95, %103 : vector<16x128xf32>
    %105 = vector.extract_strided_slice %91 {offsets = [0, 0, 0, 0], sizes = [1, 4, 4, 128], strides = [1, 1, 1, 1]} : vector<1x6x4x128xbf16> to vector<1x4x4x128xbf16>
    %106 = vector.shape_cast %105 : vector<1x4x4x128xbf16> to vector<16x128xbf16>
    %107 = vector.extract_strided_slice %89 {offsets = [0, 1, 0, 0], sizes = [1, 4, 4, 128], strides = [1, 1, 1, 1]} : vector<1x6x4x128xbf16> to vector<1x4x4x128xbf16>
    %108 = vector.shape_cast %107 : vector<1x4x4x128xbf16> to vector<16x128xbf16>
    %109 = tpu.concatenate %106, %108 in 1 : vector<16x128xbf16>, vector<16x128xbf16> -> vector<16x256xbf16>
    %c1_105 = arith.constant 1 : index
    %c0_106 = arith.constant 0 : index
    %c0_107 = arith.constant 0 : index
    %110 = vector.load %arg7[%c1_105, %c0_106, %c0_107] : memref<4x256x128xbf16, #tpu.memory_space<vmem>>, vector<1x256x128xbf16>
    %111 = vector.shape_cast %110 : vector<1x256x128xbf16> to vector<256x128xbf16>
    %cst_108 = arith.constant dense<0.000000e+00> : vector<16x128xf32>
    %112 = tpu.matmul %109, %111, %cst_108 {dimension_numbers = #tpu.dot_dimension_numbers<[1], [0], [0], [1], [0, 0, 1, 1], [], []>} : vector<16x256xbf16>, vector<256x128xbf16>, vector<16x128xf32> -> vector<16x128xf32>
    %113 = arith.addf %104, %112 : vector<16x128xf32>
    %114 = vector.extract_strided_slice %90 {offsets = [0, 1, 0, 0], sizes = [1, 4, 4, 128], strides = [1, 1, 1, 1]} : vector<1x6x4x128xbf16> to vector<1x4x4x128xbf16>
    %115 = vector.shape_cast %114 : vector<1x4x4x128xbf16> to vector<16x128xbf16>
    %116 = vector.extract_strided_slice %91 {offsets = [0, 1, 0, 0], sizes = [1, 4, 4, 128], strides = [1, 1, 1, 1]} : vector<1x6x4x128xbf16> to vector<1x4x4x128xbf16>
    %117 = vector.shape_cast %116 : vector<1x4x4x128xbf16> to vector<16x128xbf16>
    %118 = tpu.concatenate %115, %117 in 1 : vector<16x128xbf16>, vector<16x128xbf16> -> vector<16x256xbf16>
    %c2_109 = arith.constant 2 : index
    %c0_110 = arith.constant 0 : index
    %c0_111 = arith.constant 0 : index
    %119 = vector.load %arg7[%c2_109, %c0_110, %c0_111] : memref<4x256x128xbf16, #tpu.memory_space<vmem>>, vector<1x256x128xbf16>
    %120 = vector.shape_cast %119 : vector<1x256x128xbf16> to vector<256x128xbf16>
    %cst_112 = arith.constant dense<0.000000e+00> : vector<16x128xf32>
    %121 = tpu.matmul %118, %120, %cst_112 {dimension_numbers = #tpu.dot_dimension_numbers<[1], [0], [0], [1], [0, 0, 1, 1], [], []>} : vector<16x256xbf16>, vector<256x128xbf16>, vector<16x128xf32> -> vector<16x128xf32>
    %122 = arith.addf %113, %121 : vector<16x128xf32>
    %123 = vector.extract_strided_slice %89 {offsets = [0, 2, 0, 0], sizes = [1, 4, 4, 128], strides = [1, 1, 1, 1]} : vector<1x6x4x128xbf16> to vector<1x4x4x128xbf16>
    %124 = vector.shape_cast %123 : vector<1x4x4x128xbf16> to vector<16x128xbf16>
    %125 = vector.extract_strided_slice %90 {offsets = [0, 2, 0, 0], sizes = [1, 4, 4, 128], strides = [1, 1, 1, 1]} : vector<1x6x4x128xbf16> to vector<1x4x4x128xbf16>
    %126 = vector.shape_cast %125 : vector<1x4x4x128xbf16> to vector<16x128xbf16>
    %127 = tpu.concatenate %124, %126 in 1 : vector<16x128xbf16>, vector<16x128xbf16> -> vector<16x256xbf16>
    %c3_113 = arith.constant 3 : index
    %c0_114 = arith.constant 0 : index
    %c0_115 = arith.constant 0 : index
    %128 = vector.load %arg7[%c3_113, %c0_114, %c0_115] : memref<4x256x128xbf16, #tpu.memory_space<vmem>>, vector<1x256x128xbf16>
    %129 = vector.shape_cast %128 : vector<1x256x128xbf16> to vector<256x128xbf16>
    %cst_116 = arith.constant dense<0.000000e+00> : vector<16x128xf32>
    %130 = tpu.matmul %127, %129, %cst_116 {dimension_numbers = #tpu.dot_dimension_numbers<[1], [0], [0], [1], [0, 0, 1, 1], [], []>} : vector<16x256xbf16>, vector<256x128xbf16>, vector<16x128xf32> -> vector<16x128xf32>
    %131 = arith.addf %122, %130 : vector<16x128xf32>
    %c0_117 = arith.constant 0 : index
    %c0_118 = arith.constant 0 : index
    %132 = vector.load %arg9[%c0_117, %c0_118] : memref<1x128xf32, #tpu.memory_space<vmem>>, vector<1x128xf32>
    %133 = vector.broadcast %132 : vector<1x128xf32> to vector<16x128xf32>
    %134 = arith.addf %131, %133 : vector<16x128xf32>
    %cst_119 = arith.constant 0.000000e+00 : f32
    %135 = vector.broadcast %cst_119 : f32 to vector<16x128xf32>
    %136 = arith.maximumf %134, %135 : vector<16x128xf32>
    %137 = vector.shape_cast %136 : vector<16x128xf32> to vector<1x2x2x4x128xf32>
    %cst_120 = arith.constant dense<0xFF800000> : vector<1x2x4x128xf32>
    %138 = vector.multi_reduction <maximumf>, %137, %cst_120 [2] : vector<1x2x2x4x128xf32> to vector<1x2x4x128xf32>
    %139 = vector.shape_cast %138 : vector<1x2x4x128xf32> to vector<1x2x2x2x128xf32>
    %cst_121 = arith.constant dense<0xFF800000> : vector<1x2x2x128xf32>
    %140 = vector.multi_reduction <maximumf>, %139, %cst_121 [3] : vector<1x2x2x2x128xf32> to vector<1x2x2x128xf32>
    %141 = arith.truncf %140 : vector<1x2x2x128xf32> to vector<1x2x2x128xbf16>
    %c0_122 = arith.constant 0 : index
    %c1_123 = arith.constant 1 : index
    %c1_124 = arith.constant 1 : index
    %c0_125 = arith.constant 0 : index
    %142 = vector.load %arg16[%c0_122, %c1_123, %c1_124, %c0_125] : memref<1x4x4x128xbf16, #tpu.memory_space<vmem>>, vector<1x2x2x128xbf16>
    tpu.vector_store %arg16[%c0_122, %c1_123, %c1_124, %c0_125], %141 {strides = array<i32>} : memref<1x4x4x128xbf16, #tpu.memory_space<vmem>>, vector<1x2x2x128xbf16>,
    %c0_126 = arith.constant 0 : index
    %c0_127 = arith.constant 0 : index
    %c0_128 = arith.constant 0 : index
    %c0_129 = arith.constant 0 : index
    %143 = vector.load %arg16[%c0_126, %c0_127, %c0_128, %c0_129] : memref<1x4x4x128xbf16, #tpu.memory_space<vmem>>, vector<1x4x4x128xbf16>
    %144 = vector.extract_strided_slice %143 {offsets = [0, 0, 0, 0], sizes = [1, 4, 2, 128], strides = [1, 1, 1, 1]} : vector<1x4x4x128xbf16> to vector<1x4x2x128xbf16>
    %145 = vector.extract_strided_slice %143 {offsets = [0, 0, 1, 0], sizes = [1, 4, 2, 128], strides = [1, 1, 1, 1]} : vector<1x4x4x128xbf16> to vector<1x4x2x128xbf16>
    %146 = vector.extract_strided_slice %143 {offsets = [0, 0, 2, 0], sizes = [1, 4, 2, 128], strides = [1, 1, 1, 1]} : vector<1x4x4x128xbf16> to vector<1x4x2x128xbf16>
    %147 = vector.extract_strided_slice %146 {offsets = [0, 2, 0, 0], sizes = [1, 2, 2, 128], strides = [1, 1, 1, 1]} : vector<1x4x2x128xbf16> to vector<1x2x2x128xbf16>
    %148 = vector.shape_cast %147 : vector<1x2x2x128xbf16> to vector<4x128xbf16>
    %c0_130 = arith.constant 0 : index
    %c0_131 = arith.constant 0 : index
    %149 = vector.load %arg11[%c0_130, %c0_131] : memref<128x128xbf16, #tpu.memory_space<vmem>>, vector<128x128xbf16>
    %cst_132 = arith.constant dense<0.000000e+00> : vector<4x128xf32>
    %150 = tpu.matmul %148, %149, %cst_132 {dimension_numbers = #tpu.dot_dimension_numbers<[1], [0], [0], [1], [0, 0, 1, 1], [], []>} : vector<4x128xbf16>, vector<128x128xbf16>, vector<4x128xf32> -> vector<4x128xf32>
    %151 = vector.extract_strided_slice %144 {offsets = [0, 0, 0, 0], sizes = [1, 2, 2, 128], strides = [1, 1, 1, 1]} : vector<1x4x2x128xbf16> to vector<1x2x2x128xbf16>
    %152 = vector.shape_cast %151 : vector<1x2x2x128xbf16> to vector<4x128xbf16>
    %153 = vector.extract_strided_slice %145 {offsets = [0, 0, 0, 0], sizes = [1, 2, 2, 128], strides = [1, 1, 1, 1]} : vector<1x4x2x128xbf16> to vector<1x2x2x128xbf16>
    %154 = vector.shape_cast %153 : vector<1x2x2x128xbf16> to vector<4x128xbf16>
    %155 = tpu.concatenate %152, %154 in 1 : vector<4x128xbf16>, vector<4x128xbf16> -> vector<4x256xbf16>
    %c0_133 = arith.constant 0 : index
    %c0_134 = arith.constant 0 : index
    %c0_135 = arith.constant 0 : index
    %156 = vector.load %arg10[%c0_133, %c0_134, %c0_135] : memref<4x256x128xbf16, #tpu.memory_space<vmem>>, vector<1x256x128xbf16>
    %157 = vector.shape_cast %156 : vector<1x256x128xbf16> to vector<256x128xbf16>
    %cst_136 = arith.constant dense<0.000000e+00> : vector<4x128xf32>
    %158 = tpu.matmul %155, %157, %cst_136 {dimension_numbers = #tpu.dot_dimension_numbers<[1], [0], [0], [1], [0, 0, 1, 1], [], []>} : vector<4x256xbf16>, vector<256x128xbf16>, vector<4x128xf32> -> vector<4x128xf32>
    %159 = arith.addf %150, %158 : vector<4x128xf32>
    %160 = vector.extract_strided_slice %146 {offsets = [0, 0, 0, 0], sizes = [1, 2, 2, 128], strides = [1, 1, 1, 1]} : vector<1x4x2x128xbf16> to vector<1x2x2x128xbf16>
    %161 = vector.shape_cast %160 : vector<1x2x2x128xbf16> to vector<4x128xbf16>
    %162 = vector.extract_strided_slice %144 {offsets = [0, 1, 0, 0], sizes = [1, 2, 2, 128], strides = [1, 1, 1, 1]} : vector<1x4x2x128xbf16> to vector<1x2x2x128xbf16>
    %163 = vector.shape_cast %162 : vector<1x2x2x128xbf16> to vector<4x128xbf16>
    %164 = tpu.concatenate %161, %163 in 1 : vector<4x128xbf16>, vector<4x128xbf16> -> vector<4x256xbf16>
    %c1_137 = arith.constant 1 : index
    %c0_138 = arith.constant 0 : index
    %c0_139 = arith.constant 0 : index
    %165 = vector.load %arg10[%c1_137, %c0_138, %c0_139] : memref<4x256x128xbf16, #tpu.memory_space<vmem>>, vector<1x256x128xbf16>
    %166 = vector.shape_cast %165 : vector<1x256x128xbf16> to vector<256x128xbf16>
    %cst_140 = arith.constant dense<0.000000e+00> : vector<4x128xf32>
    %167 = tpu.matmul %164, %166, %cst_140 {dimension_numbers = #tpu.dot_dimension_numbers<[1], [0], [0], [1], [0, 0, 1, 1], [], []>} : vector<4x256xbf16>, vector<256x128xbf16>, vector<4x128xf32> -> vector<4x128xf32>
    %168 = arith.addf %159, %167 : vector<4x128xf32>
    %169 = vector.extract_strided_slice %145 {offsets = [0, 1, 0, 0], sizes = [1, 2, 2, 128], strides = [1, 1, 1, 1]} : vector<1x4x2x128xbf16> to vector<1x2x2x128xbf16>
    %170 = vector.shape_cast %169 : vector<1x2x2x128xbf16> to vector<4x128xbf16>
    %171 = vector.extract_strided_slice %146 {offsets = [0, 1, 0, 0], sizes = [1, 2, 2, 128], strides = [1, 1, 1, 1]} : vector<1x4x2x128xbf16> to vector<1x2x2x128xbf16>
    %172 = vector.shape_cast %171 : vector<1x2x2x128xbf16> to vector<4x128xbf16>
    %173 = tpu.concatenate %170, %172 in 1 : vector<4x128xbf16>, vector<4x128xbf16> -> vector<4x256xbf16>
    %c2_141 = arith.constant 2 : index
    %c0_142 = arith.constant 0 : index
    %c0_143 = arith.constant 0 : index
    %174 = vector.load %arg10[%c2_141, %c0_142, %c0_143] : memref<4x256x128xbf16, #tpu.memory_space<vmem>>, vector<1x256x128xbf16>
    %175 = vector.shape_cast %174 : vector<1x256x128xbf16> to vector<256x128xbf16>
    %cst_144 = arith.constant dense<0.000000e+00> : vector<4x128xf32>
    %176 = tpu.matmul %173, %175, %cst_144 {dimension_numbers = #tpu.dot_dimension_numbers<[1], [0], [0], [1], [0, 0, 1, 1], [], []>} : vector<4x256xbf16>, vector<256x128xbf16>, vector<4x128xf32> -> vector<4x128xf32>
    %177 = arith.addf %168, %176 : vector<4x128xf32>
    %178 = vector.extract_strided_slice %144 {offsets = [0, 2, 0, 0], sizes = [1, 2, 2, 128], strides = [1, 1, 1, 1]} : vector<1x4x2x128xbf16> to vector<1x2x2x128xbf16>
    %179 = vector.shape_cast %178 : vector<1x2x2x128xbf16> to vector<4x128xbf16>
    %180 = vector.extract_strided_slice %145 {offsets = [0, 2, 0, 0], sizes = [1, 2, 2, 128], strides = [1, 1, 1, 1]} : vector<1x4x2x128xbf16> to vector<1x2x2x128xbf16>
    %181 = vector.shape_cast %180 : vector<1x2x2x128xbf16> to vector<4x128xbf16>
    %182 = tpu.concatenate %179, %181 in 1 : vector<4x128xbf16>, vector<4x128xbf16> -> vector<4x256xbf16>
    %c3_145 = arith.constant 3 : index
    %c0_146 = arith.constant 0 : index
    %c0_147 = arith.constant 0 : index
    %183 = vector.load %arg10[%c3_145, %c0_146, %c0_147] : memref<4x256x128xbf16, #tpu.memory_space<vmem>>, vector<1x256x128xbf16>
    %184 = vector.shape_cast %183 : vector<1x256x128xbf16> to vector<256x128xbf16>
    %cst_148 = arith.constant dense<0.000000e+00> : vector<4x128xf32>
    %185 = tpu.matmul %182, %184, %cst_148 {dimension_numbers = #tpu.dot_dimension_numbers<[1], [0], [0], [1], [0, 0, 1, 1], [], []>} : vector<4x256xbf16>, vector<256x128xbf16>, vector<4x128xf32> -> vector<4x128xf32>
    %186 = arith.addf %177, %185 : vector<4x128xf32>
    %c0_149 = arith.constant 0 : index
    %c0_150 = arith.constant 0 : index
    %187 = vector.load %arg12[%c0_149, %c0_150] : memref<1x128xf32, #tpu.memory_space<vmem>>, vector<1x128xf32>
    %188 = vector.broadcast %187 : vector<1x128xf32> to vector<4x128xf32>
    %189 = arith.addf %186, %188 : vector<4x128xf32>
    %cst_151 = arith.constant 0.000000e+00 : f32
    %190 = vector.broadcast %cst_151 : f32 to vector<4x128xf32>
    %191 = arith.maximumf %189, %190 : vector<4x128xf32>
    %192 = vector.shape_cast %191 : vector<4x128xf32> to vector<1x1x2x2x128xf32>
    %cst_152 = arith.constant dense<0xFF800000> : vector<1x1x2x128xf32>
    %193 = vector.multi_reduction <maximumf>, %192, %cst_152 [2] : vector<1x1x2x2x128xf32> to vector<1x1x2x128xf32>
    %194 = vector.shape_cast %193 : vector<1x1x2x128xf32> to vector<1x1x1x2x128xf32>
    %cst_153 = arith.constant dense<0xFF800000> : vector<1x1x1x128xf32>
    %195 = vector.multi_reduction <maximumf>, %194, %cst_153 [3] : vector<1x1x1x2x128xf32> to vector<1x1x1x128xf32>
    %c0_154 = arith.constant 0 : index
    %c0_155 = arith.constant 0 : index
    %c0_156 = arith.constant 0 : index
    %c0_157 = arith.constant 0 : index
    %196 = vector.load %arg13[%c0_154, %c0_155, %c0_156, %c0_157] : memref<1x1x1x128xf32, #tpu.memory_space<vmem>>, vector<1x1x1x128xf32>
    tpu.vector_store %arg13[%c0_154, %c0_155, %c0_156, %c0_157], %195 {strides = array<i32>} : memref<1x1x1x128xf32, #tpu.memory_space<vmem>>, vector<1x1x1x128xf32>,
    return
  }
  func.func @transform_0(%arg0: i32) -> (i32, i32, i32) {
    %c0_i32 = arith.constant 0 : i32
    %c0_i32_0 = arith.constant 0 : i32
    %c0_i32_1 = arith.constant 0 : i32
    return %arg0, %c0_i32, %c0_i32_0 : i32, i32, i32
  }
  func.func @transform_1(%arg0: i32) -> (i32, i32) {
    %c0_i32 = arith.constant 0 : i32
    %c0_i32_0 = arith.constant 0 : i32
    %c0_i32_1 = arith.constant 0 : i32
    return %c0_i32, %c0_i32_0 : i32, i32
  }
  func.func @transform_2(%arg0: i32) -> (i32, i32) {
    %c0_i32 = arith.constant 0 : i32
    %c0_i32_0 = arith.constant 0 : i32
    %c0_i32_1 = arith.constant 0 : i32
    return %c0_i32, %c0_i32_0 : i32, i32
  }
  func.func @transform_3(%arg0: i32) -> (i32, i32, i32) {
    %c0_i32 = arith.constant 0 : i32
    %c0_i32_0 = arith.constant 0 : i32
    %c0_i32_1 = arith.constant 0 : i32
    %c0_i32_2 = arith.constant 0 : i32
    return %c0_i32, %c0_i32_0, %c0_i32_1 : i32, i32, i32
  }
  func.func @transform_4(%arg0: i32) -> (i32, i32) {
    %c0_i32 = arith.constant 0 : i32
    %c0_i32_0 = arith.constant 0 : i32
    %c0_i32_1 = arith.constant 0 : i32
    return %c0_i32, %c0_i32_0 : i32, i32
  }
  func.func @transform_5(%arg0: i32) -> (i32, i32) {
    %c0_i32 = arith.constant 0 : i32
    %c0_i32_0 = arith.constant 0 : i32
    %c0_i32_1 = arith.constant 0 : i32
    return %c0_i32, %c0_i32_0 : i32, i32
  }
  func.func @transform_6(%arg0: i32) -> (i32, i32, i32) {
    %c0_i32 = arith.constant 0 : i32
    %c0_i32_0 = arith.constant 0 : i32
    %c0_i32_1 = arith.constant 0 : i32
    %c0_i32_2 = arith.constant 0 : i32
    return %c0_i32, %c0_i32_0, %c0_i32_1 : i32, i32, i32
  }
  func.func @transform_7(%arg0: i32) -> (i32, i32) {
    %c0_i32 = arith.constant 0 : i32
    %c0_i32_0 = arith.constant 0 : i32
    %c0_i32_1 = arith.constant 0 : i32
    return %c0_i32, %c0_i32_0 : i32, i32
  }
  func.func @transform_8(%arg0: i32) -> (i32, i32) {
    %c0_i32 = arith.constant 0 : i32
    %c0_i32_0 = arith.constant 0 : i32
    %c0_i32_1 = arith.constant 0 : i32
    return %c0_i32, %c0_i32_0 : i32, i32
  }
  func.func @transform_9(%arg0: i32) -> (i32, i32, i32) {
    %c0_i32 = arith.constant 0 : i32
    %c0_i32_0 = arith.constant 0 : i32
    %c0_i32_1 = arith.constant 0 : i32
    %c0_i32_2 = arith.constant 0 : i32
    return %c0_i32, %c0_i32_0, %c0_i32_1 : i32, i32, i32
  }
  func.func @transform_10(%arg0: i32) -> (i32, i32) {
    %c0_i32 = arith.constant 0 : i32
    %c0_i32_0 = arith.constant 0 : i32
    %c0_i32_1 = arith.constant 0 : i32
    return %c0_i32, %c0_i32_0 : i32, i32
  }
  func.func @transform_11(%arg0: i32) -> (i32, i32) {
    %c0_i32 = arith.constant 0 : i32
    %c0_i32_0 = arith.constant 0 : i32
    %c0_i32_1 = arith.constant 0 : i32
    return %c0_i32, %c0_i32_0 : i32, i32
  }
  func.func @transform_12(%arg0: i32) -> (i32, i32, i32, i32) {
    %c0_i32 = arith.constant 0 : i32
    %c0_i32_0 = arith.constant 0 : i32
    %c0_i32_1 = arith.constant 0 : i32
    %c0_i32_2 = arith.constant 0 : i32
    return %arg0, %c0_i32, %c0_i32_0, %c0_i32_1 : i32, i32, i32, i32
  }
}

</mosaic_0001>

<bundles_post_ra>
// kernel: protonet_forward.1
= control target key start
LH: loop header
LB: loop body
LE: loop exit
PB: predicated region body
PF: predicated region fallthrough
CT: control target
= control target key end

     0   :  { %s9348_s0 = inlined_call_operand.vmem [shape: bf16[2,256,9], index: 0, kind: input, shape index: {}]   ;;  %s9349_s1 = inlined_call_operand.vmem [shape: bf16[9,128], index: 1, kind: input, shape index: {}]   ;;  %s9350_s2 = inlined_call_operand.vmem [shape: f32[1,128], index: 2, kind: input, shape index: {}]   ;;  %s9351_s3 = inlined_call_operand.vmem [shape: bf16[4,256,128], index: 3, kind: input, shape index: {}]   ;;  %s9352_s4 = inlined_call_operand.vmem [shape: bf16[128,128], index: 4, kind: input, shape index: {}]   ;;  %s9353_s5 = inlined_call_operand.vmem [shape: f32[1,128], index: 5, kind: input, shape index: {}]   ;;  %s9354_s6 = inlined_call_operand.hbm [shape: bf16[4,256,128], index: 6, kind: input, shape index: {}]   ;;  %s9355_s7 = inlined_call_operand.vmem [shape: bf16[128,128], index: 7, kind: input, shape index: {}]   ;;  %s9356_s8 = inlined_call_operand.vmem [shape: f32[1,128], index: 8, kind: input, shape index: {}]   ;;  %s9357_s9 = inlined_call_operand.hbm [shape: bf16[4,256,128], index: 9, kind: input, shape index: {}]   ;;  %s9358_s10 = inlined_call_operand.vmem [shape: bf16[128,128], index: 10, kind: input, shape index: {}]   ;;  %s9359_s11 = inlined_call_operand.vmem [shape: f32[1,128], index: 11, kind: input, shape index: {}]   ;;  %s9360_s12 = inlined_call_operand.hbm [shape: f32[2,1,1,128], index: 12, kind: output, shape index: {}]  }
   0x1   :  { %9365 = sst [smem:[#allocation16_spill]] %s9348_s0 }
   0x2   :  { %17 = vsyncpa [#allocation6], 0 }
   0x3   :  { %18 = vsyncpa [#allocation9], 0 }
   0x4   :  { %19 = vsyncpa [#allocation7], 0 }
   0x5   :  { %21 = vsyncpa [#allocation7 + $0x1], 0  ;;  %s7814_s21 = smov 0   ;;  %s7816_s22 = smov 0  }
   0x6   :  { %s7818_s23 = smov 0   ;;  %s7820_s24 = smov 0  }
   0x7 LB: > { %9366 = sst [smem:[#allocation14_spill]] %s7732_s23  ;;  %s7835_s25 = sadd.s32 4294967295, %s7736_s24   ;;  %s7736_s24 = sphi %s7820_s24, %s9411_s24   ;;  %s7732_s23 = sphi %s7818_s23, %s9408_s23   ;;  %s7728_s22 = sphi %s7816_s22, %s9410_s22   ;;  %s7724_s21 = sphi %s7814_s21, %s9409_s21  }
   0x8   : > { %s6233_s26 = sadd.s32 4294967294, %s7736_s24   ;;  %s7839_s27 = sadd.s32 1, %s7736_s24  }
   0x9   : > { %s291_s28 = sadd.s32 1, %s7732_s23  ;;  %s288_s29 = ssub.s32 %s7736_s24, %s7839_s27 }
   0xa   : > { %p301_p0 = scmp.ne.s32.totalorder %s7732_s23, %s7728_s22  ;;  %p289_p1 = scmp.eq.s32.totalorder %s288_s29, 0 }
   0xb   : > { %p302_p2 = scmp.eq.s32.totalorder %s7835_s25, 1  ;;  %p307_p3 = scmp.ne.s32.totalorder %s7728_s22, %s7724_s21 }
   0xc   : > { %p308_p4 = scmp.eq.s32.totalorder %s6233_s26, 1  ;;  %p6234_p7 = scmp.ge.s32.totalorder %s7736_s24, 1 }
   0xd   : > { %s7850_s30 = scalar_select %p289_p1, %s7732_s23, %s291_s28  }
   0xe   : > { %p7852_p5 = por %p302_p2, %p301_p0  ;;  %p7856_p6 = por %p308_p4, %p307_p3 }
   0xf   : > { %9367 = sst [smem:[#allocation15_spill]] %s7850_s30  ;;  %p315_p8 = scmp.lt.s32.totalorder %s7736_s24, 3 }
  0x10   : > { %s9369_s14 = scalar_select %p7856_p6, 1, 0 }
  0x11   : > { %p9361_p9 = scmp.eq.s32.totalorder %s7835_s25, 0  ;;  %p7863_p10 = pnand %p6234_p7, %p315_p8 }
  0x12   : > { %s7738_s16 = smov [#allocation5]   ;;  %s7739_s19 = smov [#allocation8]  }
  0x13   : > { %s342_s17 = sshll.u32 %s7738_s16, 4  ;;  %p7313_p11 = pneg %p7863_p10  ;;  %s343_s17 = int_to_ptr.vmem [resolvable:$true] %s342_s17 }
  0x14   : > { %s361_s20 = sshll.u32 %s7739_s19, 4  ;;  %s7627_s26 = scalar_lea.vmem %s343_s17, 8192  ;;  %s362_s20 = int_to_ptr.vmem [resolvable:$true] %s361_s20 }
  0x15   : > { %p7871_p12 = pnand %p9361_p9, %p7313_p11  ;;  %p7628_p0 = scmp.ne.s32.totalorder %s343_s17, %s7627_s26 }
  0x16   : > { %p7635_p3 = scmp.lt.s32.totalorder %s343_s17, %s343_s17  ;;  %p7636_p4 = scmp.lt.s32.totalorder %s7627_s26, %s7627_s26 }
  0x17   : > { %p7618_p13 = pneg %p7871_p12 }
  0x18   : > { %p7637_p7 = por %p7636_p4, %p7635_p3 }
  0x19   : > { %p7630_p1 = pnand %p7628_p0, %p7618_p13 }
  0x1b   : > { %p7631_p2 = pneg %p7630_p1 }
  0x1d   : > { %p7638_p8 = pnand %p7637_p7, %p7631_p2 }
  0x1f   : > { %7641 = shalt.err (!%p7638_p8)
}
  0x20   : > { %s7740_s28 = smov 64   ;;  %s7741_s29 = smov 4  }
  0x21   : > { %7316 = dma.hbm_to_vmem [thread:$0]  (!%p7871_p12), %s9354_s6, 8192, %s343_s17, [#allocation6], %s7740_s28, %s7740_s28, %s7741_s29  }
  0x22   : > { %s7653_s30 = scalar_lea.vmem %s362_s20, 8192  ;;  %p7661_p9 = scmp.lt.s32.totalorder %s362_s20, %s362_s20 }
  0x23   : > { %p7654_p11 = scmp.ne.s32.totalorder %s362_s20, %s7653_s30  ;;  %p7662_p6 = scmp.lt.s32.totalorder %s7653_s30, %s7653_s30 }
  0x25   : > { %p7656_p0 = pnand %p7654_p11, %p7618_p13  ;;  %p7663_p3 = por %p7662_p6, %p7661_p9 }
  0x27   : > { %p7657_p1 = pneg %p7656_p0 }
  0x29   : > { %p7664_p2 = pnand %p7663_p3, %p7657_p1 }
  0x2b   : > { %7667 = shalt.err (!%p7664_p2)
}
  0x2c   : > { %7319 = dma.hbm_to_vmem [thread:$0]  (!%p7871_p12), %s9357_s9, 8192, %s362_s20, [#allocation9], %s7740_s28, %s7740_s28, %s7741_s29  }
  0x2d   : > { %391 = sbr.rel (%p7863_p10) target bundleno = 1459 (0x5b3), region = 68  ;;  %p9372_p4 = scmp.eq.s32.totalorder (!%p7863_p10), %s7835_s25, 0 }
  0x32   : > { %7711 = dma.done.wait (%p9372_p4), [#allocation6], 8192   ;;  %p9373_p13 = pmov %p9372_p4 }
  0x33   : > { %p9374_p7 = pmov %p9372_p4 }
  0x34   : > { %7713 = vsyncadd (%p9373_p13), [#allocation6], 4294959104 }
  0x35   : > { %7715 = dma.done.wait (%p9374_p7), [#allocation9], 8192   ;;  %p9375_p6 = pmov %p9372_p4 }
  0x36   : > { %vm9364_vm0 = vcmask 1043456   ;;  %p436_p9 = scmp.lt.s32.totalorder %s7835_s25, 1  ;;  %vm760_vm1 = vcmask 1044480   ;;  %v7742_v0 = vmov 65535   ;;  %s9376_s0 = sld [smem:[#allocation16_spill]]  ;;  %vm710_vm2 = vcmask 72704  }
  0x37   : > { %7717 = vsyncadd (%p9375_p6), [#allocation9], 4294959104  ;;  %v761_v1 = vsel %vm9364_vm0, 4294967295, %v7742_v0  ;;  %v7371_v3 = vld [vmem:[%s9349_s1] sm:$0x1f]   ;;  %vm447_vm3 = vcmask 1040384   ;;  %v995_v61 = vlaneseq }
  0x38   : > { %s437_s23 = scalar_select %p436_p9, %s7835_s25, 1  ;;  %v762_v2 = vsel %vm760_vm1, %v761_v1, 0  ;;  %vm480_vm4 = vsmask.f32 7938  ;;  %vm9363_vm5 = vsmask.f32 256 }
  0x39   : > { %v764_v5 = vand.u32 %v7371_v3, %v762_v2  ;;  %vm7948_vm6 = vmand %vm447_vm3, %vm480_vm4  ;;  %v485_v22 = vld [vmem:[#allocation2 + $0xc] sm:$0x1]  ;;  %v453_v25 = vld [vmem:[#allocation2 + $0x8] sm:$0x1]  ;;  %v7743_v59 = vmov 1983009808  }
  0x3a   : > { %s6733_s30 = sshll.u32 %s437_s23, 7  ;;  %vm7954_vm7 = vmand %vm447_vm3, %vm9363_vm5  ;;  %v486_v24 = vsel %vm7948_vm6, 0, %v485_v22  ;;  %v456_v27 = vld [vmem:[#allocation2 + $0x10] sm:$0x1]  ;;  %v488_v28 = vld [vmem:[#allocation2 + $0x14] sm:$0x1]  ;;  %v993_v60 = vunpack.c.l.s4 %v7743_v59 }
  0x3b   : > { %7205 = vmatprep.subr.bf16.mxu0 %v764_v5  ;;  %487 = vst [vmem:[#allocation2 + $0xc] sm:$0x1] %v486_v24  ;;  %v454_v26 = vsel %vm7954_vm7, 0, %v453_v25  ;;  %v457_v29 = vsel %vm7954_vm7, 0, %v456_v27  ;;  %v489_v30 = vsel %vm7948_vm6, 0, %v488_v28  ;;  %v7388_v34 = vld [vmem:[%s9351_s3 + $0xf8] sm:$0xff]   ;;  %vm8120_vm15 = vmand %vm9364_vm0, %vm480_vm4 }
  0x3c   : > { %s7909_s18 = scalar_lea.vmem %s9376_s0, %s6733_s30  ;;  %7206 = vmatpush3.bf16.msra.mxu0 %v764_v5  ;;  %455 = vst [vmem:[#allocation2 + $0x8] sm:$0x1] %v454_v26  ;;  %458 = vst [vmem:[#allocation2 + $0x10] sm:$0x1] %v457_v29  ;;  %v491_v31 = vld [vmem:[#allocation2 + $0x1c] sm:$0x1]  ;;  %v994_v5 = vunpack.c.0.s8 %v993_v60 }
  0x3d   : > { %v7372_v4 = vld [vmem:[%s7909_s18] sm:$0xff]   ;;  %v7373_v6 = vld [vmem:[%s7909_s18 + $0x8] sm:$0xff]   ;;  %v7374_v7 = vld [vmem:[%s7909_s18 + $0x10] sm:$0xff]   ;;  %490 = vst [vmem:[#allocation2 + $0x14] sm:$0x1] %v489_v30  ;;  %v492_v32 = vsel %vm7948_vm6, 0, %v491_v31  ;;  %6891 = vmatprep.subr.bf16.mxu0 %v7388_v34 }
  0x3e   : > { %7207 = vmatprep.mubr.msk.bf16.mxu0 %vm710_vm2, %v7372_v4  ;;  %v7375_v8 = vld [vmem:[%s7909_s18 + $0x18] sm:$0xff]   ;;  %v7376_v9 = vld [vmem:[%s7909_s18 + $0x20] sm:$0xff]   ;;  %v7377_v10 = vld [vmem:[%s7909_s18 + $0x28] sm:$0xff]   ;;  %493 = vst [vmem:[#allocation2 + $0x1c] sm:$0x1] %v492_v32  ;;  %vm1327_vm8 = vcmask 1041408  }
  0x3f   : > { %7208 = vmatmul.mubr.msk.bf16.vlgmr.msra.gmra.mxu0 %vm710_vm2, %v7373_v6  ;;  %v7378_v11 = vld [vmem:[%s7909_s18 + $0x30] sm:$0xff]   ;;  %v7379_v12 = vld [vmem:[%s7909_s18 + $0x38] sm:$0xff]   ;;  %v7380_v13 = vld [vmem:[%s7909_s18 + $0x40] sm:$0xff]   ;;  %v8044_v6 = vshrl.u32 %v995_v61, 7  ;;  %vm533_vm9 = vcmask 1042434   ;;  %vm2098_vm10 = vcmask 1043459  }
  0x40   : > { %7211 = vmatprep.mubr.msk.bf16.mxu0 %vm710_vm2, %v7374_v7  ;;  %v7381_v14 = vld [vmem:[%s7909_s18 + $0x48] sm:$0xff]   ;;  %v7382_v15 = vld [vmem:[%s7909_s18 + $0x50] sm:$0xff]   ;;  %v7383_v16 = vld [vmem:[%s7909_s18 + $0x58] sm:$0xff]   ;;  %vm2100_vm11 = vcmask 1044484   ;;  %vm2102_vm12 = vcmask 1045509   ;;  %vm2104_vm13 = vcmask 1046534  }
  0x41   : > { %v7384_v17 = vld [vmem:[%s7909_s18 + $0x60] sm:$0xff]   ;;  %v7385_v18 = vld [vmem:[%s7909_s18 + $0x68] sm:$0xff]   ;;  %v7386_v19 = vld [vmem:[%s7909_s18 + $0x70] sm:$0xff]   ;;  %vm2106_vm14 = vcmask 1047559   ;;  %vm2269_vm1 = vcmask 1042432   ;;  %s434_s28 = sand.u32 1, %s7728_s22  }
  0x42   : > { %v7387_v20 = vld [vmem:[%s7909_s18 + $0x78] sm:$0xff]   ;;  %v7392_v39 = vld [vmem:[%s9351_s3 + $0xf0] sm:$0xff]   ;;  %v7396_v43 = vld [vmem:[%s9351_s3 + $0xe8] sm:$0xff]   ;;  %vm2320_vm4 = vsmask.f32 3328  ;;  %s6730_s29 = sshll.u32 %s7835_s25, 4 }
  0x43   : > { %v459_v33 = vld [vmem:[#allocation2 + $0x18] sm:$0x1]  ;;  %v7393_v40 = vld [vmem:[%s9351_s3 + $0x70] sm:$0xff]   ;;  %v494_v44 = vld [vmem:[#allocation2 + $0x24] sm:$0x1]  ;;  %s435_s16 = scalar_lea.vmem [#allocation10], %s434_s28  ;;  %s6154_s30 = scalar_lea.hbm %s9360_s12, %s6730_s29 }
  0x44   : > { %v460_v35 = vsel %vm7954_vm7, 0, %v459_v33  ;;  %v7389_v36 = vld [vmem:[%s9351_s3 + $0x78] sm:$0xff]   ;;  %v7394_v41 = vld [vmem:[%s9351_s3 + $0xb0] sm:$0xff]   ;;  %v7397_v45 = vld [vmem:[%s9351_s3 + $0x68] sm:$0xff]   ;;  %v495_v47 = vsel %vm7948_vm6, 0, %v494_v44  ;;  %s6156_s19 = sshll.u32 %s435_s16, 4  ;;  %s6157_s19 = int_to_ptr.vmem [resolvable:$true] %s6156_s19 }
  0x45   : > { %v7390_v37 = vld [vmem:[%s9351_s3 + $0xb8] sm:$0xff]   ;;  %461 = vst [vmem:[#allocation2 + $0x18] sm:$0x1] %v460_v35  ;;  %6839 = vmatprep.subr.bf16.mxu1 %v7389_v36  ;;  %v7395_v42 = vld [vmem:[%s9351_s3 + $0x30] sm:$0xff]   ;;  %v7398_v46 = vld [vmem:[%s9351_s3 + $0xa8] sm:$0xff]   ;;  %s6144_s15 = scalar_lea.sflag [#allocation7], %s434_s28 }
  0x46   : > { %v7391_v38 = vld [vmem:[%s9351_s3 + $0x38] sm:$0xff]   ;;  %6892 = vmatpush3.bf16.msra.mxu0 %v7390_v37  ;;  %496 = vst [vmem:[#allocation2 + $0x24] sm:$0x1] %v495_v47  ;;  %v462_v48 = vld [vmem:[#allocation2 + $0x20] sm:$0x1]  ;;  %v7399_v50 = vld [vmem:[%s9351_s3 + $0x28] sm:$0xff]  }
  0x47   : > { %7212 = vmatmul.mubr.msk.bf16.gmra.mxu0 %vm710_vm2, %v7375_v8  ;;  %6840 = vmatpush3.bf16.msra.mxu1 %v7391_v38  ;;  %v463_v49 = vsel %vm7954_vm7, 0, %v462_v48  ;;  %v7400_v51 = vld [vmem:[%s9351_s3 + $0xe0] sm:$0xff]   ;;  %v7404_v55 = vld [vmem:[%s9351_s3 + $0xd8] sm:$0xff]   ;;  %v465_v63 = vld [vmem:[#allocation2 + $0x28] sm:$0x1]  ;;  %s7668_s17 = scalar_lea.vmem %s6157_s19, 16 }
  0x48   : > { %7215 = vmatprep.mubr.msk.bf16.mxu0 %vm710_vm2, %v7376_v9  ;;  %6893 = vmatprep.subr.bf16.mxu0 %v7392_v39  ;;  %464 = vst [vmem:[#allocation2 + $0x20] sm:$0x1] %v463_v49  ;;  %v7401_v52 = vld [vmem:[%s9351_s3 + $0x60] sm:$0xff]   ;;  %v7405_v56 = vld [vmem:[%s9351_s3 + $0x58] sm:$0xff]   ;;  %v497_v0 = vld [vmem:[#allocation2 + $0x2c] sm:$0x1]  ;;  %p7669_p10 = scmp.ne.s32.totalorder %s6157_s19, %s7668_s17 }
  0x49   : > { %6841 = vmatprep.subr.bf16.mxu1 %v7393_v40  ;;  %v7402_v53 = vld [vmem:[%s9351_s3 + $0xa0] sm:$0xff]   ;;  %v7406_v57 = vld [vmem:[%s9351_s3 + $0x98] sm:$0xff]   ;;  %v466_v1 = vsel %vm7954_vm7, 0, %v465_v63  ;;  %v498_v2 = vsel %vm7948_vm6, 0, %v497_v0  ;;  %v7408_v38 = vld [vmem:[%s9351_s3 + $0xd0] sm:$0xff]   ;;  %s7748_s18 = smov [#allocation10]  }
  0x4a   : > { %6894 = vmatpush3.bf16.msra.mxu0 %v7394_v41  ;;  %v7403_v54 = vld [vmem:[%s9351_s3 + $0x20] sm:$0xff]   ;;  %v7407_v58 = vld [vmem:[%s9351_s3 + $0x18] sm:$0xff]   ;;  %467 = vst [vmem:[#allocation2 + $0x28] sm:$0x1] %v466_v1  ;;  %499 = vst [vmem:[#allocation2 + $0x2c] sm:$0x1] %v498_v2  ;;  %p7670_p12 = pnand %p7669_p10, %p7852_p5 }
  0x4b   : > { %6842 = vmatpush3.bf16.msra.mxu1 %v7395_v42  ;;  %6895 = vmatprep.subr.bf16.mxu0 %v7396_v43  ;;  %v8037_v62 = vld [vmem:[%s9350_s2] ss:$0 sm:$0xff]  ;;  %v7409_v47 = vld [vmem:[%s9351_s3 + $0x50] sm:$0xff]   ;;  %v7413_v0 = vld [vmem:[%s9351_s3 + $0x48] sm:$0xff]   ;;  %vm2321_vm5 = vsmask.f32 7440 }
  0x4c   : > { %6843 = vmatprep.subr.bf16.mxu1 %v7397_v45  ;;  %v7410_v48 = vld [vmem:[%s9351_s3 + $0x90] sm:$0xff]   ;;  %v7414_v1 = vld [vmem:[%s9351_s3 + $0x88] sm:$0xff]   ;;  %v7563_v23 = vld [vmem:[#allocation8 + $0x8] sm:$0xff]   ;;  %p7671_p8 = pneg %p7670_p12  ;;  %s7672_s20 = sshll.u32 %s7748_s18, 4  ;;  %s7673_s20 = int_to_ptr.vmem [resolvable:$false] %s7672_s20 }
  0x4d   : > { %v7411_v49 = vld [vmem:[%s9351_s3 + $0x10] sm:$0xff]   ;;  %s7674_s25 = scalar_lea.vmem %s7673_s20, 32  ;;  %p7675_p11 = scmp.lt.s32.totalorder %s6157_s19, %s7673_s20 }
  0x4e   : > { %6896 = vmatpush3.bf16.msra.mxu0 %v7398_v46  ;;  %p7676_p0 = scmp.lt.s32.totalorder %s7674_s25, %s7668_s17 }
  0x4f   : > { %7216 = vmatmul.mubr.msk.bf16.gmra.mxu0 %vm710_vm2, %v7377_v10  ;;  %6844 = vmatpush3.bf16.msra.mxu1 %v7399_v50 }
  0x50   : > { %7219 = vmatprep.mubr.msk.bf16.mxu0 %vm710_vm2, %v7378_v11  ;;  %6897 = vmatprep.subr.bf16.mxu0 %v7400_v51  ;;  %p7677_p1 = por %p7676_p0, %p7675_p11 }
  0x51   : > { %6845 = vmatprep.subr.bf16.mxu1 %v7401_v52 }
  0x52   : > { %6898 = vmatpush3.bf16.msra.mxu0 %v7402_v53  ;;  %p7678_p3 = pnand %p7677_p1, %p7671_p8 }
  0x53   : > { %6846 = vmatpush3.bf16.msra.mxu1 %v7403_v54  ;;  %6899 = vmatprep.subr.bf16.mxu0 %v7404_v55 }
  0x54   : > { %6847 = vmatprep.subr.bf16.mxu1 %v7405_v56 }
  0x56   : > { %6900 = vmatpush3.bf16.msra.mxu0 %v7406_v57 }
  0x57   : > { %7220 = vmatmul.mubr.msk.bf16.gmra.mxu0 %vm710_vm2, %v7379_v12  ;;  %6848 = vmatpush3.bf16.msra.mxu1 %v7407_v58  ;;  %v8048_v12 = vsub.s32 %v994_v5, %v8044_v6  ;;  %v7412_v58 = vld [vmem:[%s9351_s3 + $0xc8] sm:$0xff]  }
  0x58   : > { %7223 = vmatprep.mubr.msk.bf16.mxu0 %vm710_vm2, %v7380_v13  ;;  %6901 = vmatprep.subr.bf16.mxu0 %v7408_v38 }
  0x59   : > { %6849 = vmatprep.subr.bf16.mxu1 %v7409_v47 }
  0x5a   : > { %6902 = vmatpush3.bf16.msra.mxu0 %v7410_v48 }
  0x5b   : > { %6850 = vmatpush3.bf16.msra.mxu1 %v7411_v49  ;;  %6903 = vmatprep.subr.bf16.mxu0 %v7412_v58 }
  0x5c   : > { %6851 = vmatprep.subr.bf16.mxu1 %v7413_v0 }
  0x5e   : > { %6904 = vmatpush3.bf16.msra.mxu0 %v7414_v1 }
  0x5f   : > { %7224 = vmatmul.mubr.msk.bf16.gmra.mxu0 %vm710_vm2, %v7381_v14 }
  0x60   : > { %7227 = vmatprep.mubr.msk.bf16.mxu0 %vm710_vm2, %v7382_v15 }
  0x67   : > { %7228 = vmatmul.mubr.msk.bf16.gmra.mxu0 %vm710_vm2, %v7383_v16 }
  0x68   : > { %7231 = vmatprep.mubr.msk.bf16.mxu0 %vm710_vm2, %v7384_v17 }
  0x6f   : > { %7232 = vmatmul.mubr.msk.bf16.gmra.mxu0 %vm710_vm2, %v7385_v18 }
  0x70   : > { %7235 = vmatprep.mubr.msk.bf16.mxu0 %vm710_vm2, %v7386_v19 }
  0x77   : > { %7236 = vmatmul.mubr.msk.bf16.gmra.mxu0 %vm710_vm2, %v7387_v20  ;;  %vm2270_vm2 = vcmask 1046532  }
  0x78   : > { %vm8398_vm0 = vmor %vm2269_vm1, %vm2270_vm2 }
  0x79   : > { %vm8423_vm2 = vmor %vm2320_vm4, %vm2321_vm5 }
  0xff   : > { %v7209_v3 = vpop.f32.mrf.mxu0 }
 0x100   : > { %v809_v4 = vadd.f32 %v7209_v3, %v8037_v62 }
 0x101   : > { %v800_v7 = vpop.f32.mrf.mxu0 }
 0x102   : > { %v801_v8 = vadd.f32 %v8037_v62, %v800_v7  ;;  %v929_v10 = vmax.f32 %v809_v4, 0.0  ;;  %v7415_v7 = vld [vmem:[%s9351_s3 + $0x8] sm:$0xff]  }
 0x103   : > { %v7210_v9 = vpop.f32.mrf.mxu0  ;;  %6852 = vmatpush3.bf16.msra.mxu1 %v7415_v7 }
 0x104   : > { %v927_v11 = vmax.f32 %v801_v8, 0.0  ;;  %v812_v13 = vadd.f32 %v7210_v9, %v8037_v62 }
 0x105   : > { %v803_v14 = vpop.f32.mrf.mxu0 }
 0x106   : > { %v959_v15 = vmax.f32 %v927_v11, %v929_v10  ;;  %v804_v16 = vadd.f32 %v8037_v62, %v803_v14  ;;  %v930_v17 = vmax.f32 %v812_v13, 0.0 }
 0x107   : > { %v7213_v18 = vpop.f32.mrf.mxu0 }
 0x108   : > { %v991_v19 = vcombine.high %v959_v15, %v959_v15  ;;  %v998_v20 = vrot.slane %v959_v15, %v8048_v12  ;;  %v928_v22 = vmax.f32 %v804_v16, 0.0  ;;  %v8054_v24 = vadd.f32 %v7213_v18, %v8037_v62 }
 0x109   : > { %v816_v25 = vpop.f32.mrf.mxu0 }
 0x10a   : > { %v1005_v26 = vrot.slane %v991_v19, %v8048_v12  ;;  %v1006_v27 = vcombine.high %v998_v20, %v998_v20  ;;  %v1328_v28 = vsel %vm1327_vm8, %v998_v20, -inf  ;;  %v960_v29 = vmax.f32 %v928_v22, %v930_v17 }
 0x10b   : > { %v1329_v30 = vrot.slane %v1328_v28, 4  ;;  %v933_v31 = vmax.f32 %v8054_v24, 0.0  ;;  %v8060_v32 = vadd.f32 %v8037_v62, %v816_v25  ;;  %v7214_v33 = vpop.f32.mrf.mxu0 }
 0x10c   : > { %v1007_v34 = vcombine.high %v1005_v26, %v1005_v26  ;;  %v1335_v35 = vsel %vm1327_vm8, %v1006_v27, -inf  ;;  %v1342_v36 = vsel %vm1327_vm8, %v1005_v26, -inf  ;;  %v1008_v37 = vcombine.high %v960_v29, %v960_v29 }
 0x10d   : > { %v1330_v39 = vmax.f32 %v1328_v28, %v1329_v30  ;;  %v1336_v40 = vrot.slane %v1335_v35, 4  ;;  %v1343_v41 = vrot.slane %v1342_v36, 4  ;;  %v1015_v42 = vrot.slane %v960_v29, %v8048_v12 }
 0x10e   : > { %v1349_v43 = vsel %vm1327_vm8, %v1007_v34, -inf  ;;  %v1022_v44 = vrot.slane %v1008_v37, %v8048_v12  ;;  %v931_v45 = vmax.f32 %v8060_v32, 0.0  ;;  %v8072_v46 = vadd.f32 %v7214_v33, %v8037_v62  ;;  %v8099_v34 = vpop.f32.mrf.mxu0 }
 0x10f   : > { %v1331_v50 = vrot.slane %v1330_v39, 2  ;;  %v1337_v51 = vmax.f32 %v1335_v35, %v1336_v40  ;;  %v1344_v52 = vmax.f32 %v1342_v36, %v1343_v41  ;;  %v1350_v53 = vrot.slane %v1349_v43, 4 }
 0x110   : > { %v1023_v54 = vcombine.high %v1015_v42, %v1015_v42  ;;  %v1024_v55 = vcombine.high %v1022_v44, %v1022_v44  ;;  %v1356_v56 = vsel %vm1327_vm8, %v1015_v42, -inf  ;;  %v1370_v57 = vsel %vm1327_vm8, %v1022_v44, -inf }
 0x111   : > { %v1332_v59 = vmax.f32 %v1330_v39, %v1331_v50  ;;  %v1338_v60 = vrot.slane %v1337_v51, 2  ;;  %v1345_v61 = vrot.slane %v1344_v52, 2  ;;  %v1351_v63 = vmax.f32 %v1349_v43, %v1350_v53  ;;  %v7217_v53 = vpop.f32.mrf.mxu0 }
 0x112   : > { %v1357_v2 = vrot.slane %v1356_v56, 4  ;;  %v1363_v3 = vsel %vm1327_vm8, %v1023_v54, -inf  ;;  %v1371_v4 = vrot.slane %v1370_v57, 4  ;;  %v1377_v5 = vsel %vm1327_vm8, %v1024_v55, -inf }
 0x113   : > { %v1333_v8 = vrot.slane %v1332_v59, 1  ;;  %v1339_v9 = vmax.f32 %v1337_v51, %v1338_v60  ;;  %v1346_v10 = vmax.f32 %v1344_v52, %v1345_v61  ;;  %v1352_v11 = vrot.slane %v1351_v63, 2 }
 0x114   : > { %v1358_v13 = vmax.f32 %v1356_v56, %v1357_v2  ;;  %v1364_v14 = vrot.slane %v1363_v3, 4  ;;  %v1372_v15 = vmax.f32 %v1370_v57, %v1371_v4  ;;  %v1378_v16 = vrot.slane %v1377_v5, 4  ;;  %v832_v4 = vpop.f32.mrf.mxu0 }
 0x115   : > { %v1334_v17 = vmax.f32 %v1332_v59, %v1333_v8  ;;  %v1340_v18 = vrot.slane %v1339_v9, 1  ;;  %v1347_v19 = vrot.slane %v1346_v10, 1  ;;  %v1353_v20 = vmax.f32 %v1351_v63, %v1352_v11 }
 0x116   : > { %v1359_v22 = vrot.slane %v1358_v13, 2  ;;  %v1365_v25 = vmax.f32 %v1363_v3, %v1364_v14  ;;  %v1373_v26 = vrot.slane %v1372_v15, 2  ;;  %v1379_v27 = vmax.f32 %v1377_v5, %v1378_v16 }
 0x117   : > { %v1341_v28 = vmax.f32 %v1339_v9, %v1340_v18  ;;  %v1348_v29 = vmax.f32 %v1346_v10, %v1347_v19  ;;  %v1354_v30 = vrot.slane %v1353_v20, 1  ;;  %v6734_v33 = vpack.c.bf16 %v1334_v17, %v1334_v17 }
 0x118   : > { %v1360_v35 = vmax.f32 %v1358_v13, %v1359_v22  ;;  %v1366_v36 = vrot.slane %v1365_v25, 2  ;;  %v1374_v37 = vmax.f32 %v1372_v15, %v1373_v26  ;;  %v1380_v38 = vrot.slane %v1379_v27, 2  ;;  %v7218_v26 = vpop.f32.mrf.mxu0 }
 0x119   : > { %v1355_v39 = vmax.f32 %v1353_v20, %v1354_v30  ;;  %v6735_v40 = vpack.c.bf16 %v1341_v28, %v1341_v28  ;;  %v6736_v41 = vpack.c.bf16 %v1348_v29, %v1348_v29  ;;  %v2032_v42 = vunpack.c.l.b16 %v6734_v33 }
 0x11a   : > { %v1361_v43 = vrot.slane %v1360_v35, 1  ;;  %v1367_v44 = vmax.f32 %v1365_v25, %v1366_v36  ;;  %v1375_v47 = vrot.slane %v1374_v37, 1  ;;  %v1381_v48 = vmax.f32 %v1379_v27, %v1380_v38 }
 0x11b   : > { %v6737_v49 = vpack.c.bf16 %v1355_v39, %v1355_v39  ;;  %v2033_v50 = vunpack.c.l.b16 %v6735_v40  ;;  %v2034_v51 = vunpack.c.l.b16 %v6736_v41  ;;  %v961_v52 = vmax.f32 %v931_v45, %v933_v31  ;;  %v2188_v31 = vld [vmem:[#allocation2 + $0xc] sm:$0x1]  ;;  %v7417_v40 = vld [vmem:[%s9351_s3 + $0x40] sm:$0xff]  }
 0x11c   : > { %v1362_v54 = vmax.f32 %v1360_v35, %v1361_v43  ;;  %v1368_v55 = vrot.slane %v1367_v44, 1  ;;  %v1376_v56 = vmax.f32 %v1374_v37, %v1375_v47  ;;  %v1382_v57 = vrot.slane %v1381_v48, 1  ;;  %v7416_v35 = vld [vmem:[%s9351_s3 + $0xc0] sm:$0xff]   ;;  %v2185_v37 = vld [vmem:[#allocation2 + $0x8] sm:$0xf]  ;;  %6853 = vmatprep.subr.bf16.mxu1 %v7417_v40 }
 0x11d   : > { %v2035_v58 = vunpack.c.l.b16 %v6737_v49  ;;  %v2097_v59 = vsel %vm533_vm9, %v2033_v50, %v2032_v42  ;;  %v1025_v60 = vcombine.high %v961_v52, %v961_v52  ;;  %v1032_v61 = vrot.slane %v961_v52, %v8048_v12  ;;  %v7418_v41 = vld [vmem:[%s9351_s3 + $0x80] sm:$0xff]   ;;  %6905 = vmatprep.subr.bf16.mxu0 %v7416_v35  ;;  %v835_v52 = vpop.f32.mrf.mxu0 }
 0x11e   : > { %v2099_v63 = vsel %vm2098_vm10, %v2034_v51, %v2097_v59  ;;  %v1369_v0 = vmax.f32 %v1367_v44, %v1368_v55  ;;  %v1383_v1 = vmax.f32 %v1381_v48, %v1382_v57  ;;  %v6738_v2 = vpack.c.bf16 %v1362_v54, %v1362_v54  ;;  %v7419_v48 = vld [vmem:[%s9351_s3] sm:$0xff]   ;;  %6906 = vmatpush3.bf16.msra.mxu0 %v7418_v41 }
 0x11f   : > { %v6740_v24 = vpack.c.bf16 %v1376_v56, %v1376_v56  ;;  %v2101_v32 = vsel %vm2100_vm11, %v2035_v58, %v2099_v63  ;;  %v1039_v45 = vrot.slane %v1025_v60, %v8048_v12  ;;  %v1040_v3 = vcombine.high %v1032_v61, %v1032_v61  ;;  %6854 = vmatpush3.bf16.msra.mxu1 %v7419_v48 }
 0x120   : > { %v6739_v5 = vpack.c.bf16 %v1369_v0, %v1369_v0  ;;  %v2036_v7 = vunpack.c.l.b16 %v6738_v2  ;;  %v6798_v8 = vpack.c.bf16 %v1383_v1, %v1383_v1  ;;  %v1384_v9 = vsel %vm1327_vm8, %v1032_v61, -inf }
 0x121   : > { %v2038_v10 = vunpack.c.l.b16 %v6740_v24  ;;  %v1041_v11 = vcombine.high %v1039_v45, %v1039_v45  ;;  %v1385_v13 = vrot.slane %v1384_v9, 4  ;;  %v1391_v14 = vsel %vm1327_vm8, %v1040_v3, -inf }
 0x122   : > { %v2037_v15 = vunpack.c.l.b16 %v6739_v5  ;;  %v2103_v16 = vsel %vm2102_vm12, %v2036_v7, %v2101_v32  ;;  %v2189_v17 = vsel %vm7954_vm7, %v6798_v8, %v2188_v31  ;;  %v1392_v18 = vrot.slane %v1391_v14, 4 }
 0x123   : > { %2190 = vst [vmem:[#allocation2 + $0xc] sm:$0x1] %v2189_v17  ;;  %v1386_v19 = vmax.f32 %v1384_v9, %v1385_v13  ;;  %v1398_v20 = vsel %vm1327_vm8, %v1039_v45, -inf  ;;  %v1405_v22 = vsel %vm1327_vm8, %v1041_v11, -inf  ;;  %v934_v25 = vmax.f32 %v8072_v46, 0.0 }
 0x124   : > { %v2105_v28 = vsel %vm2104_vm13, %v2037_v15, %v2103_v16  ;;  %v1393_v29 = vmax.f32 %v1391_v14, %v1392_v18  ;;  %v1399_v30 = vrot.slane %v1398_v20, 4  ;;  %v1406_v33 = vrot.slane %v1405_v22, 4 }
 0x125   : > { %v2107_v36 = vsel %vm2106_vm14, %v2038_v10, %v2105_v28  ;;  %v1387_v46 = vrot.slane %v1386_v19, 2  ;;  %v820_v38 = vadd.f32 %v8037_v62, %v8099_v34  ;;  %v841_v39 = vadd.f32 %v7217_v53, %v8037_v62 }
 0x126   : > { %v2150_v42 = vpack.c.b16 %v2107_v36, %v2107_v36  ;;  %v1394_v43 = vrot.slane %v1393_v29, 2  ;;  %v1400_v44 = vmax.f32 %v1398_v20, %v1399_v30  ;;  %v1407_v47 = vmax.f32 %v1405_v22, %v1406_v33 }
 0x127   : > { %v1388_v34 = vmax.f32 %v1386_v19, %v1387_v46  ;;  %v932_v49 = vmax.f32 %v820_v38, 0.0  ;;  %v937_v50 = vmax.f32 %v841_v39, 0.0  ;;  %v833_v51 = vadd.f32 %v8037_v62, %v832_v4 }
 0x128   : > { %v2186_v53 = vsel %vm8120_vm15, %v2150_v42, %v2185_v37  ;;  %v1395_v54 = vmax.f32 %v1393_v29, %v1394_v43  ;;  %v1401_v55 = vrot.slane %v1400_v44, 2  ;;  %v1408_v56 = vrot.slane %v1407_v47, 2 }
 0x129   : > { %2187 = vst [vmem:[#allocation2 + $0x8] sm:$0xf] %v2186_v53  ;;  %v1389_v57 = vrot.slane %v1388_v34, 1  ;;  %v962_v58 = vmax.f32 %v932_v49, %v934_v25  ;;  %v935_v59 = vmax.f32 %v833_v51, 0.0  ;;  %v8145_v60 = vadd.f32 %v7218_v26, %v8037_v62 }
 0x12a   : > { %v1396_v61 = vrot.slane %v1395_v54, 1  ;;  %v1402_v63 = vmax.f32 %v1400_v44, %v1401_v55  ;;  %v1409_v0 = vmax.f32 %v1407_v47, %v1408_v56  ;;  %v8148_v1 = vadd.f32 %v8037_v62, %v835_v52 }
 0x12b   : > { %v1390_v2 = vmax.f32 %v1388_v34, %v1389_v57  ;;  %v1042_v24 = vcombine.high %v962_v58, %v962_v58  ;;  %v1049_v32 = vrot.slane %v962_v58, %v8048_v12  ;;  %v963_v31 = vmax.f32 %v935_v59, %v937_v50  ;;  %v7221_v59 = vpop.f32.mrf.mxu0 }
 0x12c   : > { %v1397_v45 = vmax.f32 %v1395_v54, %v1396_v61  ;;  %v1403_v3 = vrot.slane %v1402_v63, 1  ;;  %v1410_v4 = vrot.slane %v1409_v0, 1  ;;  %v938_v5 = vmax.f32 %v8145_v60, 0.0 }
 0x12d   : > { %v6742_v7 = vpack.c.bf16 %v1390_v2, %v1390_v2  ;;  %v1056_v8 = vrot.slane %v1042_v24, %v8048_v12  ;;  %v1057_v9 = vcombine.high %v1049_v32, %v1049_v32  ;;  %v1412_v10 = vsel %vm1327_vm8, %v1049_v32, -inf }
 0x12e   : > { %v1404_v11 = vmax.f32 %v1402_v63, %v1403_v3  ;;  %v1411_v13 = vmax.f32 %v1409_v0, %v1410_v4  ;;  %v6743_v14 = vpack.c.bf16 %v1397_v45, %v1397_v45  ;;  %v1413_v15 = vrot.slane %v1412_v10, 4 }
 0x12f   : > { %v2040_v16 = vunpack.c.l.b16 %v6742_v7  ;;  %v1058_v17 = vcombine.high %v1056_v8, %v1056_v8  ;;  %v1419_v18 = vsel %vm1327_vm8, %v1057_v9, -inf  ;;  %v1426_v19 = vsel %vm1327_vm8, %v1056_v8, -inf }
 0x130   : > { %v6744_v20 = vpack.c.bf16 %v1404_v11, %v1404_v11  ;;  %v6745_v22 = vpack.c.bf16 %v1411_v13, %v1411_v13  ;;  %v2041_v25 = vunpack.c.l.b16 %v6743_v14  ;;  %v1414_v26 = vmax.f32 %v1412_v10, %v1413_v15  ;;  %v8167_v13 = vpop.f32.mrf.mxu0 }
 0x131   : > { %v1420_v28 = vrot.slane %v1419_v18, 4  ;;  %v1427_v29 = vrot.slane %v1426_v19, 4  ;;  %v1433_v30 = vsel %vm1327_vm8, %v1058_v17, -inf  ;;  %v1059_v33 = vcombine.high %v963_v31, %v963_v31 }
 0x132   : > { %v2042_v35 = vunpack.c.l.b16 %v6744_v20  ;;  %v2043_v36 = vunpack.c.l.b16 %v6745_v22  ;;  %v2108_v37 = vsel %vm533_vm9, %v2041_v25, %v2040_v16  ;;  %v1415_v46 = vrot.slane %v1414_v26, 2 }
 0x133   : > { %v1421_v38 = vmax.f32 %v1419_v18, %v1420_v28  ;;  %v1428_v39 = vmax.f32 %v1426_v19, %v1427_v29  ;;  %v1434_v40 = vrot.slane %v1433_v30, 4  ;;  %v1066_v41 = vrot.slane %v963_v31, %v8048_v12 }
 0x134   : > { %v2109_v42 = vsel %vm2098_vm10, %v2042_v35, %v2108_v37  ;;  %v1416_v43 = vmax.f32 %v1414_v26, %v1415_v46  ;;  %v1073_v44 = vrot.slane %v1059_v33, %v8048_v12  ;;  %v936_v47 = vmax.f32 %v8148_v1, 0.0  ;;  %v2194_v26 = vld [vmem:[#allocation2 + $0x14] sm:$0x1]  ;;  %v7222_v46 = vpop.f32.mrf.mxu0 }
 0x135   : > { %v1422_v48 = vrot.slane %v1421_v38, 2  ;;  %v1429_v34 = vrot.slane %v1428_v39, 2  ;;  %v1435_v49 = vmax.f32 %v1433_v30, %v1434_v40  ;;  %v2110_v50 = vsel %vm2100_vm11, %v2043_v36, %v2109_v42 }
 0x136   : > { %v1417_v51 = vrot.slane %v1416_v43, 1  ;;  %v1074_v52 = vcombine.high %v1066_v41, %v1066_v41  ;;  %v1075_v53 = vcombine.high %v1073_v44, %v1073_v44  ;;  %v1440_v54 = vsel %vm1327_vm8, %v1066_v41, -inf }
 0x137   : > { %v1423_v55 = vmax.f32 %v1421_v38, %v1422_v48  ;;  %v1430_v56 = vmax.f32 %v1428_v39, %v1429_v34  ;;  %v1436_v57 = vrot.slane %v1435_v49, 2  ;;  %v1441_v58 = vrot.slane %v1440_v54, 4 }
 0x138   : > { %v1418_v61 = vmax.f32 %v1416_v43, %v1417_v51  ;;  %v1447_v63 = vsel %vm1327_vm8, %v1074_v52, -inf  ;;  %v1454_v0 = vsel %vm1327_vm8, %v1073_v44, -inf  ;;  %v1461_v1 = vsel %vm1327_vm8, %v1075_v53, -inf }
 0x139   : > { %v1424_v2 = vrot.slane %v1423_v55, 1  ;;  %v1431_v24 = vrot.slane %v1430_v56, 1  ;;  %v1437_v32 = vmax.f32 %v1435_v49, %v1436_v57  ;;  %v1442_v31 = vmax.f32 %v1440_v54, %v1441_v58  ;;  %v2191_v49 = vld [vmem:[#allocation2 + $0x10] sm:$0xf] }
 0x13a   : > { %v6746_v45 = vpack.c.bf16 %v1418_v61, %v1418_v61  ;;  %v1448_v3 = vrot.slane %v1447_v63, 4  ;;  %v1455_v4 = vrot.slane %v1454_v0, 4  ;;  %v1462_v7 = vrot.slane %v1461_v1, 4 }
 0x13b   : > { %v1425_v8 = vmax.f32 %v1423_v55, %v1424_v2  ;;  %v1432_v9 = vmax.f32 %v1430_v56, %v1431_v24  ;;  %v1438_v10 = vrot.slane %v1437_v32, 1  ;;  %v1443_v11 = vrot.slane %v1442_v31, 2 }
 0x13c   : > { %v2044_v14 = vunpack.c.l.b16 %v6746_v45  ;;  %v1449_v15 = vmax.f32 %v1447_v63, %v1448_v3  ;;  %v1456_v16 = vmax.f32 %v1454_v0, %v1455_v4  ;;  %v1463_v17 = vmax.f32 %v1461_v1, %v1462_v7 }
 0x13d   : > { %v1439_v18 = vmax.f32 %v1437_v32, %v1438_v10  ;;  %v6747_v19 = vpack.c.bf16 %v1425_v8, %v1425_v8  ;;  %v6748_v20 = vpack.c.bf16 %v1432_v9, %v1432_v9  ;;  %v1444_v22 = vmax.f32 %v1442_v31, %v1443_v11 }
 0x13e   : > { %v2111_v25 = vsel %vm2102_vm12, %v2044_v14, %v2110_v50  ;;  %v1450_v28 = vrot.slane %v1449_v15, 2  ;;  %v1457_v29 = vrot.slane %v1456_v16, 2  ;;  %v1464_v30 = vrot.slane %v1463_v17, 2 }
 0x13f   : > { %v2045_v33 = vunpack.c.l.b16 %v6747_v19  ;;  %v2046_v35 = vunpack.c.l.b16 %v6748_v20  ;;  %v6799_v36 = vpack.c.bf16 %v1439_v18, %v1439_v18  ;;  %v1445_v37 = vrot.slane %v1444_v22, 1 }
 0x140   : > { %v1451_v38 = vmax.f32 %v1449_v15, %v1450_v28  ;;  %v1458_v39 = vmax.f32 %v1456_v16, %v1457_v29  ;;  %v1465_v40 = vmax.f32 %v1463_v17, %v1464_v30  ;;  %v964_v41 = vmax.f32 %v936_v47, %v938_v5  ;;  %v851_v5 = vpop.f32.mrf.mxu0 }
 0x141   : > { %v2112_v42 = vsel %vm2104_vm13, %v2045_v33, %v2111_v25  ;;  %v2195_v43 = vsel %vm7954_vm7, %v6799_v36, %v2194_v26  ;;  %v1446_v44 = vmax.f32 %v1444_v22, %v1445_v37  ;;  %v857_v48 = vadd.f32 %v7221_v59, %v8037_v62 }
 0x142   : > { %v2113_v34 = vsel %vm2106_vm14, %v2046_v35, %v2112_v42  ;;  %2196 = vst [vmem:[#allocation2 + $0x14] sm:$0x1] %v2195_v43  ;;  %v1452_v50 = vrot.slane %v1451_v38, 1  ;;  %v1459_v51 = vrot.slane %v1458_v39, 1  ;;  %v1466_v52 = vrot.slane %v1465_v40, 1  ;;  %v7225_v7 = vpop.f32.mrf.mxu0 }
 0x143   : > { %v2152_v53 = vpack.c.b16 %v2113_v34, %v2113_v34  ;;  %v6750_v54 = vpack.c.bf16 %v1446_v44, %v1446_v44  ;;  %v1076_v55 = vcombine.high %v964_v41, %v964_v41  ;;  %v1083_v60 = vrot.slane %v964_v41, %v8048_v12 }
 0x144   : > { %v1453_v47 = vmax.f32 %v1451_v38, %v1452_v50  ;;  %v1460_v56 = vmax.f32 %v1458_v39, %v1459_v51  ;;  %v1467_v57 = vmax.f32 %v1465_v40, %v1466_v52  ;;  %v941_v58 = vmax.f32 %v857_v48, 0.0  ;;  %v864_v30 = vpop.f32.mrf.mxu0 }
 0x145   : > { %v2192_v59 = vsel %vm8120_vm15, %v2152_v53, %v2191_v49  ;;  %v2048_v61 = vunpack.c.l.b16 %v6750_v54  ;;  %v1090_v63 = vrot.slane %v1076_v55, %v8048_v12  ;;  %v1091_v0 = vcombine.high %v1083_v60, %v1083_v60 }
 0x146   : > { %2193 = vst [vmem:[#allocation2 + $0x10] sm:$0xf] %v2192_v59  ;;  %v6751_v1 = vpack.c.bf16 %v1453_v47, %v1453_v47  ;;  %v6752_v2 = vpack.c.bf16 %v1460_v56, %v1460_v56  ;;  %v6753_v24 = vpack.c.bf16 %v1467_v57, %v1467_v57  ;;  %v1468_v32 = vsel %vm1327_vm8, %v1083_v60, -inf }
 0x147   : > { %v1092_v31 = vcombine.high %v1090_v63, %v1090_v63  ;;  %v1469_v45 = vrot.slane %v1468_v32, 4  ;;  %v1475_v3 = vsel %vm1327_vm8, %v1091_v0, -inf  ;;  %v1482_v4 = vsel %vm1327_vm8, %v1090_v63, -inf }
 0x148   : > { %v2049_v8 = vunpack.c.l.b16 %v6751_v1  ;;  %v2050_v9 = vunpack.c.l.b16 %v6752_v2  ;;  %v2051_v10 = vunpack.c.l.b16 %v6753_v24  ;;  %v1476_v11 = vrot.slane %v1475_v3, 4 }
 0x149   : > { %v1470_v14 = vmax.f32 %v1468_v32, %v1469_v45  ;;  %v1483_v15 = vrot.slane %v1482_v4, 4  ;;  %v1489_v16 = vsel %vm1327_vm8, %v1092_v31, -inf  ;;  %v849_v17 = vadd.f32 %v8037_v62, %v8167_v13 }
 0x14a   : > { %v2114_v18 = vsel %vm533_vm9, %v2049_v8, %v2048_v61  ;;  %v1477_v19 = vmax.f32 %v1475_v3, %v1476_v11  ;;  %v1490_v20 = vrot.slane %v1489_v16, 4  ;;  %v860_v22 = vadd.f32 %v7222_v46, %v8037_v62  ;;  %v2200_v3 = vld [vmem:[#allocation2 + $0x1c] sm:$0x1] }
 0x14b   : > { %v2115_v25 = vsel %vm2098_vm10, %v2050_v9, %v2114_v18  ;;  %v1471_v26 = vrot.slane %v1470_v14, 2  ;;  %v1484_v28 = vmax.f32 %v1482_v4, %v1483_v15  ;;  %v939_v29 = vmax.f32 %v849_v17, 0.0 }
 0x14c   : > { %v1478_v33 = vrot.slane %v1477_v19, 2  ;;  %v1491_v35 = vmax.f32 %v1489_v16, %v1490_v20  ;;  %v2116_v36 = vsel %vm2100_vm11, %v2051_v10, %v2115_v25  ;;  %v942_v37 = vmax.f32 %v860_v22, 0.0 }
 0x14d   : > { %v1472_v38 = vmax.f32 %v1470_v14, %v1471_v26  ;;  %v1485_v39 = vrot.slane %v1484_v28, 2  ;;  %v965_v13 = vmax.f32 %v939_v29, %v941_v58  ;;  %v852_v40 = vadd.f32 %v8037_v62, %v851_v5  ;;  %v2197_v26 = vld [vmem:[#allocation2 + $0x18] sm:$0xf] }
 0x14e   : > { %v1479_v41 = vmax.f32 %v1477_v19, %v1478_v33  ;;  %v1492_v42 = vrot.slane %v1491_v35, 2  ;;  %v8193_v46 = vadd.f32 %v7225_v7, %v8037_v62  ;;  %v8196_v43 = vadd.f32 %v8037_v62, %v864_v30 }
 0x14f   : > { %v1473_v44 = vrot.slane %v1472_v38, 1  ;;  %v1486_v48 = vmax.f32 %v1484_v28, %v1485_v39  ;;  %v1093_v34 = vcombine.high %v965_v13, %v965_v13  ;;  %v1100_v49 = vrot.slane %v965_v13, %v8048_v12 }
 0x150   : > { %v1480_v50 = vrot.slane %v1479_v41, 1  ;;  %v1493_v51 = vmax.f32 %v1491_v35, %v1492_v42  ;;  %v940_v52 = vmax.f32 %v852_v40, 0.0  ;;  %v945_v53 = vmax.f32 %v8193_v46, 0.0 }
 0x151   : > { %v1474_v54 = vmax.f32 %v1472_v38, %v1473_v44  ;;  %v1487_v55 = vrot.slane %v1486_v48, 1  ;;  %v1107_v60 = vrot.slane %v1093_v34, %v8048_v12  ;;  %v1108_v5 = vcombine.high %v1100_v49, %v1100_v49 }
 0x152   : > { %v1481_v47 = vmax.f32 %v1479_v41, %v1480_v50  ;;  %v1494_v56 = vrot.slane %v1493_v51, 1  ;;  %v1496_v57 = vsel %vm1327_vm8, %v1100_v49, -inf  ;;  %v966_v58 = vmax.f32 %v940_v52, %v942_v37 }
 0x153   : > { %v1488_v59 = vmax.f32 %v1486_v48, %v1487_v55  ;;  %v6754_v61 = vpack.c.bf16 %v1474_v54, %v1474_v54  ;;  %v1109_v63 = vcombine.high %v1107_v60, %v1107_v60  ;;  %v1497_v0 = vrot.slane %v1496_v57, 4 }
 0x154   : > { %v1495_v1 = vmax.f32 %v1493_v51, %v1494_v56  ;;  %v6755_v2 = vpack.c.bf16 %v1481_v47, %v1481_v47  ;;  %v1503_v24 = vsel %vm1327_vm8, %v1108_v5, -inf  ;;  %v1510_v32 = vsel %vm1327_vm8, %v1107_v60, -inf }
 0x155   : > { %v6756_v31 = vpack.c.bf16 %v1488_v59, %v1488_v59  ;;  %v2052_v45 = vunpack.c.l.b16 %v6754_v61  ;;  %v1498_v4 = vmax.f32 %v1496_v57, %v1497_v0  ;;  %v1504_v7 = vrot.slane %v1503_v24, 4 }
 0x156   : > { %v2053_v8 = vunpack.c.l.b16 %v6755_v2  ;;  %v6800_v9 = vpack.c.bf16 %v1495_v1, %v1495_v1  ;;  %v1511_v10 = vrot.slane %v1510_v32, 4  ;;  %v1517_v11 = vsel %vm1327_vm8, %v1109_v63, -inf }
 0x157   : > { %v2054_v14 = vunpack.c.l.b16 %v6756_v31  ;;  %v2117_v15 = vsel %vm2102_vm12, %v2052_v45, %v2116_v36  ;;  %v1499_v16 = vrot.slane %v1498_v4, 2  ;;  %v1505_v17 = vmax.f32 %v1503_v24, %v1504_v7 }
 0x158   : > { %v2118_v18 = vsel %vm2104_vm13, %v2053_v8, %v2117_v15  ;;  %v2201_v19 = vsel %vm7954_vm7, %v6800_v9, %v2200_v3  ;;  %v1512_v20 = vmax.f32 %v1510_v32, %v1511_v10  ;;  %v1518_v22 = vrot.slane %v1517_v11, 4  ;;  %v7226_v3 = vpop.f32.mrf.mxu0 }
 0x159   : > { %v2119_v25 = vsel %vm2106_vm14, %v2054_v14, %v2118_v18  ;;  %2202 = vst [vmem:[#allocation2 + $0x1c] sm:$0x1] %v2201_v19  ;;  %v1500_v28 = vmax.f32 %v1498_v4, %v1499_v16  ;;  %v1506_v29 = vrot.slane %v1505_v17, 2  ;;  %v1110_v30 = vcombine.high %v966_v58, %v966_v58 }
 0x15a   : > { %v2154_v33 = vpack.c.b16 %v2119_v25, %v2119_v25  ;;  %v1513_v35 = vrot.slane %v1512_v20, 2  ;;  %v1519_v37 = vmax.f32 %v1517_v11, %v1518_v22  ;;  %v1117_v36 = vrot.slane %v966_v58, %v8048_v12 }
 0x15b   : > { %v1501_v38 = vrot.slane %v1500_v28, 1  ;;  %v1507_v39 = vmax.f32 %v1505_v17, %v1506_v29  ;;  %v1124_v13 = vrot.slane %v1110_v30, %v8048_v12  ;;  %v943_v40 = vmax.f32 %v8196_v43, 0.0 }
 0x15c   : > { %v2198_v41 = vsel %vm8120_vm15, %v2154_v33, %v2197_v26  ;;  %v1514_v42 = vmax.f32 %v1512_v20, %v1513_v35  ;;  %v1520_v44 = vrot.slane %v1519_v37, 2  ;;  %v1125_v48 = vcombine.high %v1117_v36, %v1117_v36 }
 0x15d   : > { %2199 = vst [vmem:[#allocation2 + $0x18] sm:$0xf] %v2198_v41  ;;  %v1502_v34 = vmax.f32 %v1500_v28, %v1501_v38  ;;  %v1508_v49 = vrot.slane %v1507_v39, 1  ;;  %v1126_v50 = vcombine.high %v1124_v13, %v1124_v13  ;;  %v1524_v51 = vsel %vm1327_vm8, %v1117_v36, -inf  ;;  %v867_v28 = vpop.f32.mrf.mxu0 }
 0x15e   : > { %v1515_v52 = vrot.slane %v1514_v42, 1  ;;  %v1521_v54 = vmax.f32 %v1519_v37, %v1520_v44  ;;  %v1525_v55 = vrot.slane %v1524_v51, 4  ;;  %v1531_v60 = vsel %vm1327_vm8, %v1125_v48, -inf }
 0x15f   : > { %v1509_v5 = vmax.f32 %v1507_v39, %v1508_v49  ;;  %v6758_v47 = vpack.c.bf16 %v1502_v34, %v1502_v34  ;;  %v1532_v43 = vrot.slane %v1531_v60, 4  ;;  %v1538_v56 = vsel %vm1327_vm8, %v1124_v13, -inf  ;;  %v7229_v34 = vpop.f32.mrf.mxu0 }
 0x160   : > { %v1516_v57 = vmax.f32 %v1514_v42, %v1515_v52  ;;  %v1522_v58 = vrot.slane %v1521_v54, 1  ;;  %v1526_v59 = vmax.f32 %v1524_v51, %v1525_v55  ;;  %v1539_v61 = vrot.slane %v1538_v56, 4 }
 0x161   : > { %v6759_v63 = vpack.c.bf16 %v1509_v5, %v1509_v5  ;;  %v2056_v0 = vunpack.c.l.b16 %v6758_v47  ;;  %v1533_v1 = vmax.f32 %v1531_v60, %v1532_v43  ;;  %v1545_v2 = vsel %vm1327_vm8, %v1126_v50, -inf }
 0x162   : > { %v1523_v24 = vmax.f32 %v1521_v54, %v1522_v58  ;;  %v6760_v32 = vpack.c.bf16 %v1516_v57, %v1516_v57  ;;  %v1527_v31 = vrot.slane %v1526_v59, 2  ;;  %v1540_v45 = vmax.f32 %v1538_v56, %v1539_v61  ;;  %v7424_v54 = vld [vmem:[%s9351_s3 + $0x1f8] sm:$0xff]  }
 0x163   : > { %v2057_v4 = vunpack.c.l.b16 %v6759_v63  ;;  %v1534_v7 = vrot.slane %v1533_v1, 2  ;;  %v1546_v8 = vrot.slane %v1545_v2, 4  ;;  %v967_v9 = vmax.f32 %v943_v40, %v945_v53  ;;  %6971 = vmatprep.subr.bf16.mxu0 %v7424_v54  ;;  %v2206_v63 = vld [vmem:[#allocation2 + $0x24] sm:$0x1] }
 0x164   : > { %v6761_v10 = vpack.c.bf16 %v1523_v24, %v1523_v24  ;;  %v2058_v11 = vunpack.c.l.b16 %v6760_v32  ;;  %v1528_v14 = vmax.f32 %v1526_v59, %v1527_v31  ;;  %v1541_v15 = vrot.slane %v1540_v45, 2 }
 0x165   : > { %v2120_v16 = vsel %vm533_vm9, %v2057_v4, %v2056_v0  ;;  %v1535_v17 = vmax.f32 %v1533_v1, %v1534_v7  ;;  %v1547_v18 = vmax.f32 %v1545_v2, %v1546_v8  ;;  %v1127_v19 = vcombine.high %v967_v9, %v967_v9  ;;  %v880_v2 = vpop.f32.mrf.mxu0  ;;  %v2203_v4 = vld [vmem:[#allocation2 + $0x20] sm:$0xf] }
 0x166   : > { %v2059_v20 = vunpack.c.l.b16 %v6761_v10  ;;  %v2121_v22 = vsel %vm2098_vm10, %v2058_v11, %v2120_v16  ;;  %v1529_v25 = vrot.slane %v1528_v14, 1  ;;  %v1542_v26 = vmax.f32 %v1540_v45, %v1541_v15 }
 0x167   : > { %v1536_v29 = vrot.slane %v1535_v17, 1  ;;  %v1548_v30 = vrot.slane %v1547_v18, 2  ;;  %v1134_v46 = vrot.slane %v967_v9, %v8048_v12  ;;  %v1141_v53 = vrot.slane %v1127_v19, %v8048_v12 }
 0x168   : > { %v1530_v33 = vmax.f32 %v1528_v14, %v1529_v25  ;;  %v1543_v35 = vrot.slane %v1542_v26, 1  ;;  %v2122_v37 = vsel %vm2100_vm11, %v2059_v20, %v2121_v22  ;;  %v8227_v36 = vadd.f32 %v7226_v3, %v8037_v62  ;;  %v8235_v62 = vld [vmem:[%s9352_s4 + $0x38] sm:$0xff]   ;;  %v7230_v22 = vpop.f32.mrf.mxu0 }
 0x169   : > { %v1537_v38 = vmax.f32 %v1535_v17, %v1536_v29  ;;  %v1549_v39 = vmax.f32 %v1547_v18, %v1548_v30  ;;  %v1142_v13 = vcombine.high %v1134_v46, %v1134_v46  ;;  %v1143_v40 = vcombine.high %v1141_v53, %v1141_v53  ;;  %7239 = vmatprep.subr.bf16.mxu1 %v8235_v62  ;;  %v8251_v18 = vld [vmem:[%s9350_s2] ss:$0 sm:$0xff] }
 0x16a   : > { %v1544_v41 = vmax.f32 %v1542_v26, %v1543_v35  ;;  %v6762_v42 = vpack.c.bf16 %v1530_v33, %v1530_v33  ;;  %v1552_v44 = vsel %vm1327_vm8, %v1134_v46, -inf  ;;  %v1566_v48 = vsel %vm1327_vm8, %v1141_v53, -inf  ;;  %v468_v46 = vld [vmem:[#allocation2 + $0x30] sm:$0x1] }
 0x16b   : > { %v1550_v49 = vrot.slane %v1549_v39, 1  ;;  %v6763_v50 = vpack.c.bf16 %v1537_v38, %v1537_v38  ;;  %v1553_v51 = vrot.slane %v1552_v44, 4  ;;  %v1559_v52 = vsel %vm1327_vm8, %v1142_v13, -inf }
 0x16c   : > { %v6764_v55 = vpack.c.bf16 %v1544_v41, %v1544_v41  ;;  %v2060_v60 = vunpack.c.l.b16 %v6762_v42  ;;  %v1560_v5 = vrot.slane %v1559_v52, 4  ;;  %v1567_v47 = vrot.slane %v1566_v48, 4 }
 0x16d   : > { %v1551_v43 = vmax.f32 %v1549_v39, %v1550_v49  ;;  %v2061_v56 = vunpack.c.l.b16 %v6763_v50  ;;  %v1554_v57 = vmax.f32 %v1552_v44, %v1553_v51  ;;  %v1573_v58 = vsel %vm1327_vm8, %v1143_v40, -inf }
 0x16e   : > { %v2062_v59 = vunpack.c.l.b16 %v6764_v55  ;;  %v2123_v61 = vsel %vm2102_vm12, %v2060_v60, %v2122_v37  ;;  %v1561_v0 = vmax.f32 %v1559_v52, %v1560_v5  ;;  %v1568_v1 = vmax.f32 %v1566_v48, %v1567_v47 }
 0x16f   : > { %v2124_v24 = vsel %vm2104_vm13, %v2061_v56, %v2123_v61  ;;  %v6801_v32 = vpack.c.bf16 %v1551_v43, %v1551_v43  ;;  %v1555_v31 = vrot.slane %v1554_v57, 2  ;;  %v1574_v45 = vrot.slane %v1573_v58, 4 }
 0x170   : > { %v2125_v3 = vsel %vm2106_vm14, %v2062_v59, %v2124_v24  ;;  %v1562_v7 = vrot.slane %v1561_v0, 2  ;;  %v1569_v8 = vrot.slane %v1568_v1, 2  ;;  %v946_v9 = vmax.f32 %v8227_v36, 0.0 }
 0x171   : > { %v2156_v10 = vpack.c.b16 %v2125_v3, %v2125_v3  ;;  %v2207_v11 = vsel %vm7954_vm7, %v6801_v32, %v2206_v63  ;;  %v1556_v14 = vmax.f32 %v1554_v57, %v1555_v31  ;;  %v1575_v15 = vmax.f32 %v1573_v58, %v1574_v45  ;;  %v8271_v31 = vpop.f32.mrf.mxu0 }
 0x172   : > { %2208 = vst [vmem:[#allocation2 + $0x24] sm:$0x1] %v2207_v11  ;;  %v1563_v16 = vmax.f32 %v1561_v0, %v1562_v7  ;;  %v1570_v17 = vmax.f32 %v1568_v1, %v1569_v8  ;;  %v868_v19 = vadd.f32 %v8251_v18, %v867_v28  ;;  %v889_v20 = vadd.f32 %v8251_v18, %v7229_v34 }
 0x173   : > { %v2204_v25 = vsel %vm8120_vm15, %v2156_v10, %v2203_v4  ;;  %v1557_v26 = vrot.slane %v1556_v14, 1  ;;  %v1576_v29 = vrot.slane %v1575_v15, 2  ;;  %v881_v30 = vadd.f32 %v8251_v18, %v880_v2 }
 0x174   : > { %2205 = vst [vmem:[#allocation2 + $0x20] sm:$0xf] %v2204_v25  ;;  %v1564_v53 = vrot.slane %v1563_v16, 1  ;;  %v1571_v33 = vrot.slane %v1570_v17, 1  ;;  %v944_v35 = vmax.f32 %v868_v19, 0.0  ;;  %v949_v37 = vmax.f32 %v889_v20, 0.0 }
 0x175   : > { %v1558_v36 = vmax.f32 %v1556_v14, %v1557_v26  ;;  %v1577_v38 = vmax.f32 %v1575_v15, %v1576_v29  ;;  %v947_v39 = vmax.f32 %v881_v30, 0.0  ;;  %v8259_v28 = vadd.f32 %v8251_v18, %v7230_v22  ;;  %v8279_v26 = vpop.f32.mrf.mxu0 }
 0x176   : > { %v1565_v13 = vmax.f32 %v1563_v16, %v1564_v53  ;;  %v1572_v40 = vmax.f32 %v1570_v17, %v1571_v33  ;;  %v968_v41 = vmax.f32 %v944_v35, %v946_v9  ;;  %v469_v42 = vsel %vm7954_vm7, 0, %v468_v46 }
 0x177   : > { %v1578_v44 = vrot.slane %v1577_v38, 1  ;;  %v6766_v48 = vpack.c.bf16 %v1558_v36, %v1558_v36  ;;  %v969_v34 = vmax.f32 %v947_v39, %v949_v37  ;;  %v950_v49 = vmax.f32 %v8259_v28, 0.0  ;;  %470 = vst [vmem:[#allocation2 + $0x30] sm:$0x1] %v469_v42 }
 0x178   : > { %v6767_v50 = vpack.c.bf16 %v1565_v13, %v1565_v13  ;;  %v6768_v51 = vpack.c.bf16 %v1572_v40, %v1572_v40  ;;  %v1144_v52 = vcombine.high %v968_v41, %v968_v41  ;;  %v1151_v54 = vrot.slane %v968_v41, %v8048_v12 }
 0x179   : > { %v1579_v55 = vmax.f32 %v1577_v38, %v1578_v44  ;;  %v2064_v60 = vunpack.c.l.b16 %v6766_v48  ;;  %v1161_v5 = vcombine.high %v969_v34, %v969_v34  ;;  %v1168_v47 = vrot.slane %v969_v34, %v8048_v12  ;;  %v896_v34 = vpop.f32.mrf.mxu0 }
 0x17a   : > { %v2065_v43 = vunpack.c.l.b16 %v6767_v50  ;;  %v2066_v56 = vunpack.c.l.b16 %v6768_v51  ;;  %v1158_v57 = vrot.slane %v1144_v52, %v8048_v12  ;;  %v1159_v58 = vcombine.high %v1151_v54, %v1151_v54 }
 0x17b   : > { %v6769_v59 = vpack.c.bf16 %v1579_v55, %v1579_v55  ;;  %v1580_v61 = vsel %vm1327_vm8, %v1151_v54, -inf  ;;  %v1175_v63 = vrot.slane %v1161_v5, %v8048_v12  ;;  %v1176_v0 = vcombine.high %v1168_v47, %v1168_v47 }
 0x17c   : > { %v2126_v1 = vsel %vm533_vm9, %v2065_v43, %v2064_v60  ;;  %v1160_v2 = vcombine.high %v1158_v57, %v1158_v57  ;;  %v1581_v24 = vrot.slane %v1580_v61, 4  ;;  %v1587_v32 = vsel %vm1327_vm8, %v1159_v58, -inf }
 0x17d   : > { %v2067_v45 = vunpack.c.l.b16 %v6769_v59  ;;  %v2127_v3 = vsel %vm2098_vm10, %v2066_v56, %v2126_v1  ;;  %v1588_v4 = vrot.slane %v1587_v32, 4  ;;  %v1594_v7 = vsel %vm1327_vm8, %v1158_v57, -inf  ;;  %v7234_v1 = vpop.f32.mrf.mxu0 }
 0x17e   : > { %v1582_v8 = vmax.f32 %v1580_v61, %v1581_v24  ;;  %v1595_v9 = vrot.slane %v1594_v7, 4  ;;  %v1601_v10 = vsel %vm1327_vm8, %v1160_v2, -inf  ;;  %v1177_v11 = vcombine.high %v1175_v63, %v1175_v63 }
 0x17f   : > { %v1589_v14 = vmax.f32 %v1587_v32, %v1588_v4  ;;  %v1602_v15 = vrot.slane %v1601_v10, 4  ;;  %v2128_v16 = vsel %vm2100_vm11, %v2067_v45, %v2127_v3  ;;  %v1608_v17 = vsel %vm1327_vm8, %v1168_v47, -inf }
 0x180   : > { %v1583_v19 = vrot.slane %v1582_v8, 2  ;;  %v1596_v20 = vmax.f32 %v1594_v7, %v1595_v9  ;;  %v1609_v22 = vrot.slane %v1608_v17, 4  ;;  %v1615_v25 = vsel %vm1327_vm8, %v1176_v0, -inf  ;;  %v2212_v7 = vld [vmem:[#allocation2 + $0x2c] sm:$0x1] }
 0x181   : > { %v1590_v29 = vrot.slane %v1589_v14, 2  ;;  %v1603_v30 = vmax.f32 %v1601_v10, %v1602_v15  ;;  %v1616_v46 = vrot.slane %v1615_v25, 4  ;;  %v1622_v53 = vsel %vm1327_vm8, %v1175_v63, -inf }
 0x182   : > { %v1584_v33 = vmax.f32 %v1582_v8, %v1583_v19  ;;  %v1597_v35 = vrot.slane %v1596_v20, 2  ;;  %v1610_v37 = vmax.f32 %v1608_v17, %v1609_v22  ;;  %v1623_v36 = vrot.slane %v1622_v53, 4  ;;  %v500_v17 = vld [vmem:[#allocation2 + $0x34] sm:$0x1] }
 0x183   : > { %v1591_v38 = vmax.f32 %v1589_v14, %v1590_v29  ;;  %v1604_v39 = vrot.slane %v1603_v30, 2  ;;  %v1617_v13 = vmax.f32 %v1615_v25, %v1616_v46  ;;  %v1629_v40 = vsel %vm1327_vm8, %v1177_v11, -inf  ;;  %v899_v29 = vpop.f32.mrf.mxu0 }
 0x184   : > { %v1585_v41 = vrot.slane %v1584_v33, 1  ;;  %v1598_v42 = vmax.f32 %v1596_v20, %v1597_v35  ;;  %v1611_v44 = vrot.slane %v1610_v37, 2  ;;  %v1624_v48 = vmax.f32 %v1622_v53, %v1623_v36 }
 0x185   : > { %v1592_v50 = vrot.slane %v1591_v38, 1  ;;  %v1605_v51 = vmax.f32 %v1603_v30, %v1604_v39  ;;  %v1618_v52 = vrot.slane %v1617_v13, 2  ;;  %v1630_v54 = vrot.slane %v1629_v40, 4 }
 0x186   : > { %v1586_v55 = vmax.f32 %v1584_v33, %v1585_v41  ;;  %v1599_v60 = vrot.slane %v1598_v42, 1  ;;  %v1612_v5 = vmax.f32 %v1610_v37, %v1611_v44  ;;  %v1625_v47 = vrot.slane %v1624_v48, 2  ;;  %v2209_v37 = vld [vmem:[#allocation2 + $0x28] sm:$0xf] }
 0x187   : > { %v1593_v43 = vmax.f32 %v1591_v38, %v1592_v50  ;;  %v1606_v56 = vrot.slane %v1605_v51, 1  ;;  %v1619_v57 = vmax.f32 %v1617_v13, %v1618_v52  ;;  %v1631_v58 = vmax.f32 %v1629_v40, %v1630_v54  ;;  %v503_v52 = vld [vmem:[#allocation2 + $0x3c] sm:$0x1]  ;;  %v7237_v54 = vpop.f32.mrf.mxu0 }
 0x188   : > { %v1600_v59 = vmax.f32 %v1598_v42, %v1599_v60  ;;  %v6770_v61 = vpack.c.bf16 %v1586_v55, %v1586_v55  ;;  %v1613_v63 = vrot.slane %v1612_v5, 1  ;;  %v1626_v0 = vmax.f32 %v1624_v48, %v1625_v47 }
 0x189   : > { %v1607_v2 = vmax.f32 %v1605_v51, %v1606_v56  ;;  %v6771_v24 = vpack.c.bf16 %v1593_v43, %v1593_v43  ;;  %v1620_v32 = vrot.slane %v1619_v57, 1  ;;  %v1632_v45 = vrot.slane %v1631_v58, 2  ;;  %v471_v51 = vld [vmem:[#allocation2 + $0x38] sm:$0x1]  ;;  %v8302_v56 = vld [vmem:[#allocation2 + $0x10] sm:$0xf]  ;;  %v912_v28 = vpop.f32.mrf.mxu0 }
 0x18a   : > { %v6772_v3 = vpack.c.bf16 %v1600_v59, %v1600_v59  ;;  %v2068_v4 = vunpack.c.l.b16 %v6770_v61  ;;  %v1614_v8 = vmax.f32 %v1612_v5, %v1613_v63  ;;  %v1627_v9 = vrot.slane %v1626_v0, 1 }
 0x18b   : > { %v2069_v10 = vunpack.c.l.b16 %v6771_v24  ;;  %v6802_v11 = vpack.c.bf16 %v1607_v2, %v1607_v2  ;;  %v1621_v14 = vmax.f32 %v1619_v57, %v1620_v32  ;;  %v1633_v15 = vmax.f32 %v1631_v58, %v1632_v45  ;;  %v8317_v2 = vld [vmem:[#allocation2 + $0x8] sm:$0xf] }
 0x18c   : > { %v2070_v19 = vunpack.c.l.b16 %v6772_v3  ;;  %v2129_v20 = vsel %vm2102_vm12, %v2068_v4, %v2128_v16  ;;  %v1628_v22 = vmax.f32 %v1626_v0, %v1627_v9  ;;  %v6774_v25 = vpack.c.bf16 %v1614_v8, %v1614_v8 }
 0x18d   : > { %v2130_v30 = vsel %vm2104_vm13, %v2069_v10, %v2129_v20  ;;  %v2213_v46 = vsel %vm7954_vm7, %v6802_v11, %v2212_v7  ;;  %v1634_v53 = vrot.slane %v1633_v15, 1  ;;  %v6775_v33 = vpack.c.bf16 %v1621_v14, %v1621_v14 }
 0x18e   : > { %v2131_v35 = vsel %vm2106_vm14, %v2070_v19, %v2130_v30  ;;  %2214 = vst [vmem:[#allocation2 + $0x2c] sm:$0x1] %v2213_v46  ;;  %v6776_v36 = vpack.c.bf16 %v1628_v22, %v1628_v22  ;;  %v2072_v38 = vunpack.c.l.b16 %v6774_v25  ;;  %v501_v39 = vsel %vm7948_vm6, 0, %v500_v17 }
 0x18f   : > { %v2158_v16 = vpack.c.b16 %v2131_v35, %v2131_v35  ;;  %v1635_v13 = vmax.f32 %v1633_v15, %v1634_v53  ;;  %v2073_v40 = vunpack.c.l.b16 %v6775_v33  ;;  %502 = vst [vmem:[#allocation2 + $0x34] sm:$0x1] %v501_v39  ;;  %v884_v41 = vadd.f32 %v8251_v18, %v8271_v31 }
 0x190   : > { %v2074_v42 = vunpack.c.l.b16 %v6776_v36  ;;  %v905_v44 = vadd.f32 %v8251_v18, %v8279_v26  ;;  %v897_v48 = vadd.f32 %v8251_v18, %v896_v34  ;;  %v8296_v50 = vadd.f32 %v8251_v18, %v7234_v1 }
 0x191   : > { %v2210_v55 = vsel %vm8120_vm15, %v2158_v16, %v2209_v37  ;;  %v6777_v60 = vpack.c.bf16 %v1635_v13, %v1635_v13  ;;  %v2132_v5 = vsel %vm533_vm9, %v2073_v40, %v2072_v38  ;;  %v948_v47 = vmax.f32 %v884_v41, 0.0 }
 0x192   : > { %2211 = vst [vmem:[#allocation2 + $0x28] sm:$0xf] %v2210_v55  ;;  %v2133_v31 = vsel %vm2098_vm10, %v2074_v42, %v2132_v5  ;;  %v953_v43 = vmax.f32 %v905_v44, 0.0  ;;  %v951_v26 = vmax.f32 %v897_v48, 0.0  ;;  %v472_v58 = vsel %vm7954_vm7, 0, %v471_v51 }
 0x193   : > { %v2075_v34 = vunpack.c.l.b16 %v6777_v60  ;;  %v970_v57 = vmax.f32 %v948_v47, %v950_v49  ;;  %v504_v59 = vsel %vm7948_vm6, 0, %v503_v52  ;;  %v954_v63 = vmax.f32 %v8296_v50, 0.0  ;;  %473 = vst [vmem:[#allocation2 + $0x38] sm:$0x1] %v472_v58 }
 0x194   : > { %v971_v61 = vmax.f32 %v951_v26, %v953_v43  ;;  %505 = vst [vmem:[#allocation2 + $0x3c] sm:$0x1] %v504_v59  ;;  %v8312_v0 = vadd.f32 %v8251_v18, %v899_v29  ;;  %v8315_v1 = vadd.f32 %v8251_v18, %v7237_v54  ;;  %v6396_v45 = vcombine.low %v8317_v2, %v8302_v56 }
 0x195   : > { %v1178_v49 = vcombine.high %v970_v57, %v970_v57  ;;  %v1185_v24 = vrot.slane %v970_v57, %v8048_v12  ;;  %v8321_v32 = vsel %vm2100_vm11, %v2075_v34, %v2133_v31  ;;  %v8331_v14 = vadd.f32 %v8251_v18, %v912_v28 }
 0x196   : > { %v1195_v3 = vcombine.high %v971_v61, %v971_v61  ;;  %v1202_v4 = vrot.slane %v971_v61, %v8048_v12  ;;  %v952_v7 = vmax.f32 %v8312_v0, 0.0  ;;  %v957_v8 = vmax.f32 %v8315_v1, 0.0  ;;  %2975 = vmatprep.mubr.bf16.mxu0 %v6396_v45 }
 0x197   : > { %v1192_v9 = vrot.slane %v1178_v49, %v8048_v12  ;;  %v1193_v10 = vcombine.high %v1185_v24, %v1185_v24  ;;  %v1636_v11 = vsel %vm1327_vm8, %v1185_v24, -inf }
 0x198   : > { %v1637_v15 = vrot.slane %v1636_v11, 4  ;;  %v1209_v17 = vrot.slane %v1195_v3, %v8048_v12  ;;  %v1210_v19 = vcombine.high %v1202_v4, %v1202_v4  ;;  %v1664_v20 = vsel %vm1327_vm8, %v1202_v4, -inf }
 0x199   : > { %v1194_v22 = vcombine.high %v1192_v9, %v1192_v9  ;;  %v1643_v25 = vsel %vm1327_vm8, %v1193_v10, -inf  ;;  %v1650_v29 = vsel %vm1327_vm8, %v1192_v9, -inf  ;;  %v1665_v30 = vrot.slane %v1664_v20, 4 }
 0x19a   : > { %v1638_v46 = vmax.f32 %v1636_v11, %v1637_v15  ;;  %v1644_v53 = vrot.slane %v1643_v25, 4  ;;  %v1651_v33 = vrot.slane %v1650_v29, 4  ;;  %v1211_v35 = vcombine.high %v1209_v17, %v1209_v17 }
 0x19b   : > { %v1657_v37 = vsel %vm1327_vm8, %v1194_v22, -inf  ;;  %v1666_v36 = vmax.f32 %v1664_v20, %v1665_v30  ;;  %v1671_v38 = vsel %vm1327_vm8, %v1210_v19, -inf  ;;  %v1678_v39 = vsel %vm1327_vm8, %v1209_v17, -inf }
 0x19c   : > { %v1639_v16 = vrot.slane %v1638_v46, 2  ;;  %v1645_v13 = vmax.f32 %v1643_v25, %v1644_v53  ;;  %v1652_v40 = vmax.f32 %v1650_v29, %v1651_v33  ;;  %v1658_v41 = vrot.slane %v1657_v37, 4 }
 0x19d   : > { %v1667_v42 = vrot.slane %v1666_v36, 2  ;;  %v1672_v44 = vrot.slane %v1671_v38, 4  ;;  %v1679_v48 = vrot.slane %v1678_v39, 4  ;;  %v1685_v51 = vsel %vm1327_vm8, %v1211_v35, -inf }
 0x19e   : > { %v1640_v52 = vmax.f32 %v1638_v46, %v1639_v16  ;;  %v1646_v54 = vrot.slane %v1645_v13, 2  ;;  %v1653_v55 = vrot.slane %v1652_v40, 2  ;;  %v1659_v60 = vmax.f32 %v1657_v37, %v1658_v41 }
 0x19f   : > { %v1668_v5 = vmax.f32 %v1666_v36, %v1667_v42  ;;  %v1673_v47 = vmax.f32 %v1671_v38, %v1672_v44  ;;  %v1680_v31 = vmax.f32 %v1678_v39, %v1679_v48  ;;  %v1686_v43 = vrot.slane %v1685_v51, 4  ;;  %v2218_v36 = vld [vmem:[#allocation2 + $0x34] sm:$0x1] }
 0x1a0   : > { %v1641_v26 = vrot.slane %v1640_v52, 1  ;;  %v1647_v34 = vmax.f32 %v1645_v13, %v1646_v54  ;;  %v1654_v57 = vmax.f32 %v1652_v40, %v1653_v55  ;;  %v1660_v58 = vrot.slane %v1659_v60, 2 }
 0x1a1   : > { %v1669_v59 = vrot.slane %v1668_v5, 1  ;;  %v1674_v61 = vrot.slane %v1673_v47, 2  ;;  %v1681_v28 = vrot.slane %v1680_v31, 2  ;;  %v1687_v49 = vmax.f32 %v1685_v51, %v1686_v43 }
 0x1a2   : > { %v1642_v24 = vmax.f32 %v1640_v52, %v1641_v26  ;;  %v1648_v45 = vrot.slane %v1647_v34, 1  ;;  %v1655_v3 = vrot.slane %v1654_v57, 1  ;;  %v1661_v4 = vmax.f32 %v1659_v60, %v1660_v58 }
 0x1a3   : > { %v1670_v9 = vmax.f32 %v1668_v5, %v1669_v59  ;;  %v1675_v10 = vmax.f32 %v1673_v47, %v1674_v61  ;;  %v1682_v11 = vmax.f32 %v1680_v31, %v1681_v28  ;;  %v1688_v15 = vrot.slane %v1687_v49, 2  ;;  %v2215_v31 = vld [vmem:[#allocation2 + $0x30] sm:$0xf] }
 0x1a4   : > { %v1649_v17 = vmax.f32 %v1647_v34, %v1648_v45  ;;  %v1656_v19 = vmax.f32 %v1654_v57, %v1655_v3  ;;  %v1662_v20 = vrot.slane %v1661_v4, 1  ;;  %v6778_v22 = vpack.c.bf16 %v1642_v24, %v1642_v24 }
 0x1a5   : > { %v1676_v25 = vrot.slane %v1675_v10, 1  ;;  %v1683_v29 = vrot.slane %v1682_v11, 1  ;;  %v1689_v30 = vmax.f32 %v1687_v49, %v1688_v15  ;;  %v6782_v46 = vpack.c.bf16 %v1670_v9, %v1670_v9 }
 0x1a6   : > { %v1663_v53 = vmax.f32 %v1661_v4, %v1662_v20  ;;  %v6779_v33 = vpack.c.bf16 %v1649_v17, %v1649_v17  ;;  %v6780_v35 = vpack.c.bf16 %v1656_v19, %v1656_v19  ;;  %v2076_v37 = vunpack.c.l.b16 %v6778_v22 }
 0x1a7   : > { %v1677_v38 = vmax.f32 %v1675_v10, %v1676_v25  ;;  %v1684_v39 = vmax.f32 %v1682_v11, %v1683_v29  ;;  %v1690_v16 = vrot.slane %v1689_v30, 1  ;;  %v2080_v13 = vunpack.c.l.b16 %v6782_v46 }
 0x1a8   : > { %v2077_v40 = vunpack.c.l.b16 %v6779_v33  ;;  %v2078_v41 = vunpack.c.l.b16 %v6780_v35  ;;  %v2135_v42 = vsel %vm2102_vm12, %v2076_v37, %v8321_v32  ;;  %v6803_v44 = vpack.c.bf16 %v1663_v53, %v1663_v53 }
 0x1a9   : > { %v1691_v48 = vmax.f32 %v1689_v30, %v1690_v16  ;;  %v6783_v51 = vpack.c.bf16 %v1677_v38, %v1677_v38  ;;  %v6784_v52 = vpack.c.bf16 %v1684_v39, %v1684_v39  ;;  %v972_v54 = vmax.f32 %v952_v7, %v954_v63 }
 0x1aa   : > { %v2136_v55 = vsel %vm2104_vm13, %v2077_v40, %v2135_v42  ;;  %v2219_v60 = vsel %vm7954_vm7, %v6803_v44, %v2218_v36  ;;  %v955_v5 = vmax.f32 %v8331_v14, 0.0  ;;  %v7744_v34 = vmov 0  }
 0x1ab   : > { %v2137_v47 = vsel %vm2106_vm14, %v2078_v41, %v2136_v55  ;;  %2220 = vst [vmem:[#allocation2 + $0x34] sm:$0x1] %v2219_v60  ;;  %v6785_v32 = vpack.c.bf16 %v1691_v48, %v1691_v48  ;;  %v2081_v43 = vunpack.c.l.b16 %v6783_v51  ;;  %v2082_v26 = vunpack.c.l.b16 %v6784_v52  ;;  %442 = vst [vmem:[#allocation2] sm:$0xf] %v7744_v34 }
 0x1ac   : > { %443 = vst [vmem:[#allocation2 + $0x4] sm:$0x1] %v7744_v34  ;;  %445 = vst [vmem:[#allocation2 + $0x48] sm:$0xf] %v7744_v34  ;;  %v2160_v50 = vpack.c.b16 %v2137_v47, %v2137_v47  ;;  %v1212_v63 = vcombine.high %v972_v54, %v972_v54  ;;  %v1219_v0 = vrot.slane %v972_v54, %v8048_v12  ;;  %v6394_v57 = vrot.slane %v8317_v2, 9 }
 0x1ad   : > { %446 = vst [vmem:[#allocation2 + $0x4c] sm:$0x1] %v7744_v34  ;;  %512 = vst [vmem:[#allocation3] sm:$0x7] %v7744_v34  ;;  %v973_v7 = vmax.f32 %v955_v5, %v957_v8  ;;  %v2138_v14 = vsel %vm533_vm9, %v2081_v43, %v2080_v13  ;;  %v2083_v59 = vunpack.c.l.b16 %v6785_v32 }
 0x1ae   : > { %514 = vst [vmem:[#allocation3 + $0x14] sm:$0x7] %v7744_v34  ;;  %554 = vst [vmem:[#allocation4] sm:$0x3] %v7744_v34  ;;  %v2216_v58 = vsel %vm8120_vm15, %v2160_v50, %v2215_v31  ;;  %v1226_v61 = vrot.slane %v1212_v63, %v8048_v12  ;;  %v1227_v28 = vcombine.high %v1219_v0, %v1219_v0  ;;  %v1692_v24 = vsel %vm1327_vm8, %v1219_v0, -inf }
 0x1af   : > { %556 = vst [vmem:[#allocation4 + $0x6] sm:$0x3] %v7744_v34  ;;  %2217 = vst [vmem:[#allocation2 + $0x30] sm:$0xf] %v2216_v58  ;;  %v2139_v49 = vsel %vm2098_vm10, %v2082_v26, %v2138_v14  ;;  %v1229_v45 = vcombine.high %v973_v7, %v973_v7  ;;  %v1236_v1 = vrot.slane %v973_v7, %v8048_v12  ;;  %v1693_v3 = vrot.slane %v1692_v24, 4 }
 0x1b0   : > { %v1228_v8 = vcombine.high %v1226_v61, %v1226_v61  ;;  %v1699_v4 = vsel %vm1327_vm8, %v1227_v28, -inf  ;;  %v1706_v9 = vsel %vm1327_vm8, %v1226_v61, -inf  ;;  %v2140_v22 = vsel %vm2100_vm11, %v2083_v59, %v2139_v49 }
 0x1b1   : > { %v1700_v10 = vrot.slane %v1699_v4, 4  ;;  %v1707_v11 = vrot.slane %v1706_v9, 4  ;;  %v1243_v15 = vrot.slane %v1229_v45, %v8048_v12  ;;  %v1244_v17 = vcombine.high %v1236_v1, %v1236_v1 }
 0x1b2   : > { %v1694_v19 = vmax.f32 %v1692_v24, %v1693_v3  ;;  %v1713_v20 = vsel %vm1327_vm8, %v1228_v8, -inf  ;;  %v1720_v25 = vsel %vm1327_vm8, %v1236_v1, -inf }
 0x1b3   : > { %v1701_v29 = vmax.f32 %v1699_v4, %v1700_v10  ;;  %v1708_v30 = vmax.f32 %v1706_v9, %v1707_v11  ;;  %v1714_v46 = vrot.slane %v1713_v20, 4  ;;  %v1245_v53 = vcombine.high %v1243_v15, %v1243_v15  ;;  %v2224_v9 = vld [vmem:[#allocation2 + $0x3c] sm:$0x1] }
 0x1b4   : > { %v1695_v33 = vrot.slane %v1694_v19, 2  ;;  %v1721_v35 = vrot.slane %v1720_v25, 4  ;;  %v1727_v37 = vsel %vm1327_vm8, %v1244_v17, -inf  ;;  %v1734_v36 = vsel %vm1327_vm8, %v1243_v15, -inf  ;;  %v450_v17 = vld [vmem:[#allocation2] sm:$0x1] }
 0x1b5   : > { %v1702_v38 = vrot.slane %v1701_v29, 2  ;;  %v1709_v39 = vrot.slane %v1708_v30, 2  ;;  %v1715_v16 = vmax.f32 %v1713_v20, %v1714_v46  ;;  %v1728_v13 = vrot.slane %v1727_v37, 4 }
 0x1b6   : > { %v1696_v40 = vmax.f32 %v1694_v19, %v1695_v33  ;;  %v1722_v41 = vmax.f32 %v1720_v25, %v1721_v35  ;;  %v1735_v42 = vrot.slane %v1734_v36, 4  ;;  %v1741_v44 = vsel %vm1327_vm8, %v1245_v53, -inf  ;;  %v482_v35 = vld [vmem:[#allocation2 + $0x4] sm:$0x1] }
 0x1b7   : > { %v1703_v48 = vmax.f32 %v1701_v29, %v1702_v38  ;;  %v1710_v51 = vmax.f32 %v1708_v30, %v1709_v39  ;;  %v1716_v52 = vrot.slane %v1715_v16, 2  ;;  %v1729_v54 = vmax.f32 %v1727_v37, %v1728_v13  ;;  %v2221_v13 = vld [vmem:[#allocation2 + $0x38] sm:$0xf] }
 0x1b8   : > { %v1697_v55 = vrot.slane %v1696_v40, 1  ;;  %v1723_v60 = vrot.slane %v1722_v41, 2  ;;  %v1736_v5 = vmax.f32 %v1734_v36, %v1735_v42  ;;  %v1742_v47 = vrot.slane %v1741_v44, 4  ;;  %v2236_v42 = vld [vmem:[#allocation2 + $0xc] sm:$0x1] }
 0x1b9   : > { %v1704_v31 = vrot.slane %v1703_v48, 1  ;;  %v1711_v32 = vrot.slane %v1710_v51, 1  ;;  %v1717_v43 = vmax.f32 %v1715_v16, %v1716_v52  ;;  %v1730_v26 = vrot.slane %v1729_v54, 2  ;;  %v7238_v52 = vpop.f32.mrf.mxu0 }
 0x1ba   : > { %v1698_v34 = vmax.f32 %v1696_v40, %v1697_v55  ;;  %v1724_v50 = vmax.f32 %v1722_v41, %v1723_v60  ;;  %v1737_v63 = vrot.slane %v1736_v5, 2  ;;  %v1743_v0 = vmax.f32 %v1741_v44, %v1742_v47  ;;  %v8381_v60 = vld [vmem:[#allocation2 + $0x14] sm:$0x1] }
 0x1bb   : > { %v1705_v7 = vmax.f32 %v1703_v48, %v1704_v31  ;;  %v1712_v14 = vmax.f32 %v1710_v51, %v1711_v32  ;;  %v1718_v58 = vrot.slane %v1717_v43, 1  ;;  %v1731_v59 = vmax.f32 %v1729_v54, %v1730_v26 }
 0x1bc   : > { %v6786_v61 = vpack.c.bf16 %v1698_v34, %v1698_v34  ;;  %v1725_v28 = vrot.slane %v1724_v50, 1  ;;  %v1738_v49 = vmax.f32 %v1736_v5, %v1737_v63  ;;  %v1744_v24 = vrot.slane %v1743_v0, 2  ;;  %v474_v34 = vld [vmem:[#allocation2 + $0x40] sm:$0x1] }
 0x1bd   : > { %v1719_v45 = vmax.f32 %v1717_v43, %v1718_v58  ;;  %v6787_v1 = vpack.c.bf16 %v1705_v7, %v1705_v7  ;;  %v6788_v8 = vpack.c.bf16 %v1712_v14, %v1712_v14  ;;  %v1732_v3 = vrot.slane %v1731_v59, 1 }
 0x1be   : > { %v2084_v4 = vunpack.c.l.b16 %v6786_v61  ;;  %v1726_v10 = vmax.f32 %v1724_v50, %v1725_v28  ;;  %v1739_v11 = vrot.slane %v1738_v49, 1  ;;  %v1745_v15 = vmax.f32 %v1743_v0, %v1744_v24  ;;  %v506_v50 = vld [vmem:[#allocation2 + $0x44] sm:$0x1] }
 0x1bf   : > { %v2085_v19 = vunpack.c.l.b16 %v6787_v1  ;;  %v2086_v20 = vunpack.c.l.b16 %v6788_v8  ;;  %v6804_v25 = vpack.c.bf16 %v1719_v45, %v1719_v45  ;;  %v1733_v29 = vmax.f32 %v1731_v59, %v1732_v3  ;;  %v915_v1 = vpop.f32.mrf.mxu0 }
 0x1c0   : > { %v2141_v30 = vsel %vm2102_vm12, %v2084_v4, %v2140_v22  ;;  %v1740_v46 = vmax.f32 %v1738_v49, %v1739_v11  ;;  %v1746_v53 = vrot.slane %v1745_v15, 1  ;;  %v6790_v33 = vpack.c.bf16 %v1726_v10, %v1726_v10 }
 0x1c1   : > { %v2142_v37 = vsel %vm2104_vm13, %v2085_v19, %v2141_v30  ;;  %v2225_v36 = vsel %vm7954_vm7, %v6804_v25, %v2224_v9  ;;  %v6791_v38 = vpack.c.bf16 %v1733_v29, %v1733_v29  ;;  %v451_v39 = vsel %vm7954_vm7, 0, %v450_v17 }
 0x1c2   : > { %v2143_v16 = vsel %vm2106_vm14, %v2086_v20, %v2142_v37  ;;  %2226 = vst [vmem:[#allocation2 + $0x3c] sm:$0x1] %v2225_v36  ;;  %v1747_v40 = vmax.f32 %v1745_v15, %v1746_v53  ;;  %v6792_v41 = vpack.c.bf16 %v1740_v46, %v1740_v46  ;;  %v2088_v22 = vunpack.c.l.b16 %v6790_v33  ;;  %452 = vst [vmem:[#allocation2] sm:$0x1] %v451_v39  ;;  %v8419_v53 = vld [vmem:[#allocation2 + $0x20] sm:$0xf] }
 0x1c3   : > { %v2162_v44 = vpack.c.b16 %v2143_v16, %v2143_v16  ;;  %v2089_v48 = vunpack.c.l.b16 %v6791_v38  ;;  %v483_v51 = vsel %vm7948_vm6, 0, %v482_v35  ;;  %v2338_v5 = vshrl.u32 %v8317_v2, 16  ;;  %v2239_v39 = vld [vmem:[#allocation2 + $0x18] sm:$0xf]  ;;  %v7464_v33 = vld [vmem:[%s9351_s3 + $0x108] sm:$0xff]  }
 0x1c4   : > { %v6793_v54 = vpack.c.bf16 %v1747_v40, %v1747_v40  ;;  %v2090_v55 = vunpack.c.l.b16 %v6792_v41  ;;  %484 = vst [vmem:[#allocation2 + $0x4] sm:$0x1] %v483_v51  ;;  %v924_v47 = vadd.f32 %v8251_v18, %v7238_v52  ;;  %v2341_v43 = vshll.u32 %v8317_v2, 16 }
 0x1c5   : > { %v2222_v31 = vsel %vm8120_vm15, %v2162_v44, %v2221_v13  ;;  %v2144_v32 = vsel %vm533_vm9, %v2089_v48, %v2088_v22  ;;  %v2347_v26 = vshll.u32 %v2236_v42, 16  ;;  %v2340_v63 = vrot.slane %v2338_v5, 4  ;;  %v7425_v48 = vld [vmem:[%s9351_s3 + $0x1b8] sm:$0xff]  }
 0x1c6   : > { %2223 = vst [vmem:[#allocation2 + $0x38] sm:$0xf] %v2222_v31  ;;  %v2352_v0 = vshrl.u32 %v8302_v56, 16  ;;  %v8390_v7 = vunpack.c.l.b16 %v6793_v54  ;;  %v8393_v14 = vsel %vm2098_vm10, %v2090_v55, %v2144_v32  ;;  %v2343_v58 = vrot.slane %v2341_v43, 5  ;;  %v7427_v55 = vld [vmem:[%s9351_s3 + $0x1f0] sm:$0xff]  }
 0x1c7   : > { %v2355_v59 = vshll.u32 %v8302_v56, 16  ;;  %v2349_v28 = vrot.slane %v2347_v26, 5  ;;  %v2361_v24 = vshll.u32 %v8381_v60, 16  ;;  %v475_v45 = vsel %vm7954_vm7, 0, %v474_v34 }
 0x1c8   : > { %v2354_v49 = vrot.slane %v2352_v0, 4  ;;  %v2344_v3 = vor.u32 %v2343_v58, %v2340_v63  ;;  %v2799_v9 = vrot.slane %v2236_v42, 5  ;;  %476 = vst [vmem:[#allocation2 + $0x40] sm:$0x1] %v475_v45  ;;  %v507_v10 = vsel %vm7948_vm6, 0, %v506_v50 }
 0x1c9   : > { %v8405_v8 = vld [vmem:[#allocation2] sm:$0xf]  ;;  %v2357_v4 = vrot.slane %v2355_v59, 5  ;;  %v958_v19 = vmax.f32 %v924_v47, 0.0  ;;  %508 = vst [vmem:[#allocation2 + $0x44] sm:$0x1] %v507_v10  ;;  %v916_v46 = vadd.f32 %v8251_v18, %v915_v1  ;;  %v6397_v44 = vcombine.low %v2239_v39, %v8419_v53 }
 0x1ca   : > { %v2324_v11 = vshrl.u32 %v8405_v8, 16  ;;  %v2327_v15 = vshll.u32 %v8405_v8, 16  ;;  %v6393_v17 = vrot.slane %v8405_v8, 9  ;;  %v2345_v25 = vrot.slane %v2344_v3, 4  ;;  %v2240_v18 = vld [vmem:[#allocation2 + $0x1c] sm:$0x1] }
 0x1cb   : > { %v2234_v20 = vld [vmem:[#allocation2 + $0x4] sm:$0x1]  ;;  %v2358_v29 = vor.u32 %v2357_v4, %v2354_v49  ;;  %v8416_v30 = vsel %vm8398_vm0, %v6394_v57, %v2799_v9  ;;  %v2363_v13 = vrot.slane %v2361_v24, 5  ;;  %v6357_v57 = vcombine.low %v8405_v8, %v8317_v2  ;;  %v7431_v8 = vld [vmem:[%s9351_s3 + $0x1e8] sm:$0xff]   ;;  %v7426_v10 = vld [vmem:[%s9352_s4 + $0x30] sm:$0xff]  }
 0x1cc   : > { %v2326_v35 = vrot.slane %v2324_v11, 4  ;;  %v2329_v37 = vrot.slane %v2327_v15, 5  ;;  %v2333_v36 = vshll.u32 %v2234_v20, 16  ;;  %v2795_v38 = vrot.slane %v2234_v20, 5  ;;  %v8468_v11 = vld [vmem:[#allocation2 + $0x30] sm:$0xf] }
 0x1cd   : > { %v2359_v16 = vrot.slane %v2358_v29, 4  ;;  %v956_v40 = vmax.f32 %v916_v46, 0.0  ;;  %v8437_v51 = vsel %vm8423_vm2, %v2345_v25, %v2349_v28  ;;  %v2366_v54 = vshrl.u32 %v2239_v39, 16  ;;  %v7428_v28 = vld [vmem:[%s9351_s3 + $0x1b0] sm:$0xff]  }
 0x1ce   : > { %v2330_v41 = vor.u32 %v2329_v37, %v2326_v35  ;;  %v2335_v22 = vrot.slane %v2333_v36, 5  ;;  %v2796_v42 = vsel %vm8398_vm0, %v6393_v17, %v2795_v38  ;;  %v2369_v31 = vshll.u32 %v2239_v39, 16  ;;  %v8472_v37 = vld [vmem:[#allocation2 + $0x28] sm:$0xf] }
 0x1cf   : > { %v6395_v52 = vcombine.low %v2796_v42, %v8416_v30  ;;  %v974_v2 = vmax.f32 %v956_v40, %v958_v19  ;;  %v8445_v47 = vsel %vm8423_vm2, %v2359_v16, %v2363_v13  ;;  %v2375_v32 = vshll.u32 %v2240_v18, 16  ;;  %v7433_v36 = vld [vmem:[%s9351_s3 + $0x1a8] sm:$0xff]   ;;  %v8488_v42 = vld [vmem:[#allocation2 + $0x24] sm:$0x1] }
 0x1d0   : > { %v2331_v5 = vrot.slane %v2330_v41, 4  ;;  %v2368_v34 = vrot.slane %v2366_v54, 4  ;;  %v6349_v50 = vrot.slane %v8302_v56, 9  ;;  %v2371_v0 = vrot.slane %v2369_v31, 5  ;;  %v7436_v31 = vld [vmem:[%s9351_s3 + $0x1a0] sm:$0xff]  }
 0x1d1   : > { %2976 = vmatmul.mubr.bf16.vlgmr.msra.gmra.mxu0 %v6395_v52  ;;  %v1246_v43 = vcombine.high %v974_v2, %v974_v2  ;;  %v1253_v26 = vrot.slane %v974_v2, %v8048_v12  ;;  %v2377_v58 = vrot.slane %v2375_v32, 5  ;;  %v2274_v59 = vrot.slane %v8381_v60, 5  ;;  %v7435_v52 = vld [vmem:[%s9351_s3 + $0x1e0] sm:$0xff]  }
 0x1d2   : > { %v2336_v63 = vsel %vm8423_vm2, %v2331_v5, %v2335_v22  ;;  %2983 = vmatprep.mubr.bf16.mxu0 %v6397_v44  ;;  %6972 = vmatpush3.bf16.msra.mxu0 %v7425_v48  ;;  %v2372_v4 = vor.u32 %v2371_v0, %v2368_v34  ;;  %v6350_v9 = vrot.slane %v2239_v39, 9  ;;  %v2278_v20 = vrot.slane %v2240_v18, 5  ;;  %v7430_v44 = vld [vmem:[%s9352_s4 + $0x28] sm:$0xff]  }
 0x1d3   : > { %v6361_v49 = vcombine.low %v2336_v63, %v8437_v51  ;;  %v1260_v24 = vrot.slane %v1246_v43, %v8048_v12  ;;  %v1261_v45 = vcombine.high %v1253_v26, %v1253_v26  ;;  %v1748_v1 = vsel %vm1327_vm8, %v1253_v26, -inf  ;;  %6973 = vmatprep.subr.bf16.mxu0 %v7427_v55 }
 0x1d4   : > { %v1749_v3 = vrot.slane %v1748_v1, 4  ;;  %v8463_v60 = vsel %vm8398_vm0, %v6349_v50, %v2274_v59  ;;  %v2373_v35 = vrot.slane %v2372_v4, 4  ;;  %v8480_v16 = vsel %vm8398_vm0, %v6350_v9, %v2278_v20  ;;  %v7438_v50 = vld [vmem:[%s9351_s3 + $0x1d8] sm:$0xff]   ;;  %v7441_v20 = vld [vmem:[%s9351_s3 + $0x1d0] sm:$0xff]  }
 0x1d5   : > { %2629 = vmatprep.mubr.bf16.mxu1 %v6361_v49  ;;  %v1262_v15 = vcombine.high %v1260_v24, %v1260_v24  ;;  %v1755_v17 = vsel %vm1327_vm8, %v1261_v45, -inf  ;;  %v1762_v19 = vsel %vm1327_vm8, %v1260_v24, -inf  ;;  %v8483_v13 = vcombine.low %v8302_v56, %v2239_v39  ;;  %v7434_v49 = vld [vmem:[%s9352_s4 + $0x20] sm:$0xff]  }
 0x1d6   : > { %2630 = vmatmul.mubr.bf16.vlgmr.msra.gmra.mxu1 %v6357_v57  ;;  %v1750_v25 = vmax.f32 %v1748_v1, %v1749_v3  ;;  %v1756_v29 = vrot.slane %v1755_v17, 4  ;;  %v1763_v46 = vrot.slane %v1762_v19, 4  ;;  %6974 = vmatpush3.bf16.msra.mxu0 %v7428_v28  ;;  %v6398_v57 = vcombine.low %v8472_v37, %v8468_v11  ;;  %v2244_v28 = vld [vmem:[#allocation2 + $0x2c] sm:$0x1] }
 0x1d7   : > { %v1769_v38 = vsel %vm1327_vm8, %v1262_v15, -inf  ;;  %7240 = vmatpush3.bf16.msra.mxu1 %v8235_v62  ;;  %6975 = vmatprep.subr.bf16.mxu0 %v7431_v8  ;;  %v8495_v56 = vsel %vm8423_vm2, %v2373_v35, %v2377_v58  ;;  %v8499_v62 = vcombine.low %v8463_v60, %v8480_v16  ;;  %v2380_v39 = vshrl.u32 %v8419_v53, 16  ;;  %v7439_v15 = vld [vmem:[%s9351_s3 + $0x198] sm:$0xff]  }
 0x1d8   : > { %v1751_v40 = vrot.slane %v1750_v25, 2  ;;  %v1757_v18 = vmax.f32 %v1755_v17, %v1756_v29  ;;  %v1764_v41 = vmax.f32 %v1762_v19, %v1763_v46  ;;  %v1770_v22 = vrot.slane %v1769_v38, 4  ;;  %7241 = vmatprep.subr.bf16.mxu1 %v7426_v10 }
 0x1d9   : > { %v2383_v48 = vshll.u32 %v8419_v53, 16  ;;  %v8511_v32 = vcombine.low %v8445_v47, %v8495_v56  ;;  %2984 = vmatmul.mubr.bf16.gmra.mxu0 %v8499_v62  ;;  %v2382_v43 = vrot.slane %v2380_v39, 4  ;;  %v2389_v34 = vshll.u32 %v8488_v42, 16 }
 0x1da   : > { %v1752_v2 = vmax.f32 %v1750_v25, %v1751_v40  ;;  %v1758_v54 = vrot.slane %v1757_v18, 2  ;;  %v1765_v55 = vrot.slane %v1764_v41, 2  ;;  %v1771_v5 = vmax.f32 %v1769_v38, %v1770_v22  ;;  %6976 = vmatpush3.bf16.msra.mxu0 %v7433_v36  ;;  %2991 = vmatprep.mubr.bf16.mxu0 %v6398_v57  ;;  %v7437_v36 = vld [vmem:[%s9352_s4 + $0x18] sm:$0xff]  }
 0x1db   : > { %7242 = vmatpush3.bf16.msra.mxu1 %v7426_v10  ;;  %v2385_v26 = vrot.slane %v2383_v48, 5  ;;  %v2146_v24 = vsel %vm2100_vm11, %v8390_v7, %v8393_v14  ;;  %2637 = vmatprep.mubr.bf16.mxu1 %v8511_v32  ;;  %v2394_v1 = vshrl.u32 %v8472_v37, 16  ;;  %v2397_v8 = vshll.u32 %v8472_v37, 16  ;;  %v7442_v48 = vld [vmem:[%s9351_s3 + $0x190] sm:$0xff]  }
 0x1dc   : > { %v1753_v63 = vrot.slane %v1752_v2, 1  ;;  %v1759_v0 = vmax.f32 %v1757_v18, %v1758_v54  ;;  %v1766_v58 = vmax.f32 %v1764_v41, %v1765_v55  ;;  %v1772_v59 = vrot.slane %v1771_v5, 2  ;;  %7243 = vmatprep.subr.bf16.mxu1 %v7430_v44  ;;  %6977 = vmatprep.subr.bf16.mxu0 %v7435_v52  ;;  %v7445_v52 = vld [vmem:[%s9351_s3 + $0x1c8] sm:$0xff]  }
 0x1dd   : > { %v2386_v45 = vor.u32 %v2385_v26, %v2382_v43  ;;  %v2391_v7 = vrot.slane %v2389_v34, 5  ;;  %v2396_v14 = vrot.slane %v2394_v1, 4  ;;  %v2399_v17 = vrot.slane %v2397_v8, 5  ;;  %v8579_v8 = vld [vmem:[#allocation2 + $0x34] sm:$0x1] }
 0x1de   : > { %v1754_v3 = vmax.f32 %v1752_v2, %v1753_v63  ;;  %v1760_v4 = vrot.slane %v1759_v0, 1  ;;  %v1767_v9 = vrot.slane %v1766_v58, 1  ;;  %v1773_v10 = vmax.f32 %v1771_v5, %v1772_v59  ;;  %2638 = vmatmul.mubr.bf16.gmra.mxu1 %v8483_v13  ;;  %6978 = vmatpush3.bf16.msra.mxu0 %v7436_v31  ;;  %v2230_v2 = vld [vmem:[#allocation2 + $0x44] sm:$0x1]  ;;  %v7440_v59 = vld [vmem:[%s9352_s4 + $0x10] sm:$0xff]  }
 0x1df   : > { %v2403_v19 = vshll.u32 %v2244_v28, 16  ;;  %7244 = vmatpush3.bf16.msra.mxu1 %v7430_v44  ;;  %6979 = vmatprep.subr.bf16.mxu0 %v7438_v50  ;;  %v2387_v38 = vrot.slane %v2386_v45, 4  ;;  %v2400_v57 = vor.u32 %v2399_v17, %v2396_v14  ;;  %v6351_v18 = vrot.slane %v8419_v53, 9 }
 0x1e0   : > { %v1761_v25 = vmax.f32 %v1759_v0, %v1760_v4  ;;  %v1768_v29 = vmax.f32 %v1766_v58, %v1767_v9  ;;  %v1774_v46 = vrot.slane %v1773_v10, 1  ;;  %v6794_v35 = vpack.c.bf16 %v1754_v3, %v1754_v3  ;;  %7245 = vmatprep.subr.bf16.mxu1 %v7434_v49  ;;  %v7447_v3 = vld [vmem:[%s9351_s3 + $0x188] sm:$0xff]   ;;  %v7449_v4 = vld [vmem:[%s9351_s3 + $0x1c0] sm:$0xff]  }
 0x1e1   : > { %v2405_v40 = vrot.slane %v2403_v19, 5  ;;  %v2401_v54 = vrot.slane %v2400_v57, 4  ;;  %v2282_v55 = vrot.slane %v8488_v42, 5  ;;  %v6352_v5 = vrot.slane %v8472_v37, 9 }
 0x1e2   : > { %v1775_v41 = vmax.f32 %v1773_v10, %v1774_v46  ;;  %v6795_v22 = vpack.c.bf16 %v1761_v25, %v1761_v25  ;;  %v6796_v44 = vpack.c.bf16 %v1768_v29, %v1768_v29  ;;  %v2092_v39 = vunpack.c.l.b16 %v6794_v35  ;;  %6980 = vmatpush3.bf16.msra.mxu0 %v7439_v15  ;;  %v2227_v10 = vld [vmem:[#allocation2 + $0x40] sm:$0xf] }
 0x1e3   : > { %v2286_v31 = vrot.slane %v2244_v28, 5  ;;  %7246 = vmatpush3.bf16.msra.mxu1 %v7434_v49  ;;  %6981 = vmatprep.subr.bf16.mxu0 %v7441_v20  ;;  %v8549_v63 = vsel %vm8423_vm2, %v2387_v38, %v2391_v7  ;;  %v8553_v0 = vsel %vm8423_vm2, %v2401_v54, %v2405_v40  ;;  %v8557_v42 = vsel %vm8398_vm0, %v6351_v18, %v2282_v55  ;;  %v8566_v28 = vld [vmem:[#allocation2 + $0x38] sm:$0xf]  ;;  %v2248_v7 = vld [vmem:[#allocation2 + $0x3c] sm:$0x1] }
 0x1e4   : > { %v2093_v43 = vunpack.c.l.b16 %v6795_v22  ;;  %v2094_v26 = vunpack.c.l.b16 %v6796_v44  ;;  %v2147_v34 = vsel %vm2102_vm12, %v2092_v39, %v2146_v24  ;;  %v6805_v50 = vpack.c.bf16 %v1775_v41, %v1775_v41  ;;  %7247 = vmatprep.subr.bf16.mxu1 %v7437_v36  ;;  %v7450_v41 = vld [vmem:[%s9351_s3 + $0x180] sm:$0xff]  }
 0x1e5   : > { %v8561_v58 = vsel %vm8398_vm0, %v6352_v5, %v2286_v31  ;;  %v8573_v45 = vcombine.low %v8549_v63, %v8553_v0  ;;  %v8590_v15 = vcombine.low %v8419_v53, %v8472_v37  ;;  %v2408_v14 = vshrl.u32 %v8468_v11, 16  ;;  %v7444_v53 = vld [vmem:[%s9352_s4 + $0x8] sm:$0xff]   ;;  %v7448_v39 = vld [vmem:[%s9352_s4] sm:$0xff]  }
 0x1e6   : > { %v2148_v49 = vsel %vm2104_vm13, %v2093_v43, %v2147_v34  ;;  %v2231_v24 = vsel %vm7954_vm7, %v6805_v50, %v2230_v2  ;;  %v8577_v1 = vcombine.low %v8557_v42, %v8561_v58  ;;  %6982 = vmatpush3.bf16.msra.mxu0 %v7442_v48  ;;  %v2411_v17 = vshll.u32 %v8468_v11, 16  ;;  %v477_v37 = vld [vmem:[#allocation2 + $0x48] sm:$0x1]  ;;  %v7451_v34 = vld [vmem:[%s9351_s3 + $0x178] sm:$0xff]  }
 0x1e7   : > { %v2149_v9 = vsel %vm2106_vm14, %v2094_v26, %v2148_v49  ;;  %2232 = vst [vmem:[#allocation2 + $0x44] sm:$0x1] %v2231_v24  ;;  %7248 = vmatpush3.bf16.msra.mxu1 %v7437_v36  ;;  %6983 = vmatprep.subr.bf16.mxu0 %v7445_v52  ;;  %v2422_v20 = vshrl.u32 %v8566_v28, 16  ;;  %v2425_v25 = vshll.u32 %v8566_v28, 16  ;;  %v2410_v29 = vrot.slane %v2408_v14, 4 }
 0x1e8   : > { %v2164_v19 = vpack.c.b16 %v2149_v9, %v2149_v9  ;;  %2645 = vmatprep.mubr.bf16.mxu1 %v8573_v45  ;;  %2992 = vmatmul.mubr.bf16.gmra.mxu0 %v8577_v1  ;;  %v2413_v46 = vrot.slane %v2411_v17, 5  ;;  %v2417_v35 = vshll.u32 %v8579_v8, 16  ;;  %v509_v36 = vld [vmem:[#allocation2 + $0x4c] sm:$0x1]  ;;  %v2431_v18 = vshll.u32 %v2248_v7, 16 }
 0x1e9   : > { %2646 = vmatmul.mubr.bf16.gmra.mxu1 %v8590_v15  ;;  %7249 = vmatprep.subr.bf16.mxu1 %v7440_v59  ;;  %v2424_v57 = vrot.slane %v2422_v20, 4  ;;  %v2427_v40 = vrot.slane %v2425_v25, 5  ;;  %v478_v27 = vsel %vm7954_vm7, 0, %v477_v37  ;;  %v510_v48 = vsel %vm7948_vm6, 0, %v509_v36 }
 0x1ea   : > { %v2228_v38 = vsel %vm8120_vm15, %v2164_v19, %v2227_v10  ;;  %6984 = vmatpush3.bf16.msra.mxu0 %v7447_v3  ;;  %v2414_v22 = vor.u32 %v2413_v46, %v2410_v29  ;;  %v6354_v2 = vrot.slane %v8566_v28, 9  ;;  %479 = vst [vmem:[#allocation2 + $0x48] sm:$0x1] %v478_v27  ;;  %511 = vst [vmem:[#allocation2 + $0x4c] sm:$0x1] %v510_v48  ;;  %v2419_v54 = vrot.slane %v2417_v35, 5 }
 0x1eb   : > { %2229 = vst [vmem:[#allocation2 + $0x40] sm:$0xf] %v2228_v38  ;;  %7250 = vmatpush3.bf16.msra.mxu1 %v7440_v59  ;;  %6985 = vmatprep.subr.bf16.mxu0 %v7449_v4  ;;  %v2428_v44 = vor.u32 %v2427_v40, %v2424_v57  ;;  %v2433_v5 = vrot.slane %v2431_v18, 5  ;;  %v6353_v31 = vrot.slane %v8468_v11, 9  ;;  %v2294_v43 = vrot.slane %v2248_v7, 5  ;;  %v7452_v7 = vld [vmem:[%s9351_s3 + $0x138] sm:$0xff]  }
 0x1ec   : > { %7251 = vmatprep.subr.bf16.mxu1 %v7444_v53  ;;  %v2415_v52 = vrot.slane %v2414_v22, 4  ;;  %v2290_v59 = vrot.slane %v8579_v8, 5  ;;  %v8639_v3 = vcombine.low %v8468_v11, %v8566_v28  ;;  %v7453_v19 = vld [vmem:[%s9351_s3 + $0x170] sm:$0xff]   ;;  %v7458_v27 = vld [vmem:[%s9351_s3 + $0x120] sm:$0xff]   ;;  %v7459_v48 = vld [vmem:[%s9351_s3 + $0x158] sm:$0xff]   ;;  %vm7746_vm6 = vmmov 0  }
 0x1ed   : > { %v2429_v55 = vrot.slane %v2428_v44, 4  ;;  %v8633_v49 = vsel %vm8398_vm0, %v6354_v2, %v2294_v43  ;;  %v7454_v29 = vld [vmem:[%s9351_s3 + $0x130] sm:$0xff]   ;;  %vm3799_vm12 = vsmask.f32 2306  ;;  %vm3910_vm15 = vsmask.f32 1280 }
 0x1ee   : > { %6986 = vmatpush3.bf16.msra.mxu0 %v7450_v41  ;;  %v8619_v26 = vsel %vm8423_vm2, %v2415_v52, %v2419_v54  ;;  %v8645_v9 = vsel %vm8398_vm0, %v6353_v31, %v2290_v59  ;;  %v2250_v10 = vld [vmem:[#allocation2 + $0x44] sm:$0x1]  ;;  %v7460_v54 = vld [vmem:[%s9351_s3 + $0x118] sm:$0xff]   ;;  %v7462_v43 = vld [vmem:[%s9351_s3 + $0x110] sm:$0xff]  }
 0x1ef   : > { %7252 = vmatpush3.bf16.msra.mxu1 %v7444_v53  ;;  %v8623_v21 = vsel %vm8423_vm2, %v2429_v55, %v2433_v5  ;;  %v6383_v8 = vcombine.low %v8645_v9, %v8633_v49  ;;  %v2298_v25 = vrot.slane %v2250_v10, 5  ;;  %v7457_v41 = vld [vmem:[%s9351_s3 + $0x160] sm:$0xff]   ;;  %vm8944_vm14 = vmand %vm2269_vm1, %vm3799_vm12  ;;  %vm3911_vm1 = vsmask.f32 3336 }
 0x1f0   : > { %7253 = vmatprep.subr.bf16.mxu1 %v7448_v39  ;;  %v6364_v50 = vcombine.low %v8619_v26, %v8623_v21  ;;  %vm3912_vm4 = vmor %vm3910_vm15, %vm3911_vm1 }
 0x1f1   : > { %v2252_v11 = vld [vmem:[#allocation2 + $0x4c] sm:$0x1] }
 0x1f2   : > { %v8635_v24 = vld [vmem:[#allocation2 + $0x40] sm:$0xf]  ;;  %2653 = vmatprep.mubr.bf16.mxu1 %v6364_v50  ;;  %v2302_v17 = vrot.slane %v2252_v11, 5  ;;  %v3259_v44 = vshll.u32 %v2252_v11, 16  ;;  %v6449_v11 = vcombine.low %v8495_v56, %v8549_v63  ;;  %v7484_v63 = vld [vmem:[#allocation5 + $0x48] sm:$0xff]  }
 0x1f3   : > { %v6399_v4 = vcombine.low %v8566_v28, %v8635_v24  ;;  %7254 = vmatpush3.bf16.msra.mxu1 %v7448_v39  ;;  %v8652_v28 = vld [vmem:[#allocation2 + $0x48] sm:$0xf]  ;;  %v3017_v53 = vshrl.u32 %v8635_v24, 16  ;;  %v3020_v37 = vshll.u32 %v8635_v24, 16  ;;  %v3026_v39 = vshll.u32 %v2250_v10, 16 }
 0x1f4   : > { %2654 = vmatmul.mubr.bf16.gmra.mxu1 %v8639_v3  ;;  %6931 = vmatprep.subr.bf16.mxu1 %v7451_v34  ;;  %v6356_v14 = vrot.slane %v8652_v28, 9  ;;  %v3253_v20 = vshll.u32 %v8652_v28, 16  ;;  %v3261_v2 = vrot.slane %v3259_v44, 5  ;;  %v7463_v34 = vld [vmem:[%s9351_s3 + $0x148] sm:$0xff]   ;;  %v6504_v59 = vcombine.low %v8635_v24, %v8652_v28 }
 0x1f5   : > { %2999 = vmatprep.mubr.bf16.mxu0 %v6399_v4  ;;  %7255 = vmatprep.mubr.bf16.mxu1 %v8499_v62  ;;  %v3250_v62 = vshrl.u32 %v8652_v28, 16  ;;  %v3019_v40 = vrot.slane %v3017_v53, 4  ;;  %v3022_v18 = vrot.slane %v3020_v37, 5  ;;  %v6448_v4 = vcombine.low %v8437_v51, %v8445_v47  ;;  %v518_v47 = vld [vmem:[#allocation3 + $0x4] sm:$0x1] }
 0x1f6   : > { %3000 = vmatmul.mubr.bf16.gmra.mxu0 %v6383_v8  ;;  %v2303_v46 = vsel %vm8398_vm0, %v6356_v14, %v2302_v17  ;;  %v3255_v36 = vrot.slane %v3253_v20, 5  ;;  %v6450_v28 = vcombine.low %v8553_v0, %v8619_v26  ;;  %v519_v56 = vsel %vm7954_vm7, 0, %v518_v47  ;;  %v545_v14 = vld [vmem:[#allocation3 + $0xc] sm:$0x4] }
 0x1f7   : > { %3430 = vmatprep.mubr.bf16.mxu0 %v8511_v32  ;;  %v6355_v32 = vrot.slane %v8635_v24, 9  ;;  %v3252_v35 = vrot.slane %v3250_v62, 4  ;;  %v3023_v61 = vor.u32 %v3022_v18, %v3019_v40  ;;  %v6454_v24 = vcombine.low %v8561_v58, %v8645_v9  ;;  %520 = vst [vmem:[#allocation3 + $0x4] sm:$0x1] %v519_v56  ;;  %v542_v58 = vld [vmem:[#allocation3 + $0x8] sm:$0x4] }
 0x1f8   : > { %v548_v40 = vld [vmem:[#allocation3 + $0x10] sm:$0x4]  ;;  %v7475_v56 = vld [vmem:[#allocation5 + $0x60] sm:$0xff]  }
 0x1f9   : > { %v2299_v38 = vsel %vm8398_vm0, %v6355_v32, %v2298_v25  ;;  %v3256_v22 = vor.u32 %v3255_v36, %v3252_v35  ;;  %vm534_vm0 = vsmask.f32 7946 }
 0x1fa   : > { %v6384_v57 = vcombine.low %v2299_v38, %v2303_v46  ;;  %v6455_v10 = vcombine.low %v8633_v49, %v2299_v38  ;;  %vm8737_vm5 = vmand %vm533_vm9, %vm534_vm0  ;;  %vm3915_vm0 = vsmask.f32 7448 }
 0x1fb   : > { %v3257_v52 = vrot.slane %v3256_v22, 4  ;;  %v546_v62 = vsel %vm8737_vm5, 0, %v545_v14  ;;  %v530_v14 = vld [vmem:[#allocation3 + $0x14] sm:$0x1] }
 0x1fc   : > { %7256 = vmatmul.mubr.bf16.vlgmr.msra.gmra.mxu1 %v8577_v1  ;;  %v7455_v1 = vld [vmem:[%s9351_s3 + $0x168] sm:$0xff]   ;;  %547 = vst [vmem:[#allocation3 + $0xc] sm:$0x4] %v546_v62  ;;  %v7482_v62 = vld [vmem:[%s9355_s7 + $0x18] sm:$0xff]  }
 0x1fd   : > { %6932 = vmatpush3.bf16.msra.mxu1 %v7452_v7  ;;  %7259 = vmatprep.mubr.bf16.mxu1 %v6383_v8  ;;  %v3262_v55 = vsel %vm8423_vm2, %v3257_v52, %v3261_v2  ;;  %v6453_v8 = vcombine.low %v8480_v16, %v8557_v42  ;;  %v539_v16 = vld [vmem:[#allocation3 + $0x4] sm:$0x4]  ;;  %v521_v42 = vld [vmem:[#allocation3 + $0x8] sm:$0x1]  ;;  %v524_v7 = vld [vmem:[#allocation3 + $0xc] sm:$0x1] }
 0x1fe   : > { %3431 = vmatmul.mubr.bf16.vlgmr.msra.gmra.mxu0 %v8483_v13  ;;  %6933 = vmatprep.subr.bf16.mxu1 %v7453_v19  ;;  %v7456_v13 = vld [vmem:[%s9351_s3 + $0x128] sm:$0xff]   ;;  %v540_v0 = vsel %vm8737_vm5, 0, %v539_v16  ;;  %v522_v26 = vsel %vm7954_vm7, 0, %v521_v42  ;;  %v525_v19 = vsel %vm7954_vm7, 0, %v524_v7  ;;  %v515_v52 = vld [vmem:[#allocation3] sm:$0x1] }
 0x1ff   : > { %3438 = vmatprep.mubr.bf16.mxu0 %v8573_v45  ;;  %v6452_v45 = vcombine.low %v8416_v30, %v8463_v60  ;;  %v3024_v30 = vrot.slane %v3023_v61, 4  ;;  %v3028_v60 = vrot.slane %v3026_v39, 5  ;;  %541 = vst [vmem:[#allocation3 + $0x4] sm:$0x4] %v540_v0  ;;  %523 = vst [vmem:[#allocation3 + $0x8] sm:$0x1] %v522_v26 }
 0x200   : > { %526 = vst [vmem:[#allocation3 + $0xc] sm:$0x1] %v525_v19  ;;  %v536_v2 = vld [vmem:[#allocation3] sm:$0x4]  ;;  %v7478_v7 = vld [vmem:[#allocation5 + $0x58] sm:$0xff]  }
 0x201   : > { %6934 = vmatpush3.bf16.msra.mxu1 %v7454_v29  ;;  %v3029_v5 = vsel %vm8423_vm2, %v3024_v30, %v3028_v60  ;;  %v7467_v60 = vld [vmem:[#allocation5 + $0x78] sm:$0xff]   ;;  %v7477_v42 = vld [vmem:[#allocation5 + $0x20] sm:$0xff]   ;;  %vm3913_vm2 = vsmask.f32 5392 }
 0x202   : > { %6935 = vmatprep.subr.bf16.mxu1 %v7455_v1  ;;  %v6505_v31 = vcombine.low %v3029_v5, %v3262_v55  ;;  %v6451_v51 = vcombine.low %v8623_v21, %v3029_v5  ;;  %v543_v21 = vsel %vm8737_vm5, 0, %v542_v58  ;;  %v7469_v55 = vld [vmem:[#allocation5 + $0x70] sm:$0xff]   ;;  %v537_v5 = vsel %vm8737_vm5, 0, %v536_v2  ;;  %v7480_v19 = vld [vmem:[#allocation5 + $0x18] sm:$0xff]  }
 0x203   : > { %544 = vst [vmem:[#allocation3 + $0x8] sm:$0x4] %v543_v21  ;;  %538 = vst [vmem:[#allocation3] sm:$0x4] %v537_v5  ;;  %v7479_v58 = vld [vmem:[%s9355_s7 + $0x20] sm:$0xff]   ;;  %v7486_v5 = vld [vmem:[#allocation5 + $0x8] sm:$0xff]  }
 0x204   : > { %7260 = vmatmul.mubr.bf16.gmra.mxu1 %v6384_v57  ;;  %v527_v57 = vld [vmem:[#allocation3 + $0x10] sm:$0x1] }
 0x205   : > { %6936 = vmatpush3.bf16.msra.mxu1 %v7456_v13  ;;  %3208 = vmatprep.mubr.bf16.mxu1 %v6452_v45  ;;  %v528_v13 = vsel %vm7954_vm7, 0, %v527_v57  ;;  %v551_v57 = vld [vmem:[#allocation3 + $0x14] sm:$0x4] }
 0x206   : > { %3439 = vmatmul.mubr.bf16.gmra.mxu0 %v8590_v15  ;;  %6937 = vmatprep.subr.bf16.mxu1 %v7457_v41  ;;  %v7461_v15 = vld [vmem:[%s9351_s3 + $0x150] sm:$0xff]   ;;  %v549_v41 = vsel %vm8737_vm5, 0, %v548_v40  ;;  %529 = vst [vmem:[#allocation3 + $0x10] sm:$0x1] %v528_v13  ;;  %v552_v2 = vsel %vm8737_vm5, 0, %v551_v57  ;;  %vm3914_vm5 = vmor %vm3912_vm4, %vm3913_vm2 }
 0x207   : > { %3446 = vmatprep.mubr.bf16.mxu0 %v6364_v50  ;;  %v7465_v50 = vld [vmem:[%s9351_s3 + $0x140] sm:$0xff]   ;;  %550 = vst [vmem:[#allocation3 + $0x10] sm:$0x4] %v549_v41  ;;  %553 = vst [vmem:[#allocation3 + $0x14] sm:$0x4] %v552_v2 }
 0x208   : > { %v7481_v41 = vld [vmem:[#allocation5 + $0x50] sm:$0xff]   ;;  %vm9025_vm12 = vmor %vm3914_vm5, %vm3915_vm0  ;;  %vm5152_vm2 = vsmask.f32 1284  ;;  %vm9401_vm0 = vsmask.f32 256 }
 0x209   : > { %6938 = vmatpush3.bf16.msra.mxu1 %v7458_v27  ;;  %vm5153_vm5 = vmor %vm9401_vm0, %vm5152_vm2  ;;  %vm5164_vm2 = vsmask.f32 7452 }
 0x20a   : > { %6939 = vmatprep.subr.bf16.mxu1 %v7459_v48 }
 0x20d   : > { %6940 = vmatpush3.bf16.msra.mxu1 %v7460_v54  ;;  %v7468_v54 = vld [vmem:[#allocation5 + $0x38] sm:$0xff]  }
 0x20e   : > { %3447 = vmatmul.mubr.bf16.gmra.mxu0 %v8639_v3  ;;  %6941 = vmatprep.subr.bf16.mxu1 %v7461_v15  ;;  %v7466_v3 = vld [vmem:[%s9351_s3 + $0x100] sm:$0xff]   ;;  %v516_v15 = vsel %vm7954_vm7, 0, %v515_v52  ;;  %v531_v52 = vsel %vm7954_vm7, 0, %v530_v14 }
 0x20f   : > { %3454 = vmatprep.mubr.bf16.mxu0 %v6505_v31  ;;  %v7745_v31 = vmov 0.0   ;;  %517 = vst [vmem:[#allocation3] sm:$0x1] %v516_v15  ;;  %532 = vst [vmem:[#allocation3 + $0x14] sm:$0x1] %v531_v52 }
 0x210   : > { %7263 = vmatprep.subr.bf16.mxu0 %v7745_v31 }
 0x211   : > { %6942 = vmatpush3.bf16.msra.mxu1 %v7462_v43  ;;  %v7470_v43 = vld [vmem:[%s9355_s7 + $0x38] sm:$0xff]  }
 0x212   : > { %6943 = vmatprep.subr.bf16.mxu1 %v7463_v34  ;;  %7264 = vmatpush3.bf16.msra.mxu0 %v7470_v43  ;;  %v7488_v43 = vld [vmem:[%s9355_s7 + $0x8] sm:$0xff]  }
 0x213   : > { %7265 = vmatprep.subr.bf16.mxu0 %v7745_v31 }
 0x215   : > { %6944 = vmatpush3.bf16.msra.mxu1 %v7464_v33 }
 0x216   : > { %3455 = vmatmul.mubr.bf16.gmra.mxu0 %v6504_v59  ;;  %6945 = vmatprep.subr.bf16.mxu1 %v7465_v50  ;;  %v7471_v50 = vld [vmem:[#allocation5 + $0x30] sm:$0xff]   ;;  %v7473_v59 = vld [vmem:[%s9355_s7 + $0x30] sm:$0xff]  }
 0x217   : > { %7266 = vmatpush3.bf16.msra.mxu0 %v7473_v59  ;;  %7279 = vmatprep.mubr.msk.bf16.mxu0 %vm7746_vm6, %v7745_v31  ;;  %v7487_v59 = vld [vmem:[#allocation5 + $0x40] sm:$0xff]  }
 0x218   : > { %7267 = vmatprep.subr.bf16.mxu0 %v7745_v31 }
 0x219   : > { %6946 = vmatpush3.bf16.msra.mxu1 %v7466_v3 }
 0x21a   : > { %7011 = vmatprep.subr.bf16.mxu1 %v7467_v60  ;;  %v7483_v60 = vld [vmem:[#allocation5 + $0x10] sm:$0xff]  }
 0x21c   : > { %3209 = vmatmul.mubr.bf16.vlgmr.msra.gmra.mxu1 %v6448_v4 }
 0x21d   : > { %3216 = vmatprep.mubr.bf16.mxu1 %v6453_v8  ;;  %7012 = vmatpush3.bf16.msra.mxu1 %v7468_v54  ;;  %v7472_v8 = vld [vmem:[#allocation5 + $0x68] sm:$0xff]   ;;  %v7485_v54 = vld [vmem:[%s9355_s7 + $0x10] sm:$0xff]  }
 0x21e   : > { %7013 = vmatprep.subr.bf16.mxu1 %v7469_v55 }
 0x221   : > { %7014 = vmatpush3.bf16.msra.mxu1 %v7471_v50 }
 0x222   : > { %7015 = vmatprep.subr.bf16.mxu1 %v7472_v8  ;;  %v7490_v8 = vld [vmem:[%s9355_s7] sm:$0xff]  }
 0x224   : > { %3217 = vmatmul.mubr.bf16.gmra.mxu1 %v6449_v11 }
 0x225   : > { %3224 = vmatprep.mubr.bf16.mxu1 %v6454_v24 }
 0x22c   : > { %3225 = vmatmul.mubr.bf16.gmra.mxu1 %v6450_v28 }
 0x22d   : > { %3232 = vmatprep.mubr.bf16.mxu1 %v6455_v10  ;;  %v7474_v10 = vld [vmem:[#allocation5 + $0x28] sm:$0xff]  }
 0x22e   : > { %7016 = vmatpush3.bf16.msra.mxu1 %v7474_v10 }
 0x22f   : > { %7017 = vmatprep.subr.bf16.mxu1 %v7475_v56  ;;  %v7491_v56 = vld [vmem:[#allocation5 + $0xf8] sm:$0xff]  }
 0x232   : > { %7018 = vmatpush3.bf16.msra.mxu1 %v7477_v42  ;;  %v7497_v42 = vld [vmem:[#allocation5 + $0x178] sm:$0xff]  }
 0x233   : > { %7019 = vmatprep.subr.bf16.mxu1 %v7478_v7 }
 0x234   : > { %3233 = vmatmul.mubr.bf16.gmra.mxu1 %v6451_v51  ;;  %v7476_v51 = vld [vmem:[%s9355_s7 + $0x28] sm:$0xff]  }
 0x235   : > { %7268 = vmatpush3.bf16.msra.mxu0 %v7476_v51 }
 0x236   : > { %7269 = vmatprep.subr.bf16.mxu0 %v7745_v31  ;;  %7020 = vmatpush3.bf16.msra.mxu1 %v7480_v19 }
 0x237   : > { %7021 = vmatprep.subr.bf16.mxu1 %v7481_v41 }
 0x239   : > { %7270 = vmatpush3.bf16.msra.mxu0 %v7479_v58 }
 0x23a   : > { %7271 = vmatprep.subr.bf16.mxu0 %v7745_v31  ;;  %7022 = vmatpush3.bf16.msra.mxu1 %v7483_v60 }
 0x23b   : > { %7023 = vmatprep.subr.bf16.mxu1 %v7484_v63 }
 0x23d   : > { %7272 = vmatpush3.bf16.msra.mxu0 %v7482_v62 }
 0x23e   : > { %7273 = vmatprep.subr.bf16.mxu0 %v7745_v31  ;;  %7024 = vmatpush3.bf16.msra.mxu1 %v7486_v5 }
 0x23f   : > { %7025 = vmatprep.subr.bf16.mxu1 %v7487_v59 }
 0x241   : > { %7274 = vmatpush3.bf16.msra.mxu0 %v7485_v54 }
 0x242   : > { %7275 = vmatprep.subr.bf16.mxu0 %v7745_v31 }
 0x245   : > { %7276 = vmatpush3.bf16.msra.mxu0 %v7488_v43 }
 0x246   : > { %7277 = vmatprep.subr.bf16.mxu0 %v7745_v31 }
 0x249   : > { %7278 = vmatpush3.bf16.msra.mxu0 %v7490_v8 }
 0x24a   : > { %7064 = vmatprep.subr.bf16.mxu0 %v7497_v42 }
 0x291   : > { %v8747_v49 = vpop.f32.mrf.mxu0 }
 0x293   : > { %v8749_v9 = vpop.f32.mrf.mxu0 }
 0x294   : > { %v6909_v60 = vadd.f32 %v8749_v9, %v8747_v49 }
 0x295   : > { %v8751_v17 = vpop.f32.mrf.mxu0 }
 0x296   : > { %v8757_v20 = vpop.f32.mrf.mxu1 }
 0x297   : > { %v8761_v25 = vpop.f32.mrf.mxu0 }
 0x298   : > { %v8759_v32 = vpop.f32.mrf.mxu1 }
 0x299   : > { %v8765_v37 = vpop.f32.mrf.mxu0  ;;  %v6857_v62 = vadd.f32 %v8759_v32, %v8757_v20  ;;  %v6912_v20 = vadd.f32 %v8761_v25, %v8751_v17  ;;  %v8884_v17 = vld [vmem:[%s9353_s5] ss:$0 sm:$0xff] }
 0x29a   : > { %v8763_v53 = vpop.f32.mrf.mxu1 }
 0x29b   : > { %v8771_v1 = vpop.f32.mrf.mxu0 }
 0x29c   : > { %v8767_v29 = vpop.f32.mrf.mxu1 }
 0x29d   : > { %v8775_v36 = vpop.f32.mrf.mxu0  ;;  %v6860_v54 = vadd.f32 %v8767_v29, %v8763_v53 }
 0x29e   : > { %v8769_v46 = vpop.f32.mrf.mxu1 }
 0x29f   : > { %v8779_v18 = vpop.f32.mrf.mxu0 }
 0x2a0   : > { %v8773_v35 = vpop.f32.mrf.mxu1 }
 0x2a1   : > { %v6863_v32 = vadd.f32 %v8773_v35, %v8769_v46  ;;  %v6915_v46 = vadd.f32 %v8771_v1, %v8765_v37 }
 0x2a2   : > { %v8777_v38 = vpop.f32.mrf.mxu1 }
 0x2a4   : > { %v8785_v22 = vpop.f32.mrf.mxu1 }
 0x2a8   : > { %v8787_v44 = vpop.f32.mrf.mxu0 }
 0x2a9   : > { %v8789_v45 = vpop.f32.mrf.mxu1 }
 0x2aa   : > { %v8793_v39 = vpop.f32.mrf.mxu0 }
 0x2ab   : > { %v8791_v61 = vpop.f32.mrf.mxu1 }
 0x2ac   : > { %v8797_v48 = vpop.f32.mrf.mxu0 }
 0x2ad   : > { %v8795_v27 = vpop.f32.mrf.mxu1 }
 0x2ae   : > { %v8809_v34 = vpop.f32.mrf.mxu0 }
 0x2af   : > { %v8799_v30 = vpop.f32.mrf.mxu1 }
 0x2b4   : > { %v6873_v33 = vpop.f32.mrf.mxu1 }
 0x2b6   : > { %v8814_v3 = vpop.f32.mrf.mxu0  ;;  %v6874_v4 = vpop.f32.mrf.mxu1 }
 0x2b7   : > { %v8817_v11 = vadd.f32 %v6874_v4, %v6873_v33  ;;  %v7489_v4 = vld [vmem:[#allocation5] sm:$0xff]  }
 0x2b8   : > { %v8819_v24 = vpop.f32.mrf.mxu0  ;;  %v8821_v28 = vpop.f32.mrf.mxu1  ;;  %7026 = vmatpush3.bf16.msra.mxu1 %v7489_v4 }
 0x2b9   : > { %7042 = vmatprep.subr.bf16.mxu1 %v7491_v56 }
 0x2ba   : > { %v8826_v47 = vpop.f32.mrf.mxu0  ;;  %v8828_v16 = vpop.f32.mrf.mxu1 }
 0x2bc   : > { %v8831_v0 = vpop.f32.mrf.mxu0  ;;  %v8838_v21 = vpop.f32.mrf.mxu1 }
 0x2bd   : > { %v2769_v53 = vadd.f32 %v8838_v21, %v6863_v32 }
 0x2be   : > { %v8836_v26 = vpop.f32.mrf.mxu0  ;;  %v2760_v13 = vpop.f32.mrf.mxu1 }
 0x2bf   : > { %v2761_v52 = vadd.f32 %v6857_v62, %v2760_v13 }
 0x2c0   : > { %v6988_v40 = vpop.f32.mrf.mxu0  ;;  %v7258_v15 = vpop.f32.mrf.mxu1 }
 0x2c1   : > { %v3008_v43 = vadd.f32 %v6909_v60, %v2761_v52  ;;  %v6989_v13 = vadd.f32 %v6988_v40, %v8836_v26 }
 0x2c2   : > { %v6990_v55 = vpop.f32.mrf.mxu0  ;;  %v2763_v50 = vpop.f32.mrf.mxu1 }
 0x2c3   : > { %v2764_v59 = vadd.f32 %v6860_v54, %v2763_v50  ;;  %v6866_v50 = vadd.f32 %v8785_v22, %v8777_v38  ;;  %v6918_v38 = vadd.f32 %v8779_v18, %v8775_v36  ;;  %v6869_v22 = vadd.f32 %v8791_v61, %v8789_v45 }
 0x2c4   : > { %v6991_v33 = vpop.f32.mrf.mxu0  ;;  %v7261_v51 = vpop.f32.mrf.mxu1  ;;  %v6921_v45 = vadd.f32 %v8793_v39, %v8787_v44  ;;  %v6927_v61 = vadd.f32 %v8819_v24, %v8814_v3 }
 0x2c5   : > { %v3009_v29 = vadd.f32 %v6912_v20, %v2764_v59  ;;  %v6992_v35 = vadd.f32 %v6991_v33, %v6990_v55  ;;  %v2772_v40 = vadd.f32 %v7258_v15, %v6866_v50  ;;  %v6872_v55 = vadd.f32 %v8799_v30, %v8795_v27 }
 0x2c6   : > { %v6993_v10 = vpop.f32.mrf.mxu0  ;;  %v2776_v7 = vpop.f32.mrf.mxu1  ;;  %v2785_v33 = vadd.f32 %v7261_v51, %v8817_v11  ;;  %v6924_v27 = vadd.f32 %v8809_v34, %v8797_v48 }
 0x2c7   : > { %v3011_v15 = vadd.f32 %v6918_v38, %v2772_v40 }
 0x2c8   : > { %v6994_v58 = vpop.f32.mrf.mxu0  ;;  %v8863_v19 = vpop.f32.mrf.mxu1 }
 0x2c9   : > { %v6995_v59 = vadd.f32 %v6994_v58, %v6993_v10 }
 0x2ca   : > { %v6996_v14 = vpop.f32.mrf.mxu0  ;;  %v2779_v41 = vpop.f32.mrf.mxu1 }
 0x2cb   : > { %v2780_v10 = vadd.f32 %v6872_v55, %v2779_v41 }
 0x2cc   : > { %v6997_v57 = vpop.f32.mrf.mxu0 }
 0x2cd   : > { %v6998_v30 = vadd.f32 %v6997_v57, %v6996_v14  ;;  %v3013_v57 = vadd.f32 %v6924_v27, %v2780_v10 }
 0x2ce   : > { %v8871_v63 = vpop.f32.mrf.mxu0 }
 0x2d0   : > { %v7000_v49 = vpop.f32.mrf.mxu0 }
 0x2d2   : > { %v7002_v52 = vpop.f32.mrf.mxu0 }
 0x2dc   : > { %v6947_v2 = vpop.f32.mrf.mxu1 }
 0x2de   : > { %v6948_v5 = vpop.f32.mrf.mxu1 }
 0x2df   : > { %v6949_v4 = vadd.f32 %v6948_v5, %v6947_v2  ;;  %v3010_v2 = vadd.f32 %v6915_v46, %v2769_v53 }
 0x2e0   : > { %v6950_v8 = vpop.f32.mrf.mxu1 }
 0x2e1   : > { %v3241_v56 = vadd.f32 %v6949_v4, %v3008_v43  ;;  %v2777_v4 = vadd.f32 %v6869_v22, %v2776_v7  ;;  %v8905_v7 = vadd.f32 %v8831_v0, %v8826_v47  ;;  %v7001_v47 = vadd.f32 %v7000_v49, %v8871_v63 }
 0x2e2   : > { %v6951_v9 = vpop.f32.mrf.mxu1 }
 0x2e3   : > { %v3463_v42 = vadd.f32 %v6989_v13, %v3241_v56  ;;  %v6952_v62 = vadd.f32 %v6951_v9, %v6950_v8  ;;  %v7003_v8 = vpop.f32.mrf.mxu0  ;;  %v6878_v56 = vadd.f32 %v8828_v16, %v8821_v28  ;;  %v8909_v9 = vadd.f32 %v6927_v61, %v2785_v33 }
 0x2e4   : > { %v6953_v25 = vpop.f32.mrf.mxu1  ;;  %v3012_v24 = vadd.f32 %v6921_v45, %v2777_v4 }
 0x2e5   : > { %v3242_v26 = vadd.f32 %v6952_v62, %v3009_v29  ;;  %v3478_v60 = vadd.f32 %v8884_v17, %v3463_v42  ;;  %v7005_v44 = vpop.f32.mrf.mxu0  ;;  %v8914_v14 = vadd.f32 %v8863_v19, %v6878_v56  ;;  %v8920_v62 = vadd.f32 %v7003_v8, %v7002_v52 }
 0x2e6   : > { %v6954_v21 = vpop.f32.mrf.mxu1 }
 0x2e7   : > { %v3464_v54 = vadd.f32 %v6992_v35, %v3242_v26  ;;  %v6955_v5 = vadd.f32 %v6954_v21, %v6953_v25  ;;  %v3486_v32 = vmax.f32 %v3478_v60, 0.0  ;;  %v7006_v50 = vpop.f32.mrf.mxu0 }
 0x2e8   : > { %v6956_v43 = vpop.f32.mrf.mxu1 }
 0x2e9   : > { %v3479_v37 = vadd.f32 %v8884_v17, %v3464_v54  ;;  %v3243_v1 = vadd.f32 %v6955_v5, %v3010_v2  ;;  %v8924_v5 = vadd.f32 %v7006_v50, %v7005_v44 }
 0x2ea   : > { %v6957_v20 = vpop.f32.mrf.mxu1 }
 0x2eb   : > { %v3487_v13 = vmax.f32 %v3479_v37, 0.0  ;;  %v3465_v36 = vadd.f32 %v6995_v59, %v3243_v1  ;;  %v6958_v18 = vadd.f32 %v6957_v20, %v6956_v43 }
 0x2ec   : > { %v6959_v58 = vpop.f32.mrf.mxu1 }
 0x2ed   : > { %v3494_v11 = vmax.f32 %v3486_v32, %v3487_v13  ;;  %v3244_v51 = vadd.f32 %v6958_v18, %v3011_v15  ;;  %v3480_v39 = vadd.f32 %v8884_v17, %v3465_v36 }
 0x2ee   : > { %v6960_v3 = vpop.f32.mrf.mxu1 }
 0x2ef   : > { %v3502_v41 = vcombine.high %v3494_v11, %v3494_v11  ;;  %v3509_v48 = vrot.slane %v3494_v11, %v8048_v12  ;;  %v3466_v34 = vadd.f32 %v6998_v30, %v3244_v51  ;;  %v6961_v0 = vadd.f32 %v6960_v3, %v6959_v58 }
 0x2f0   : > { %v6962_v53 = vpop.f32.mrf.mxu1  ;;  %v3488_v46 = vmax.f32 %v3480_v39, 0.0 }
 0x2f1   : > { %v3516_v28 = vrot.slane %v3502_v41, %v8048_v12  ;;  %v3517_v16 = vcombine.high %v3509_v48, %v3509_v48  ;;  %v3586_v29 = vsel %vm1327_vm8, %v3509_v48, -inf  ;;  %v3481_v42 = vadd.f32 %v8884_v17, %v3466_v34 }
 0x2f2   : > { %v3587_v25 = vrot.slane %v3586_v29, 4  ;;  %v3245_v35 = vadd.f32 %v6961_v0, %v3012_v24  ;;  %v6963_v19 = vpop.f32.mrf.mxu1 }
 0x2f3   : > { %v3518_v26 = vcombine.high %v3516_v28, %v3516_v28  ;;  %v3593_v40 = vsel %vm1327_vm8, %v3517_v16, -inf  ;;  %v3600_v63 = vsel %vm1327_vm8, %v3516_v28, -inf  ;;  %v3489_v49 = vmax.f32 %v3481_v42, 0.0 }
 0x2f4   : > { %v3588_v21 = vmax.f32 %v3586_v29, %v3587_v25  ;;  %v3594_v2 = vrot.slane %v3593_v40, 4  ;;  %v3601_v60 = vrot.slane %v3600_v63, 4  ;;  %v3467_v54 = vadd.f32 %v7001_v47, %v3245_v35  ;;  %v6965_v10 = vpop.f32.mrf.mxu1 }
 0x2f5   : > { %v3607_v52 = vsel %vm1327_vm8, %v3518_v26, -inf  ;;  %v3495_v38 = vmax.f32 %v3488_v46, %v3489_v49  ;;  %v6964_v22 = vadd.f32 %v6963_v19, %v6962_v53 }
 0x2f6   : > { %v3589_v43 = vrot.slane %v3588_v21, 2  ;;  %v3595_v59 = vmax.f32 %v3593_v40, %v3594_v2  ;;  %v3602_v37 = vmax.f32 %v3600_v63, %v3601_v60  ;;  %v3608_v1 = vrot.slane %v3607_v52, 4  ;;  %v6966_v53 = vpop.f32.mrf.mxu1 }
 0x2f7   : > { %v3519_v55 = vcombine.high %v3495_v38, %v3495_v38  ;;  %v3526_v15 = vrot.slane %v3495_v38, %v8048_v12  ;;  %v8929_v33 = vadd.f32 %v8884_v17, %v3467_v54  ;;  %v3246_v4 = vadd.f32 %v6964_v22, %v3013_v57 }
 0x2f8   : > { %v3590_v8 = vmax.f32 %v3588_v21, %v3589_v43  ;;  %v3596_v20 = vrot.slane %v3595_v59, 2  ;;  %v3603_v32 = vrot.slane %v3602_v37, 2  ;;  %v3609_v13 = vmax.f32 %v3607_v52, %v3608_v1  ;;  %v6968_v54 = vpop.f32.mrf.mxu1 }
 0x2f9   : > { %v3533_v36 = vrot.slane %v3519_v55, %v8048_v12  ;;  %v3534_v18 = vcombine.high %v3526_v15, %v3526_v15  ;;  %v3614_v45 = vsel %vm1327_vm8, %v3526_v15, -inf  ;;  %v3490_v61 = vmax.f32 %v8929_v33, 0.0 }
 0x2fa   : > { %v3591_v58 = vrot.slane %v3590_v8, 1  ;;  %v3597_v27 = vmax.f32 %v3595_v59, %v3596_v20  ;;  %v3604_v30 = vmax.f32 %v3602_v37, %v3603_v32  ;;  %v3610_v11 = vrot.slane %v3609_v13, 2  ;;  %v7008_v59 = vpop.f32.mrf.mxu0 }
 0x2fb   : > { %v3535_v51 = vcombine.high %v3533_v36, %v3533_v36  ;;  %v3615_v56 = vrot.slane %v3614_v45, 4  ;;  %v3621_v44 = vsel %vm1327_vm8, %v3534_v18, -inf  ;;  %v3628_v39 = vsel %vm1327_vm8, %v3533_v36, -inf }
 0x2fc   : > { %v3592_v3 = vmax.f32 %v3590_v8, %v3591_v58  ;;  %v3598_v24 = vrot.slane %v3597_v27, 1  ;;  %v3605_v41 = vrot.slane %v3604_v30, 1  ;;  %v3611_v48 = vmax.f32 %v3609_v13, %v3610_v11 }
 0x2fd   : > { %v3616_v34 = vmax.f32 %v3614_v45, %v3615_v56  ;;  %v3622_v57 = vrot.slane %v3621_v44, 4  ;;  %v3629_v47 = vrot.slane %v3628_v39, 4  ;;  %v3635_v0 = vsel %vm1327_vm8, %v3535_v51, -inf }
 0x2fe   : > { %v3599_v28 = vmax.f32 %v3597_v27, %v3598_v24  ;;  %v3606_v16 = vmax.f32 %v3604_v30, %v3605_v41  ;;  %v3612_v29 = vrot.slane %v3611_v48, 1  ;;  %v6806_v42 = vpack.c.bf16 %v3592_v3, %v3592_v3  ;;  %v6969_v27 = vpop.f32.mrf.mxu1 }
 0x2ff   : > { %v3617_v50 = vrot.slane %v3616_v34, 2  ;;  %v3623_v25 = vmax.f32 %v3621_v44, %v3622_v57  ;;  %v3630_v46 = vmax.f32 %v3628_v39, %v3629_v47  ;;  %v3636_v35 = vrot.slane %v3635_v0, 4 }
 0x300   : > { %v3613_v19 = vmax.f32 %v3611_v48, %v3612_v29  ;;  %v6807_v26 = vpack.c.bf16 %v3599_v28, %v3599_v28  ;;  %v6808_v40 = vpack.c.bf16 %v3606_v16, %v3606_v16  ;;  %v3762_v63 = vunpack.c.l.b16 %v6806_v42 }
 0x301   : > { %v3618_v49 = vmax.f32 %v3616_v34, %v3617_v50  ;;  %v3624_v21 = vrot.slane %v3623_v25, 2  ;;  %v3631_v2 = vrot.slane %v3630_v46, 2  ;;  %v3637_v60 = vmax.f32 %v3635_v0, %v3636_v35 }
 0x302   : > { %v6809_v52 = vpack.c.bf16 %v3613_v19, %v3613_v19  ;;  %v3763_v38 = vunpack.c.l.b16 %v6807_v26  ;;  %v3764_v22 = vunpack.c.l.b16 %v6808_v40  ;;  %v3468_v43 = vadd.f32 %v8920_v62, %v3246_v4  ;;  %v3801_v4 = vld [vmem:[#allocation3 + $0x4] sm:$0x7] }
 0x303   : > { %v3619_v37 = vrot.slane %v3618_v49, 1  ;;  %v3625_v1 = vmax.f32 %v3623_v25, %v3624_v21  ;;  %v3632_v55 = vmax.f32 %v3630_v46, %v3631_v2  ;;  %v3638_v15 = vrot.slane %v3637_v60, 2 }
 0x304   : > { %v3765_v8 = vunpack.c.l.b16 %v6809_v52  ;;  %v3778_v20 = vsel %vm533_vm9, %v3763_v38, %v3762_v63  ;;  %v3483_v32 = vadd.f32 %v8884_v17, %v3468_v43  ;;  %v6967_v13 = vadd.f32 %v6966_v53, %v6965_v10  ;;  %v7009_v10 = vpop.f32.mrf.mxu0  ;;  %v8961_v63 = vld [vmem:[#allocation3] sm:$0x7] }
 0x305   : > { %v3779_v36 = vsel %vm2098_vm10, %v3764_v22, %v3778_v20  ;;  %v3620_v18 = vmax.f32 %v3618_v49, %v3619_v37  ;;  %v3626_v45 = vrot.slane %v3625_v1, 1  ;;  %v3633_v58 = vrot.slane %v3632_v55, 1 }
 0x306   : > { %v3780_v30 = vsel %vm2100_vm11, %v3765_v8, %v3779_v36  ;;  %v3639_v11 = vmax.f32 %v3637_v60, %v3638_v15  ;;  %v3491_v51 = vmax.f32 %v3483_v32, 0.0  ;;  %v3247_v56 = vadd.f32 %v6967_v13, %v8909_v9 }
 0x307   : > { %v3790_v44 = vpack.c.b16 %v3780_v30, %v3780_v30  ;;  %v3627_v39 = vmax.f32 %v3625_v1, %v3626_v45  ;;  %v3634_v3 = vmax.f32 %v3632_v55, %v3633_v58  ;;  %v6810_v24 = vpack.c.bf16 %v3620_v18, %v3620_v18 }
 0x308   : > { %v3015_v41 = vadd.f32 %v8905_v7, %v8914_v14  ;;  %v3640_v48 = vrot.slane %v3639_v11, 1  ;;  %v3496_v34 = vmax.f32 %v3490_v61, %v3491_v51  ;;  %v6970_v57 = vadd.f32 %v6969_v27, %v6968_v54 }
 0x309   : > { %v3802_v47 = vsel %vm8944_vm14, %v3790_v44, %v3801_v4  ;;  %v6811_v0 = vpack.c.bf16 %v3627_v39, %v3627_v39  ;;  %v6812_v53 = vpack.c.bf16 %v3634_v3, %v3634_v3  ;;  %v3469_v9 = vadd.f32 %v8924_v5, %v3247_v56 }
 0x30a   : > { %v7010_v28 = vadd.f32 %v7009_v10, %v7008_v59  ;;  %3803 = vst [vmem:[#allocation3 + $0x4] sm:$0x7] %v3802_v47  ;;  %v3641_v16 = vmax.f32 %v3639_v11, %v3640_v48  ;;  %v3536_v29 = vcombine.high %v3496_v34, %v3496_v34  ;;  %v3543_v42 = vrot.slane %v3496_v34, %v8048_v12  ;;  %v3804_v59 = vld [vmem:[#allocation3 + $0x8] sm:$0x7] }
 0x30b   : > { %v3766_v50 = vunpack.c.l.b16 %v6810_v24  ;;  %v3767_v7 = vunpack.c.l.b16 %v6811_v0  ;;  %v3768_v14 = vunpack.c.l.b16 %v6812_v53  ;;  %v3248_v25 = vadd.f32 %v6970_v57, %v3015_v41 }
 0x30c   : > { %v6813_v33 = vpack.c.bf16 %v3641_v16, %v3641_v16  ;;  %v3550_v61 = vrot.slane %v3536_v29, %v8048_v12  ;;  %v3551_v46 = vcombine.high %v3543_v42, %v3543_v42  ;;  %v3642_v35 = vsel %vm1327_vm8, %v3543_v42, -inf }
 0x30d   : > { %v3781_v19 = vsel %vm533_vm9, %v3767_v7, %v3766_v50  ;;  %v3643_v26 = vrot.slane %v3642_v35, 4  ;;  %v3484_v5 = vadd.f32 %v8884_v17, %v3469_v9  ;;  %v3470_v40 = vadd.f32 %v7010_v28, %v3248_v25 }
 0x30e   : > { %v3769_v49 = vunpack.c.l.b16 %v6813_v33  ;;  %v3782_v21 = vsel %vm2098_vm10, %v3768_v14, %v3781_v19  ;;  %v3552_v2 = vcombine.high %v3550_v61, %v3550_v61  ;;  %v3649_v60 = vsel %vm1327_vm8, %v3551_v46, -inf }
 0x30f   : > { %v3644_v54 = vmax.f32 %v3642_v35, %v3643_v26  ;;  %v3650_v52 = vrot.slane %v3649_v60, 4  ;;  %v3656_v38 = vsel %vm1327_vm8, %v3550_v61, -inf  ;;  %v3485_v22 = vadd.f32 %v8884_v17, %v3470_v40 }
 0x310   : > { %v3783_v43 = vsel %vm2100_vm11, %v3769_v49, %v3782_v21  ;;  %v3657_v37 = vrot.slane %v3656_v38, 4  ;;  %v3663_v1 = vsel %vm1327_vm8, %v3552_v2, -inf  ;;  %v8971_v55 = vrot.slane %v8961_v63, %v8048_v12 }
 0x311   : > { %v3791_v15 = vpack.c.b16 %v3783_v43, %v3783_v43  ;;  %v3645_v8 = vrot.slane %v3644_v54, 2  ;;  %v3651_v20 = vmax.f32 %v3649_v60, %v3650_v52  ;;  %v3664_v32 = vrot.slane %v3663_v1, 4  ;;  %v8975_v11 = vld [vmem:[#allocation3 + $0x4] sm:$0x7] }
 0x312   : > { %v3658_v13 = vmax.f32 %v3656_v38, %v3657_v37  ;;  %v3492_v36 = vmax.f32 %v3484_v5, 0.0  ;;  %v3493_v18 = vmax.f32 %v3485_v22, 0.0  ;;  %v3918_v44 = vshrl.u32 %v8971_v55, 16 }
 0x313   : > { %v3805_v17 = vsel %vm8944_vm14, %v3791_v15, %v3804_v59  ;;  %v3646_v45 = vmax.f32 %v3644_v54, %v3645_v8  ;;  %v3652_v58 = vrot.slane %v3651_v20, 2  ;;  %v3665_v27 = vmax.f32 %v3663_v1, %v3664_v32 }
 0x314   : > { %3806 = vst [vmem:[#allocation3 + $0x8] sm:$0x7] %v3805_v17  ;;  %v3659_v30 = vrot.slane %v3658_v13, 2  ;;  %v3497_v4 = vmax.f32 %v3492_v36, %v3493_v18  ;;  %v3921_v41 = vshll.u32 %v8971_v55, 16  ;;  %v8982_v47 = vrot.slane %v8975_v11, %v8048_v12  ;;  %v3807_v17 = vld [vmem:[#allocation3 + $0xc] sm:$0x7] }
 0x315   : > { %v3647_v51 = vrot.slane %v3646_v45, 1  ;;  %v3653_v56 = vmax.f32 %v3651_v20, %v3652_v58  ;;  %v3666_v10 = vrot.slane %v3665_v27, 2 }
 0x316   : > { %v3660_v39 = vmax.f32 %v3658_v13, %v3659_v30  ;;  %v3553_v3 = vcombine.high %v3497_v4, %v3497_v4  ;;  %v3560_v24 = vrot.slane %v3497_v4, %v8048_v12  ;;  %v3932_v59 = vshrl.u32 %v8982_v47, 16 }
 0x317   : > { %v3648_v48 = vmax.f32 %v3646_v45, %v3647_v51  ;;  %v3654_v34 = vrot.slane %v3653_v56, 1  ;;  %v3667_v57 = vmax.f32 %v3665_v27, %v3666_v10  ;;  %v3935_v36 = vshll.u32 %v8982_v47, 16 }
 0x318   : > { %v3661_v0 = vrot.slane %v3660_v39, 1  ;;  %v3567_v53 = vrot.slane %v3553_v3, %v8048_v12  ;;  %v3568_v9 = vcombine.high %v3560_v24, %v3560_v24  ;;  %v3670_v28 = vsel %vm1327_vm8, %v3560_v24, -inf }
 0x319   : > { %v3655_v16 = vmax.f32 %v3653_v56, %v3654_v34  ;;  %v3668_v29 = vrot.slane %v3667_v57, 1  ;;  %v6814_v42 = vpack.c.bf16 %v3648_v48, %v3648_v48  ;;  %v3671_v50 = vrot.slane %v3670_v28, 4 }
 0x31a   : > { %v3662_v7 = vmax.f32 %v3660_v39, %v3661_v0  ;;  %v3569_v14 = vcombine.high %v3567_v53, %v3567_v53  ;;  %v3677_v25 = vsel %vm1327_vm8, %v3568_v9, -inf  ;;  %v3684_v33 = vsel %vm1327_vm8, %v3567_v53, -inf }
 0x31b   : > { %v3669_v61 = vmax.f32 %v3667_v57, %v3668_v29  ;;  %v6815_v46 = vpack.c.bf16 %v3655_v16, %v3655_v16  ;;  %v3770_v35 = vunpack.c.l.b16 %v6814_v42  ;;  %v3672_v19 = vmax.f32 %v3670_v28, %v3671_v50  ;;  %v8989_v43 = vld [vmem:[#allocation3 + $0x8] sm:$0x7] }
 0x31c   : > { %v6816_v26 = vpack.c.bf16 %v3662_v7, %v3662_v7  ;;  %v3678_v5 = vrot.slane %v3677_v25, 4  ;;  %v3685_v40 = vrot.slane %v3684_v33, 4  ;;  %v3691_v49 = vsel %vm1327_vm8, %v3569_v14, -inf }
 0x31d   : > { %v6817_v21 = vpack.c.bf16 %v3669_v61, %v3669_v61  ;;  %v3771_v2 = vunpack.c.l.b16 %v6815_v46  ;;  %v3673_v60 = vrot.slane %v3672_v19, 2  ;;  %v3692_v54 = vrot.slane %v3691_v49, 4 }
 0x31e   : > { %v3772_v52 = vunpack.c.l.b16 %v6816_v26  ;;  %v3679_v38 = vmax.f32 %v3677_v25, %v3678_v5  ;;  %v3686_v22 = vmax.f32 %v3684_v33, %v3685_v40  ;;  %v8998_v27 = vrot.slane %v8989_v43, %v8048_v12 }
 0x31f   : > { %v3773_v37 = vunpack.c.l.b16 %v6817_v21  ;;  %v3784_v1 = vsel %vm533_vm9, %v3771_v2, %v3770_v35  ;;  %v3674_v15 = vmax.f32 %v3672_v19, %v3673_v60  ;;  %v3693_v8 = vmax.f32 %v3691_v49, %v3692_v54 }
 0x320   : > { %v3785_v20 = vsel %vm2098_vm10, %v3772_v52, %v3784_v1  ;;  %v3680_v32 = vrot.slane %v3679_v38, 2  ;;  %v3687_v13 = vrot.slane %v3686_v22, 2  ;;  %v9002_v56 = vcombine.high %v8971_v55, %v8971_v55 }
 0x321   : > { %v3786_v18 = vsel %vm2100_vm11, %v3773_v37, %v3785_v20  ;;  %v3675_v45 = vrot.slane %v3674_v15, 1  ;;  %v3694_v58 = vrot.slane %v3693_v8, 2  ;;  %v3920_v3 = vrot.slane %v3918_v44, 6  ;;  %v3810_v20 = vld [vmem:[#allocation3 + $0x10] sm:$0x7] }
 0x322   : > { %v3792_v30 = vpack.c.b16 %v3786_v18, %v3786_v18  ;;  %v3681_v4 = vmax.f32 %v3679_v38, %v3680_v32  ;;  %v3688_v51 = vmax.f32 %v3686_v22, %v3687_v13  ;;  %v3923_v24 = vrot.slane %v3921_v41, 7 }
 0x323   : > { %v3676_v10 = vmax.f32 %v3674_v15, %v3675_v45  ;;  %v3695_v39 = vmax.f32 %v3693_v8, %v3694_v58  ;;  %v9008_v0 = vcombine.high %v8982_v47, %v8982_v47  ;;  %v3934_v9 = vrot.slane %v3932_v59, 6  ;;  %v3818_v15 = vld [vmem:[#allocation3 + $0x14] sm:$0x7] }
 0x324   : > { %v3808_v48 = vsel %vm8944_vm14, %v3792_v30, %v3807_v17  ;;  %v3682_v34 = vrot.slane %v3681_v4, 1  ;;  %v3689_v57 = vrot.slane %v3688_v51, 1  ;;  %v3937_v28 = vrot.slane %v3935_v36, 7 }
 0x325   : > { %3809 = vst [vmem:[#allocation3 + $0xc] sm:$0x7] %v3808_v48  ;;  %v3696_v53 = vrot.slane %v3695_v39, 1  ;;  %v3946_v16 = vshrl.u32 %v8998_v27, 16  ;;  %v6818_v50 = vpack.c.bf16 %v3676_v10, %v3676_v10  ;;  %v3949_v44 = vshll.u32 %v8998_v27, 16 }
 0x326   : > { %v3683_v29 = vmax.f32 %v3681_v4, %v3682_v34  ;;  %v3690_v42 = vmax.f32 %v3688_v51, %v3689_v57  ;;  %v3924_v25 = vor.u32 %v3923_v24, %v3920_v3  ;;  %v3927_v33 = vshll.u32 %v9002_v56, 16 }
 0x327   : > { %v3697_v41 = vmax.f32 %v3695_v39, %v3696_v53  ;;  %v3938_v46 = vor.u32 %v3937_v28, %v3934_v9  ;;  %v3941_v35 = vshll.u32 %v9008_v0, 16  ;;  %v3948_v19 = vrot.slane %v3946_v16, 6 }
 0x328   : > { %v6819_v7 = vpack.c.bf16 %v3683_v29, %v3683_v29  ;;  %v6820_v14 = vpack.c.bf16 %v3690_v42, %v3690_v42  ;;  %v3774_v26 = vunpack.c.l.b16 %v6818_v50  ;;  %v3951_v49 = vrot.slane %v3949_v44, 7 }
 0x329   : > { %v6821_v61 = vpack.c.bf16 %v3697_v41, %v3697_v41  ;;  %v3830_v54 = vcombine.high %v8998_v27, %v8998_v27  ;;  %v3925_v52 = vrot.slane %v3924_v25, 2  ;;  %v3929_v38 = vrot.slane %v3927_v33, 7 }
 0x32a   : > { %v3775_v5 = vunpack.c.l.b16 %v6819_v7  ;;  %v3776_v40 = vunpack.c.l.b16 %v6820_v14  ;;  %v3939_v1 = vrot.slane %v3938_v46, 2  ;;  %v3943_v32 = vrot.slane %v3941_v35, 7 }
 0x32b   : > { %v3777_v21 = vunpack.c.l.b16 %v6821_v61  ;;  %v3952_v13 = vor.u32 %v3951_v49, %v3948_v19  ;;  %v3930_v58 = vsel %vm9025_vm12, %v3925_v52, %v3929_v38  ;;  %v3955_v30 = vshll.u32 %v3830_v54, 16  ;;  %v7494_v52 = vld [vmem:[#allocation5 + $0xb8] sm:$0xff]  }
 0x32c   : > { %v3787_v2 = vsel %vm533_vm9, %v3775_v5, %v3774_v26  ;;  %v9017_v60 = vld [vmem:[#allocation3 + $0xc] sm:$0x7]  ;;  %v9033_v4 = vrot.slane %v3818_v15, %v8048_v12  ;;  %v9039_v10 = vsel %vm9025_vm12, %v3939_v1, %v3943_v32  ;;  %v3973_v29 = vcombine.low %v8961_v63, %v8975_v11 }
 0x32d   : > { %v3788_v22 = vsel %vm2098_vm10, %v3776_v40, %v3787_v2  ;;  %v3837_v59 = vrot.slane %v9017_v60, %v8048_v12  ;;  %v3953_v48 = vrot.slane %v3952_v13, 2  ;;  %v3991_v57 = vcombine.low %v3930_v58, %v9039_v10  ;;  %vm3855_vm10 = vmor %vm447_vm3, %vm533_vm9  ;;  %v7500_v58 = vld [vmem:[#allocation5 + $0xb0] sm:$0xff]   ;;  %v7521_v40 = vld [vmem:[#allocation5 + $0x148] sm:$0xff]  }
 0x32e   : > { %v3789_v8 = vsel %vm2100_vm11, %v3777_v21, %v3788_v22  ;;  %v9044_v53 = vcombine.high %v9033_v4, %v9033_v4  ;;  %v3957_v62 = vrot.slane %v3955_v30, 7  ;;  %v3974_v16 = vcombine.low %v8989_v43, %v9017_v60  ;;  %vm3857_vm3 = vmor %vm3855_vm10, %vm2100_vm11 }
 0x32f   : > { %v3793_v36 = vpack.c.b16 %v3789_v8, %v3789_v8  ;;  %v3838_v18 = vcombine.high %v3837_v59, %v3837_v59  ;;  %v3960_v17 = vshrl.u32 %v3837_v59, 16  ;;  %v3963_v45 = vshll.u32 %v3837_v59, 16  ;;  %vm9079_vm11 = vmor %vm3857_vm3, %vm2104_vm13 }
 0x330   : > { %v6574_v42 = vrot.slane %v9033_v4, 9  ;;  %v3862_v50 = vrot.slane %v3830_v54, 7  ;;  %v9055_v44 = vsel %vm9025_vm12, %v3953_v48, %v3957_v62  ;;  %v4303_v7 = vcombine.low %v8975_v11, %v8989_v43 }
 0x331   : > { %v3811_v51 = vsel %vm8944_vm14, %v3793_v36, %v3810_v20  ;;  %v3962_v39 = vrot.slane %v3960_v17, 6  ;;  %v3965_v3 = vrot.slane %v3963_v45, 7  ;;  %v3969_v24 = vshll.u32 %v3838_v18, 16 }
 0x332   : > { %3812 = vst [vmem:[#allocation3 + $0x10] sm:$0x7] %v3811_v51  ;;  %v3866_v14 = vrot.slane %v3838_v18, 7  ;;  %v3999_v25 = vrot.slane %v3991_v57, %v8048_v12  ;;  %v3874_v33 = vrot.slane %v9044_v53, 7  ;;  %v9069_v61 = vrot.slane %v3974_v16, %v8048_v12  ;;  %v7499_v57 = vld [vmem:[#allocation5 + $0x138] sm:$0xff]  }
 0x333   : > { %v3966_v34 = vor.u32 %v3965_v3, %v3962_v39  ;;  %v3971_v28 = vrot.slane %v3969_v24, 7  ;;  %v6571_v35 = vrot.slane %v8998_v27, 9  ;;  %v6572_v19 = vrot.slane %v3837_v59, 9  ;;  %v7502_v39 = vld [vmem:[#allocation5 + $0xe8] sm:$0xff]  }
 0x334   : > { %v4291_v26 = vrot.slane %v9008_v0, 7  ;;  %v3981_v21 = vrot.slane %v3973_v29, %v8048_v12  ;;  %v4311_v27 = vrot.slane %v4303_v7, %v8048_v12  ;;  %v6600_v2 = vrot.slane %v8982_v47, 9  ;;  %v7501_v29 = vld [vmem:[#allocation5 + $0x170] sm:$0xff]  }
 0x335   : > { %v3967_v9 = vrot.slane %v3966_v34, 2  ;;  %v3863_v0 = vsel %vm9079_vm11, %v6571_v35, %v3862_v50  ;;  %v3867_v22 = vsel %vm9079_vm11, %v6572_v19, %v3866_v14  ;;  %v3875_v1 = vsel %vm9079_vm11, %v6574_v42, %v3874_v33  ;;  %v7504_v42 = vld [vmem:[#allocation5 + $0xa8] sm:$0xff]   ;;  %v7506_v14 = vld [vmem:[#allocation5 + $0xe0] sm:$0xff]  }
 0x336   : > { %v3989_v59 = vcombine.low %v3981_v21, %v9069_v61  ;;  %v9103_v13 = vsel %vm9079_vm11, %v6600_v2, %v4291_v26  ;;  %v4178_v36 = vcombine.low %v3863_v0, %v3867_v22  ;;  %v4716_v62 = vshrl.u32 %v9033_v4, 16  ;;  %v7508_v33 = vld [vmem:[#allocation5 + $0xa0] sm:$0xff]   ;;  %v7510_v26 = vld [vmem:[#allocation5 + $0xd8] sm:$0xff]   ;;  %v7514_v2 = vld [vmem:[#allocation5 + $0xd0] sm:$0xff]  }
 0x337   : > { %v9059_v41 = vsel %vm9025_vm12, %v3967_v9, %v3971_v28  ;;  %v4525_v18 = vcombine.low %v9103_v13, %v3863_v0  ;;  %v4719_v9 = vshll.u32 %v9033_v4, 16  ;;  %v4725_v0 = vshll.u32 %v9044_v53, 16 }
 0x338   : > { %v3992_v63 = vcombine.low %v9055_v44, %v9059_v41  ;;  %v9111_v3 = vrot.slane %v4178_v36, %v8048_v12  ;;  %v4718_v4 = vrot.slane %v4716_v62, 6  ;;  %v7515_v36 = vld [vmem:[#allocation5 + $0x118] sm:$0xff]   ;;  %v7525_v62 = vld [vmem:[#allocation5 + $0x140] sm:$0xff]   ;;  %vm569_vm13 = vcmask 1041409  }
 0x339   : > { %v3817_v46 = vld [vmem:[#allocation3 + $0x10] sm:$0x7]  ;;  %v4533_v48 = vrot.slane %v4525_v18, %v8048_v12  ;;  %v4721_v19 = vrot.slane %v4719_v9, 7  ;;  %v7520_v18 = vld [vmem:[#allocation5 + $0x88] sm:$0xff]   ;;  %v7528_v9 = vld [vmem:[#allocation5 + $0x1b8] sm:$0xff]  }
 0x33a   : > { %v9074_v11 = vrot.slane %v3992_v63, %v8048_v12  ;;  %v3845_v43 = vrot.slane %v3817_v46, %v8048_v12  ;;  %v4304_v5 = vcombine.low %v9017_v60, %v3817_v46  ;;  %v4729_v49 = vcombine.low %v3817_v46, %v3818_v15  ;;  %v7498_v15 = vld [vmem:[#allocation5 + $0xf0] sm:$0xff]  }
 0x33b   : > { %v7503_v63 = vld [vmem:[#allocation5 + $0x130] sm:$0xff]   ;;  %vm570_vm14 = vsmask.f32 7942  ;;  %vm5088_vm10 = vsmask.f32 1282 }
 0x33c   : > { %v4007_v54 = vcombine.low %v3999_v25, %v9074_v11  ;;  %v9089_v38 = vcombine.high %v3845_v43, %v3845_v43  ;;  %v4318_v60 = vrot.slane %v4304_v5, %v8048_v12  ;;  %v9098_v8 = vrot.slane %v4729_v49, %v8048_v12  ;;  %v7505_v25 = vld [vmem:[#allocation5 + $0x168] sm:$0xff]   ;;  %v7512_v49 = vld [vmem:[#allocation5 + $0x98] sm:$0xff]   ;;  %vm9147_vm15 = vmand %vm569_vm13, %vm570_vm14 }
 0x33d   : > { %v6573_v47 = vrot.slane %v3845_v43, 9  ;;  %v4494_v50 = vshrl.u32 %v3845_v43, 16  ;;  %v4497_v7 = vshll.u32 %v3845_v43, 16  ;;  %v7507_v5 = vld [vmem:[#allocation5 + $0x128] sm:$0xff]   ;;  %v7509_v43 = vld [vmem:[#allocation5 + $0x160] sm:$0xff]   ;;  %vm9220_vm13 = vmand %vm1327_vm8, %vm5088_vm10 }
 0x33e   : > { %4169 = vmatprep.mubr.bf16.mxu1 %v4007_v54  ;;  %v4319_v20 = vcombine.low %v4311_v27, %v4318_v60  ;;  %v3870_v32 = vrot.slane %v9089_v38, 7  ;;  %v4737_v17 = vcombine.low %v9069_v61, %v9098_v8  ;;  %v4722_v27 = vor.u32 %v4721_v19, %v4718_v4  ;;  %v7511_v60 = vld [vmem:[#allocation5 + $0x120] sm:$0xff]   ;;  %v7539_v4 = vld [vmem:[#allocation5 + $0x1c8] sm:$0xff]   ;;  %v563_v61 = vld [vmem:[#allocation4 + $0x4] sm:$0x1] }
 0x33f   : > { %4170 = vmatmul.mubr.bf16.vlgmr.msra.gmra.mxu1 %v3989_v59  ;;  %v4496_v46 = vrot.slane %v4494_v50, 6  ;;  %v4499_v35 = vrot.slane %v4497_v7, 7  ;;  %v4503_v54 = vshll.u32 %v9089_v38, 16  ;;  %v7513_v59 = vld [vmem:[#allocation5 + $0x158] sm:$0xff]   ;;  %v7540_v19 = vld [vmem:[#allocation5 + $0x188] sm:$0xff]  }
 0x340   : > { %7043 = vmatpush3.bf16.msra.mxu1 %v7494_v52  ;;  %4482 = vmatprep.mubr.bf16.mxu1 %v4319_v20  ;;  %v3871_v45 = vsel %vm9079_vm11, %v6573_v47, %v3870_v32  ;;  %v6599_v52 = vrot.slane %v8971_v55, 9  ;;  %v4723_v47 = vrot.slane %v4722_v27, 2  ;;  %v4727_v20 = vrot.slane %v4725_v0, 7  ;;  %v7518_v32 = vld [vmem:[#allocation5 + $0xc8] sm:$0xff]   ;;  %v7517_v55 = vld [vmem:[#allocation5 + $0x150] sm:$0xff]  }
 0x341   : > { %v4179_v30 = vcombine.low %v3871_v45, %v3875_v1  ;;  %7044 = vmatprep.subr.bf16.mxu1 %v7498_v15  ;;  %v4526_v51 = vcombine.low %v3867_v22, %v3871_v45  ;;  %v4500_v21 = vor.u32 %v4499_v35, %v4496_v46  ;;  %v4287_v22 = vrot.slane %v9002_v56, 7  ;;  %v7516_v1 = vld [vmem:[#allocation5 + $0x90] sm:$0xff]   ;;  %v575_v27 = vld [vmem:[#allocation4 + $0x2] sm:$0x2]  ;;  %v578_v8 = vld [vmem:[#allocation4 + $0x4] sm:$0x2] }
 0x342   : > { %v4505_v53 = vrot.slane %v4503_v54, 7  ;;  %v4728_v45 = vsel %vm9025_vm12, %v4723_v47, %v4727_v20  ;;  %v7537_v46 = vld [vmem:[#allocation5 + $0x1d0] sm:$0xff]   ;;  %v576_v0 = vsel %vm9147_vm15, 0, %v575_v27  ;;  %v7543_v54 = vld [vmem:[%s9358_s10 + $0x38] sm:$0xff]   ;;  %v7549_v47 = vld [vmem:[%s9358_s10 + $0x28] sm:$0xff]  }
 0x343   : > { %v4193_v24 = vrot.slane %v4179_v30, %v8048_v12  ;;  %v4540_v34 = vrot.slane %v4526_v51, %v8048_v12  ;;  %v4501_v15 = vrot.slane %v4500_v21, 2  ;;  %v4288_v38 = vsel %vm9079_vm11, %v6599_v52, %v4287_v22  ;;  %v7519_v51 = vld [vmem:[#allocation5 + $0x110] sm:$0xff]   ;;  %577 = vst [vmem:[#allocation4 + $0x2] sm:$0x2] %v576_v0  ;;  %v7544_v52 = vld [vmem:[#allocation8 + $0x78] sm:$0xff]   ;;  %v7551_v20 = vld [vmem:[#allocation8 + $0x28] sm:$0xff]  }
 0x344   : > { %7045 = vmatpush3.bf16.msra.mxu1 %v7500_v58  ;;  %v7522_v58 = vld [vmem:[#allocation5 + $0xc0] sm:$0xff]   ;;  %v4293_v30 = vcombine.low %v4288_v38, %v9103_v13  ;;  %v7538_v35 = vld [vmem:[#allocation5 + $0x190] sm:$0xff]   ;;  %v581_v38 = vld [vmem:[#allocation4 + $0x6] sm:$0x2]  ;;  %vm5156_vm11 = vsmask.f32 3340 }
 0x345   : > { %v4194_v28 = vcombine.low %v9111_v3, %v4193_v24  ;;  %v4541_v16 = vcombine.low %v4533_v48, %v4540_v34  ;;  %7046 = vmatprep.subr.bf16.mxu1 %v7502_v39  ;;  %v4506_v56 = vsel %vm9025_vm12, %v4501_v15, %v4505_v53  ;;  %v7524_v24 = vld [vmem:[#allocation5 + $0x80] sm:$0xff]   ;;  %v7527_v48 = vld [vmem:[#allocation5 + $0x1f8] sm:$0xff]   ;;  %v7523_v34 = vld [vmem:[#allocation5 + $0x108] sm:$0xff]   ;;  %vm5154_vm12 = vsmask.f32 2312 }
 0x346   : > { %v4739_v39 = vcombine.low %v4506_v56, %v4728_v45  ;;  %v4508_v13 = vcombine.low %v9059_v41, %v4506_v56  ;;  %v7531_v41 = vld [vmem:[#allocation5 + $0x1e8] sm:$0xff]   ;;  %v7547_v22 = vld [vmem:[#allocation8 + $0x70] sm:$0xff]   ;;  %v566_v53 = vld [vmem:[#allocation4 + $0x6] sm:$0x1] }
 0x347   : > { %7280 = vmatmul.mubr.bf16.vlgmr.msra.gmra.mxu0 %v4194_v28  ;;  %v7550_v15 = vld [vmem:[#allocation8 + $0x68] sm:$0xff]   ;;  %v7554_v56 = vld [vmem:[#allocation8 + $0x20] sm:$0xff]   ;;  %v7556_v45 = vld [vmem:[#allocation8 + $0x58] sm:$0xff]  }
 0x348   : > { %7065 = vmatpush3.bf16.msra.mxu0 %v7499_v57  ;;  %4704 = vmatprep.mubr.bf16.mxu0 %v4541_v16  ;;  %v4300_v57 = vrot.slane %v4293_v30, %v8048_v12  ;;  %v4746_v37 = vrot.slane %v4739_v39, %v8048_v12  ;;  %v7529_v16 = vld [vmem:[#allocation5 + $0x1f0] sm:$0xff]   ;;  %v4522_v7 = vrot.slane %v4508_v13, %v8048_v12  ;;  %v7557_v30 = vld [vmem:[#allocation8 + $0x18] sm:$0xff]   ;;  %vm5155_vm3 = vmor %vm5153_vm5, %vm5154_vm12 }
 0x349   : > { %7066 = vmatprep.subr.bf16.mxu0 %v7501_v29  ;;  %7047 = vmatpush3.bf16.msra.mxu1 %v7504_v42  ;;  %v4507_v29 = vcombine.low %v9039_v10, %v9055_v44  ;;  %v7526_v42 = vld [vmem:[#allocation5 + $0x100] sm:$0xff]   ;;  %v557_v39 = vld [vmem:[#allocation4] sm:$0x1]  ;;  %vm5157_vm14 = vmor %vm5155_vm3, %vm5156_vm11 }
 0x34a   : > { %7048 = vmatprep.subr.bf16.mxu1 %v7506_v14  ;;  %v4301_v28 = vcombine.low %v4300_v57, %v9111_v3  ;;  %v4747_v50 = vcombine.low %v9074_v11, %v4746_v37  ;;  %v7530_v14 = vld [vmem:[#allocation5 + $0x1b0] sm:$0xff]   ;;  %v7533_v10 = vld [vmem:[#allocation5 + $0x1e0] sm:$0xff]   ;;  %v7535_v11 = vld [vmem:[#allocation5 + $0x1d8] sm:$0xff]  }
 0x34b   : > { %v4515_v3 = vrot.slane %v4507_v29, %v8048_v12  ;;  %v7534_v44 = vld [vmem:[#allocation5 + $0x1a0] sm:$0xff]   ;;  %v7560_v37 = vld [vmem:[#allocation8 + $0x10] sm:$0xff]  }
 0x34c   : > { %7067 = vmatpush3.bf16.msra.mxu0 %v7503_v63  ;;  %v7565_v29 = vld [vmem:[#allocation8 + $0x40] sm:$0xff]  }
 0x34d   : > { %7068 = vmatprep.subr.bf16.mxu0 %v7505_v25  ;;  %7049 = vmatpush3.bf16.msra.mxu1 %v7508_v33  ;;  %v4523_v63 = vcombine.low %v4515_v3, %v4522_v7  ;;  %v7532_v25 = vld [vmem:[#allocation5 + $0x1a8] sm:$0xff]   ;;  %v7536_v33 = vld [vmem:[#allocation5 + $0x198] sm:$0xff]  }
 0x34e   : > { %7050 = vmatprep.subr.bf16.mxu1 %v7510_v26  ;;  %v7541_v26 = vld [vmem:[#allocation5 + $0x1c0] sm:$0xff]   ;;  %v7567_v7 = vld [vmem:[#allocation8 + $0x178] sm:$0xff]  }
 0x350   : > { %7069 = vmatpush3.bf16.msra.mxu0 %v7507_v5  ;;  %v7542_v5 = vld [vmem:[#allocation5 + $0x180] sm:$0xff]  }
 0x351   : > { %7070 = vmatprep.subr.bf16.mxu0 %v7509_v43  ;;  %7051 = vmatpush3.bf16.msra.mxu1 %v7512_v49  ;;  %v560_v43 = vld [vmem:[#allocation4 + $0x2] sm:$0x1] }
 0x352   : > { %7052 = vmatprep.subr.bf16.mxu1 %v7514_v2  ;;  %v561_v49 = vsel %vm7954_vm7, 0, %v560_v43  ;;  %v579_v2 = vsel %vm9147_vm15, 0, %v578_v8 }
 0x353   : > { %562 = vst [vmem:[#allocation4 + $0x2] sm:$0x1] %v561_v49  ;;  %580 = vst [vmem:[#allocation4 + $0x4] sm:$0x2] %v579_v2 }
 0x354   : > { %7071 = vmatpush3.bf16.msra.mxu0 %v7511_v60  ;;  %v7545_v60 = vld [vmem:[#allocation8 + $0x38] sm:$0xff]  }
 0x355   : > { %7072 = vmatprep.subr.bf16.mxu0 %v7513_v59  ;;  %7053 = vmatpush3.bf16.msra.mxu1 %v7516_v1  ;;  %v7546_v59 = vld [vmem:[%s9358_s10 + $0x30] sm:$0xff]   ;;  %v7548_v1 = vld [vmem:[#allocation8 + $0x30] sm:$0xff]  }
 0x356   : > { %7054 = vmatprep.subr.bf16.mxu1 %v7518_v32  ;;  %v7553_v32 = vld [vmem:[#allocation8 + $0x60] sm:$0xff]  }
 0x358   : > { %7073 = vmatpush3.bf16.msra.mxu0 %v7515_v36  ;;  %v567_v36 = vsel %vm7954_vm7, 0, %v566_v53 }
 0x359   : > { %7074 = vmatprep.subr.bf16.mxu0 %v7517_v55  ;;  %7055 = vmatpush3.bf16.msra.mxu1 %v7520_v18  ;;  %v7552_v55 = vld [vmem:[%s9358_s10 + $0x20] sm:$0xff]   ;;  %568 = vst [vmem:[#allocation4 + $0x6] sm:$0x1] %v567_v36  ;;  %v582_v18 = vsel %vm9147_vm15, 0, %v581_v38 }
 0x35a   : > { %7056 = vmatprep.subr.bf16.mxu1 %v7522_v58  ;;  %583 = vst [vmem:[#allocation4 + $0x6] sm:$0x2] %v582_v18  ;;  %v7555_v58 = vld [vmem:[%s9358_s10 + $0x18] sm:$0xff]  }
 0x35c   : > { %7075 = vmatpush3.bf16.msra.mxu0 %v7519_v51  ;;  %v7559_v51 = vld [vmem:[#allocation8 + $0x50] sm:$0xff]  }
 0x35d   : > { %7076 = vmatprep.subr.bf16.mxu0 %v7521_v40  ;;  %7057 = vmatpush3.bf16.msra.mxu1 %v7524_v24  ;;  %v572_v40 = vld [vmem:[#allocation4] sm:$0x2] }
 0x35e   : > { %7086 = vmatprep.subr.bf16.mxu1 %v7527_v48  ;;  %v7558_v48 = vld [vmem:[%s9358_s10 + $0x10] sm:$0xff]   ;;  %v573_v57 = vsel %vm9147_vm15, 0, %v572_v40  ;;  %vm5158_vm15 = vsmask.f32 4368 }
 0x35f   : > { %574 = vst [vmem:[#allocation4] sm:$0x2] %v573_v57 }
 0x360   : > { %7077 = vmatpush3.bf16.msra.mxu0 %v7523_v34  ;;  %4483 = vmatmul.mubr.bf16.vlgmr.msra.gmra.mxu1 %v4301_v28  ;;  %v558_v34 = vsel %vm7954_vm7, 0, %v557_v39  ;;  %v7561_v28 = vld [vmem:[%s9358_s10 + $0x8] sm:$0xff]  }
 0x361   : > { %7078 = vmatprep.subr.bf16.mxu0 %v7525_v62  ;;  %7087 = vmatpush3.bf16.msra.mxu1 %v7528_v9  ;;  %559 = vst [vmem:[#allocation4] sm:$0x1] %v558_v34  ;;  %v7562_v9 = vld [vmem:[#allocation8 + $0x48] sm:$0xff]  }
 0x362   : > { %4910 = vmatprep.mubr.bf16.mxu1 %v4747_v50  ;;  %7088 = vmatprep.subr.bf16.mxu1 %v7529_v16  ;;  %v7566_v50 = vld [vmem:[#allocation8] sm:$0xff]  }
 0x364   : > { %7079 = vmatpush3.bf16.msra.mxu0 %v7526_v42  ;;  %v7564_v42 = vld [vmem:[%s9358_s10] sm:$0xff]  }
 0x365   : > { %7089 = vmatpush3.bf16.msra.mxu1 %v7530_v14  ;;  %7108 = vmatprep.subr.bf16.mxu0 %v7544_v52  ;;  %v7569_v14 = vld [vmem:[#allocation8 + $0xf8] sm:$0xff]  }
 0x366   : > { %7090 = vmatprep.subr.bf16.mxu1 %v7531_v41 }
 0x367   : > { %4705 = vmatmul.mubr.bf16.vlgmr.msra.gmra.mxu0 %v4523_v63 }
 0x368   : > { %7109 = vmatpush3.bf16.msra.mxu0 %v7545_v60  ;;  %v6649_v60 = vld [vmem:[%s9356_s8] ss:$0 sm:$0xff] }
 0x369   : > { %7091 = vmatpush3.bf16.msra.mxu1 %v7532_v25  ;;  %7110 = vmatprep.subr.bf16.mxu0 %v7547_v22 }
 0x36a   : > { %7092 = vmatprep.subr.bf16.mxu1 %v7533_v10 }
 0x36c   : > { %7111 = vmatpush3.bf16.msra.mxu0 %v7548_v1 }
 0x36d   : > { %7093 = vmatpush3.bf16.msra.mxu1 %v7534_v44  ;;  %7112 = vmatprep.subr.bf16.mxu0 %v7550_v15 }
 0x36e   : > { %7094 = vmatprep.subr.bf16.mxu1 %v7535_v11 }
 0x370   : > { %7113 = vmatpush3.bf16.msra.mxu0 %v7551_v20 }
 0x371   : > { %7095 = vmatpush3.bf16.msra.mxu1 %v7536_v33  ;;  %7114 = vmatprep.subr.bf16.mxu0 %v7553_v32 }
 0x372   : > { %7096 = vmatprep.subr.bf16.mxu1 %v7537_v46 }
 0x374   : > { %7115 = vmatpush3.bf16.msra.mxu0 %v7554_v56 }
 0x375   : > { %7097 = vmatpush3.bf16.msra.mxu1 %v7538_v35  ;;  %7116 = vmatprep.subr.bf16.mxu0 %v7556_v45 }
 0x376   : > { %7098 = vmatprep.subr.bf16.mxu1 %v7539_v4 }
 0x378   : > { %7117 = vmatpush3.bf16.msra.mxu0 %v7557_v30 }
 0x379   : > { %7099 = vmatpush3.bf16.msra.mxu1 %v7540_v19  ;;  %7118 = vmatprep.subr.bf16.mxu0 %v7559_v51 }
 0x37a   : > { %7100 = vmatprep.subr.bf16.mxu1 %v7541_v26 }
 0x37c   : > { %7119 = vmatpush3.bf16.msra.mxu0 %v7560_v37 }
 0x37d   : > { %7101 = vmatpush3.bf16.msra.mxu1 %v7542_v5  ;;  %7120 = vmatprep.subr.bf16.mxu0 %v7562_v9 }
 0x37e   : > { %7283 = vmatprep.subr.bf16.mxu1 %v7745_v31 }
 0x380   : > { %4911 = vmatmul.mubr.bf16.vlgmr.msra.gmra.mxu1 %v4737_v17  ;;  %v564_v17 = vsel %vm7954_vm7, 0, %v563_v61  ;;  %7121 = vmatpush3.bf16.msra.mxu0 %v7563_v23  ;;  %vm9397_vm7 = vcmask 1043456  }
 0x381   : > { %7299 = vmatprep.mubr.msk.bf16.mxu1 %vm7746_vm6, %v7745_v31  ;;  %565 = vst [vmem:[#allocation4 + $0x4] sm:$0x1] %v564_v17  ;;  %7284 = vmatpush3.bf16.msra.mxu1 %v7543_v54  ;;  %vm9398_vm6 = vmmov %vm9397_vm7 }
 0x382   : > { %7285 = vmatprep.subr.bf16.mxu1 %v7745_v31  ;;  %7122 = vmatprep.subr.bf16.mxu0 %v7565_v29  ;;  %vm9399_vm1 = vmmov %vm9398_vm6 }
 0x383   : > { %vm9400_vm4 = vmmov %vm9399_vm1 }
 0x384   : > { %7123 = vmatpush3.bf16.msra.mxu0 %v7566_v50 }
 0x385   : > { %7286 = vmatpush3.bf16.msra.mxu1 %v7546_v59  ;;  %7139 = vmatprep.subr.bf16.mxu0 %v7569_v14 }
 0x386   : > { %7287 = vmatprep.subr.bf16.mxu1 %v7745_v31 }
 0x389   : > { %7288 = vmatpush3.bf16.msra.mxu1 %v7549_v47 }
 0x38a   : > { %7289 = vmatprep.subr.bf16.mxu1 %v7745_v31 }
 0x38d   : > { %7290 = vmatpush3.bf16.msra.mxu1 %v7552_v55 }
 0x38e   : > { %7291 = vmatprep.subr.bf16.mxu1 %v7745_v31 }
 0x391   : > { %7292 = vmatpush3.bf16.msra.mxu1 %v7555_v58 }
 0x392   : > { %7293 = vmatprep.subr.bf16.mxu1 %v7745_v31 }
 0x395   : > { %7294 = vmatpush3.bf16.msra.mxu1 %v7558_v48 }
 0x396   : > { %7295 = vmatprep.subr.bf16.mxu1 %v7745_v31 }
 0x399   : > { %7296 = vmatpush3.bf16.msra.mxu1 %v7561_v28 }
 0x39a   : > { %7297 = vmatprep.subr.bf16.mxu1 %v7745_v31 }
 0x39d   : > { %7298 = vmatpush3.bf16.msra.mxu1 %v7564_v42 }
 0x39e   : > { %7161 = vmatprep.subr.bf16.mxu1 %v7567_v7 }
 0x3ff   : > { %v7027_v41 = vpop.f32.mrf.mxu1 }
 0x401   : > { %v7028_v3 = vpop.f32.mrf.mxu1 }
 0x402   : > { %v7029_v35 = vadd.f32 %v7028_v3, %v7027_v41 }
 0x403   : > { %v7030_v63 = vpop.f32.mrf.mxu1 }
 0x405   : > { %v7031_v25 = vpop.f32.mrf.mxu1 }
 0x406   : > { %v7032_v5 = vadd.f32 %v7031_v25, %v7030_v63 }
 0x407   : > { %v4278_v24 = vpop.f32.mrf.mxu0 }
 0x408   : > { %v4279_v26 = vadd.f32 %v7029_v35, %v4278_v24 }
 0x409   : > { %v7281_v62 = vpop.f32.mrf.mxu0 }
 0x40b   : > { %v4281_v13 = vpop.f32.mrf.mxu0 }
 0x40c   : > { %v4282_v61 = vadd.f32 %v7032_v5, %v4281_v13 }
 0x40d   : > { %v7282_v16 = vpop.f32.mrf.mxu0 }
 0x420   : > { %v7058_v10 = vpop.f32.mrf.mxu1 }
 0x422   : > { %v7059_v44 = vpop.f32.mrf.mxu1 }
 0x423   : > { %v7060_v4 = vadd.f32 %v7059_v44, %v7058_v10 }
 0x424   : > { %v7061_v33 = vpop.f32.mrf.mxu1 }
 0x425   : > { %v4491_v43 = vadd.f32 %v7060_v4, %v4279_v26 }
 0x426   : > { %v7062_v31 = vpop.f32.mrf.mxu1 }
 0x427   : > { %v7080_v11 = vpop.f32.mrf.mxu0  ;;  %v7063_v21 = vadd.f32 %v7062_v31, %v7061_v33 }
 0x429   : > { %v7081_v46 = vpop.f32.mrf.mxu0  ;;  %v4492_v2 = vadd.f32 %v7063_v21, %v4282_v61 }
 0x42a   : > { %v7082_v49 = vadd.f32 %v7081_v46, %v7080_v11 }
 0x42b   : > { %v7083_v19 = vpop.f32.mrf.mxu0 }
 0x42c   : > { %v4713_v17 = vadd.f32 %v7082_v49, %v4491_v43 }
 0x42d   : > { %v7084_v27 = vpop.f32.mrf.mxu0 }
 0x42e   : > { %v7085_v54 = vadd.f32 %v7084_v27, %v7083_v19 }
 0x430   : > { %v4714_v15 = vadd.f32 %v7085_v54, %v4492_v2 }
 0x440   : > { %v7102_v0 = vpop.f32.mrf.mxu1 }
 0x442   : > { %v7103_v8 = vpop.f32.mrf.mxu1 }
 0x443   : > { %v7104_v52 = vadd.f32 %v7103_v8, %v7102_v0  ;;  %v7747_v8 = vmov 1966171168  }
 0x444   : > { %v7105_v22 = vpop.f32.mrf.mxu1 }
 0x445   : > { %v4919_v59 = vadd.f32 %v7104_v52, %v4713_v17  ;;  %v5103_v17 = vunpack.c.l.s4 %v7747_v8  ;;  %v7573_v8 = vld [vmem:[#allocation8 + $0xf0] sm:$0xff]  }
 0x446   : > { %v7106_v1 = vpop.f32.mrf.mxu1 }
 0x447   : > { %v4928_v47 = vadd.f32 %v6649_v60, %v4919_v59  ;;  %v7107_v20 = vadd.f32 %v7106_v1, %v7105_v22 }
 0x449   : > { %v4930_v32 = vmax.f32 %v4928_v47, 0.0  ;;  %v4920_v53 = vadd.f32 %v7107_v20, %v4714_v15  ;;  %v5104_v15 = vunpack.c.0.s8 %v5103_v17 }
 0x44b   : > { %v4934_v36 = vcombine.high %v4930_v32, %v4930_v32  ;;  %v4929_v38 = vadd.f32 %v6649_v60, %v4920_v53  ;;  %v4938_v55 = vsel %vm9397_vm7, %v4930_v32, -inf  ;;  %vm5159_vm7 = vmor %vm5157_vm14, %vm5158_vm15 }
 0x44d   : > { %v4939_v18 = vsel %vm9398_vm6, %v4934_v36, -inf  ;;  %v4931_v56 = vmax.f32 %v4929_v38, 0.0  ;;  %vm5160_vm6 = vsmask.f32 5396 }
 0x44e   : > { %v4940_v45 = vmax.f32 %v4938_v55, %v4939_v18 }
 0x44f   : > { %v4935_v58 = vcombine.high %v4931_v56, %v4931_v56  ;;  %v4941_v51 = vsel %vm9399_vm1, %v4931_v56, -inf  ;;  %v5090_v56 = vld [vmem:[#allocation4 + $0x2] sm:$0x3]  ;;  %vm5161_vm1 = vmor %vm5159_vm7, %vm5160_vm6 }
 0x450   : > { %v4952_v30 = vrot.slane %v4940_v45, %v8048_v12  ;;  %v9225_v45 = vsub.s32 %v5104_v15, %v8044_v6  ;;  %v5093_v6 = vld [vmem:[#allocation4 + $0x4] sm:$0x3]  ;;  %v7581_v15 = vld [vmem:[#allocation8 + $0xe0] sm:$0xff]  }
 0x451   : > { %v4942_v39 = vsel %vm9400_vm4, %v4935_v58, -inf  ;;  %vm5162_vm4 = vsmask.f32 6424 }
 0x452   : > { %v4953_v40 = vcombine.high %v4952_v30, %v4952_v30  ;;  %v4966_v24 = vsel %vm1327_vm8, %v4952_v30, -inf  ;;  %v4943_v48 = vmax.f32 %v4941_v51, %v4942_v39  ;;  %v5096_v51 = vld [vmem:[#allocation4] sm:$0x3] }
 0x453   : > { %v4967_v34 = vrot.slane %v4966_v24, 4 }
 0x454   : > { %v4973_v57 = vsel %vm1327_vm8, %v4953_v40, -inf  ;;  %v4960_v37 = vrot.slane %v4943_v48, %v8048_v12 }
 0x455   : > { %v4968_v62 = vmax.f32 %v4966_v24, %v4967_v34  ;;  %v4974_v9 = vrot.slane %v4973_v57, 4  ;;  %v9232_v34 = vrot.slane %v5096_v51, %v9225_v45 }
 0x456   : > { %v4961_v13 = vcombine.high %v4960_v37, %v4960_v37  ;;  %v4980_v28 = vsel %vm1327_vm8, %v4960_v37, -inf }
 0x457   : > { %v4969_v23 = vrot.slane %v4968_v62, 2  ;;  %v4975_v16 = vmax.f32 %v4973_v57, %v4974_v9  ;;  %v4981_v29 = vrot.slane %v4980_v28, 4  ;;  %v9239_v9 = vld [vmem:[#allocation4 + $0x6] sm:$0x3] }
 0x458   : > { %v4987_v42 = vsel %vm1327_vm8, %v4961_v13, -inf }
 0x459   : > { %v4970_v50 = vmax.f32 %v4968_v62, %v4969_v23  ;;  %v4976_v7 = vrot.slane %v4975_v16, 2  ;;  %v4982_v14 = vmax.f32 %v4980_v28, %v4981_v29  ;;  %v4988_v41 = vrot.slane %v4987_v42, 4  ;;  %v7599_v29 = vld [vmem:[#allocation8 + $0x1f8] sm:$0xff]  }
 0x45a   : > { %v5143_v62 = vcombine.high %v9232_v34, %v9232_v34  ;;  %v5167_v28 = vshrl.u32 %v9232_v34, 16 }
 0x45b   : > { %v4971_v3 = vrot.slane %v4970_v50, 1  ;;  %v4977_v63 = vmax.f32 %v4975_v16, %v4976_v7  ;;  %v4983_v25 = vrot.slane %v4982_v14, 2  ;;  %v4989_v10 = vmax.f32 %v4987_v42, %v4988_v41 }
 0x45c   : > { %v5172_v23 = vshll.u32 %v5143_v62, 16  ;;  %v9251_v42 = vrot.slane %v9239_v9, %v9225_v45  ;;  %v7592_v62 = vld [vmem:[#allocation8 + $0x108] sm:$0xff]  }
 0x45d   : > { %v4972_v44 = vmax.f32 %v4970_v50, %v4971_v3  ;;  %v4978_v11 = vrot.slane %v4977_v63, 1  ;;  %v4984_v33 = vmax.f32 %v4982_v14, %v4983_v25  ;;  %v4990_v46 = vrot.slane %v4989_v10, 2 }
 0x45e   : > { %v5117_v18 = vcombine.high %v9251_v42, %v9251_v42 }
 0x45f   : > { %v4979_v35 = vmax.f32 %v4977_v63, %v4978_v11  ;;  %v4994_v4 = vpack.c.bf16 %v4972_v44, %v4972_v44  ;;  %v4985_v31 = vrot.slane %v4984_v33, 1  ;;  %v4991_v19 = vmax.f32 %v4989_v10, %v4990_v46 }
 0x461   : > { %v4995_v26 = vpack.c.bf16 %v4979_v35, %v4979_v35  ;;  %v5008_v5 = vrot.slane %v4994_v4, %v8048_v12  ;;  %v4986_v43 = vmax.f32 %v4984_v33, %v4985_v31  ;;  %v4992_v49 = vrot.slane %v4991_v19, 1  ;;  %v7568_v31 = vld [vmem:[#allocation8 + $0x138] sm:$0xff]  }
 0x463   : > { %v5015_v21 = vrot.slane %v4995_v26, %v8048_v12  ;;  %v5036_v27 = vrot.slane %v5008_v5, %v8048_v12  ;;  %v4993_v0 = vmax.f32 %v4991_v19, %v4992_v49  ;;  %v4996_v61 = vpack.c.bf16 %v4986_v43, %v4986_v43 }
 0x465   : > { %v5043_v2 = vrot.slane %v5015_v21, %v8048_v12  ;;  %v5058_v54 = vunpack.c.l.b16 %v5036_v27  ;;  %v4997_v52 = vpack.c.bf16 %v4993_v0, %v4993_v0  ;;  %v5022_v60 = vrot.slane %v4996_v61, %v8048_v12  ;;  %v7570_v27 = vld [vmem:[#allocation8 + $0xb8] sm:$0xff]   ;;  %v7571_v61 = vld [vmem:[#allocation8 + $0x170] sm:$0xff]  }
 0x467   : > { %v5059_v22 = vunpack.c.l.b16 %v5043_v2  ;;  %v5029_v59 = vrot.slane %v4997_v52, %v8048_v12  ;;  %v5050_v1 = vrot.slane %v5022_v60, %v8048_v12  ;;  %v5062_v47 = vrot.slane %v5058_v54, 7  ;;  %v7572_v2 = vld [vmem:[#allocation8 + $0x130] sm:$0xff]   ;;  %v7575_v54 = vld [vmem:[#allocation8 + $0x168] sm:$0xff]  }
 0x468   : > { %v7574_v52 = vld [vmem:[#allocation8 + $0xb0] sm:$0xff]   ;;  %v7577_v60 = vld [vmem:[#allocation8 + $0xe8] sm:$0xff]  }
 0x469   : > { %v5063_v20 = vrot.slane %v5059_v22, 6  ;;  %v5057_v32 = vrot.slane %v5029_v59, %v8048_v12  ;;  %v5060_v53 = vunpack.c.l.b16 %v5050_v1  ;;  %v7576_v22 = vld [vmem:[#allocation8 + $0x128] sm:$0xff]   ;;  %v7579_v59 = vld [vmem:[#allocation8 + $0x160] sm:$0xff]  }
 0x46a   : > { %v7578_v1 = vld [vmem:[#allocation8 + $0xa8] sm:$0xff]  }
 0x46b   : > { %v5064_v36 = vsel %vm533_vm9, %v5063_v20, %v5062_v47  ;;  %v5061_v38 = vunpack.c.l.b16 %v5057_v32  ;;  %v5065_v58 = vrot.slane %v5060_v53, 7  ;;  %v7580_v47 = vld [vmem:[#allocation8 + $0x120] sm:$0xff]   ;;  %v7583_v20 = vld [vmem:[#allocation8 + $0x158] sm:$0xff]  }
 0x46c   : > { %v5068_v55 = vpack.c.b16 %v5064_v36, %v5064_v36  ;;  %v7582_v53 = vld [vmem:[#allocation8 + $0xa0] sm:$0xff]   ;;  %v7585_v36 = vld [vmem:[#allocation8 + $0xd8] sm:$0xff]  }
 0x46d   : > { %v5066_v30 = vrot.slane %v5061_v38, 6  ;;  %v7584_v38 = vld [vmem:[#allocation8 + $0x118] sm:$0xff]  }
 0x46e   : > { %v5076_v39 = vrot.slane %v5068_v55, %v8048_v12  ;;  %v7587_v55 = vld [vmem:[#allocation8 + $0x150] sm:$0xff]  }
 0x46f   : > { %v5067_v40 = vsel %vm533_vm9, %v5066_v30, %v5065_v58  ;;  %vm5163_vm9 = vmor %vm5161_vm1, %vm5162_vm4  ;;  %v7586_v58 = vld [vmem:[#allocation8 + $0x98] sm:$0xff]   ;;  %v7589_v30 = vld [vmem:[#allocation8 + $0xd0] sm:$0xff]  }
 0x470   : > { %v5091_v24 = vsel %vm9220_vm13, %v5076_v39, %v5090_v56  ;;  %v5069_v48 = vpack.c.b16 %v5067_v40, %v5067_v40  ;;  %vm9245_vm0 = vmor %vm5163_vm9, %vm5164_vm2  ;;  %v7588_v39 = vld [vmem:[#allocation8 + $0x110] sm:$0xff]   ;;  %v7591_v40 = vld [vmem:[#allocation8 + $0x148] sm:$0xff]  }
 0x471   : > { %5092 = vst [vmem:[#allocation4 + $0x2] sm:$0x3] %v5091_v24  ;;  %v5174_v14 = vsel %vm9245_vm0, %v5167_v28, %v5172_v23  ;;  %v5902_v24 = vshrl.u32 %v9251_v42, 16  ;;  %v7595_v28 = vld [vmem:[#allocation8 + $0x140] sm:$0xff]  }
 0x472   : > { %v5083_v57 = vrot.slane %v5069_v48, %v8048_v12  ;;  %v5907_v48 = vshll.u32 %v5117_v18, 16 }
 0x474   : > { %v5094_v37 = vsel %vm9220_vm13, %v5083_v57, %v5093_v6  ;;  %v7590_v57 = vld [vmem:[#allocation8 + $0x90] sm:$0xff]   ;;  %v5909_v23 = vsel %vm9245_vm0, %v5902_v24, %v5907_v48 }
 0x475   : > { %5095 = vst [vmem:[#allocation4 + $0x4] sm:$0x3] %v5094_v37  ;;  %v7593_v37 = vld [vmem:[#allocation8 + $0xc8] sm:$0xff]  }
 0x478   : > { %v5097_v13 = vld [vmem:[#allocation4 + $0x2] sm:$0x3] }
 0x479   : > { %v9243_v16 = vrot.slane %v5097_v13, %v9225_v45  ;;  %v5184_v25 = vcombine.low %v5096_v51, %v5097_v13 }
 0x47b   : > { %v5151_v50 = vcombine.high %v9243_v16, %v9243_v16  ;;  %v5176_v3 = vshrl.u32 %v9243_v16, 16  ;;  %v5191_v4 = vrot.slane %v5184_v25, %v9225_v45  ;;  %v7598_v25 = vld [vmem:[#allocation8 + $0x80] sm:$0xff]  }
 0x47c   : > { %v9255_v7 = vld [vmem:[#allocation4 + $0x4] sm:$0x3] }
 0x47d   : > { %v9261_v41 = vrot.slane %v9255_v7, %v9225_v45  ;;  %v5181_v63 = vshll.u32 %v5151_v50, 16  ;;  %v5504_v10 = vcombine.low %v5097_v13, %v9255_v7  ;;  %v5198_v0 = vrot.slane %v5191_v4, %v9225_v45  ;;  %v7594_v50 = vld [vmem:[#allocation8 + $0x88] sm:$0xff]  }
 0x47e   : > { %v7603_v4 = vld [vmem:[#allocation8 + $0x1e8] sm:$0xff]  }
 0x47f   : > { %v6668_v44 = vcombine.high %v9261_v41, %v9251_v42  ;;  %v9269_v11 = vsel %vm9245_vm0, %v5176_v3, %v5181_v63  ;;  %v6695_v46 = vcombine.high %v9243_v16, %v9261_v41  ;;  %v5511_v5 = vrot.slane %v5504_v10, %v9225_v45  ;;  %v7597_v42 = vld [vmem:[#allocation8 + $0xc0] sm:$0xff]  }
 0x480   : > { %v5200_v33 = vcombine.low %v5174_v14, %v9269_v11  ;;  %v5109_v32 = vcombine.high %v9261_v41, %v9261_v41  ;;  %v5691_v51 = vshrl.u32 %v9261_v41, 16  ;;  %v6677_v14 = vcombine.high %v9232_v34, %v9243_v16  ;;  %v7596_v41 = vld [vmem:[#allocation8 + $0x100] sm:$0xff]   ;;  %v7601_v16 = vld [vmem:[#allocation8 + $0x1f0] sm:$0xff]  }
 0x481   : > { %v5391_v35 = vrot.slane %v6668_v44, %v9225_v45  ;;  %v5722_v26 = vrot.slane %v6695_v46, %v9225_v45  ;;  %v5518_v17 = vrot.slane %v5511_v5, %v9225_v45  ;;  %v7607_v5 = vld [vmem:[#allocation8 + $0x1d8] sm:$0xff]  }
 0x482   : > { %v5207_v19 = vrot.slane %v5200_v33, %v9225_v45  ;;  %v5696_v56 = vshll.u32 %v5109_v32, 16  ;;  %v5495_v10 = vrot.slane %v6677_v14, %v9225_v45  ;;  %v7600_v33 = vld [vmem:[#allocation8 + $0x1b8] sm:$0xff]  }
 0x483   : > { %v5398_v43 = vrot.slane %v5391_v35, %v9225_v45  ;;  %v5729_v21 = vrot.slane %v5722_v26, %v9225_v45  ;;  %v7602_v35 = vld [vmem:[#allocation8 + $0x1b0] sm:$0xff]   ;;  %v7606_v26 = vld [vmem:[#allocation8 + $0x1a0] sm:$0xff]  }
 0x484   : > { %v5214_v49 = vrot.slane %v5207_v19, %v9225_v45  ;;  %v5698_v6 = vsel %vm9245_vm0, %v5691_v51, %v5696_v56  ;;  %v5502_v34 = vrot.slane %v5495_v10, %v9225_v45  ;;  %v7605_v19 = vld [vmem:[#allocation8 + $0x1e0] sm:$0xff]  }
 0x485   : > { %7300 = vmatmul.mubr.bf16.vlgmr.msra.gmra.mxu1 %v5398_v43  ;;  %v5699_v13 = vcombine.low %v9269_v11, %v5698_v6  ;;  %v5926_v3 = vcombine.low %v5698_v6, %v5909_v23  ;;  %v7608_v43 = vld [vmem:[#allocation8 + $0x198] sm:$0xff]   ;;  %v6729_v6 = vld [vmem:[%s9359_s11] ss:$0 sm:$0xff] }
 0x486   : > { %7162 = vmatpush3.bf16.msra.mxu1 %v7568_v31  ;;  %5376 = vmatprep.mubr.bf16.mxu0 %v5214_v49  ;;  %v7604_v31 = vld [vmem:[#allocation8 + $0x1a8] sm:$0xff]   ;;  %v7609_v49 = vld [vmem:[#allocation8 + $0x1d0] sm:$0xff]  }
 0x487   : > { %5892 = vmatprep.mubr.bf16.mxu1 %v5729_v21  ;;  %5377 = vmatmul.mubr.bf16.vlgmr.msra.gmra.mxu0 %v5198_v0  ;;  %v5706_v63 = vrot.slane %v5699_v13, %v9225_v45  ;;  %v5933_v44 = vrot.slane %v5926_v3, %v9225_v45  ;;  %v7610_v21 = vld [vmem:[#allocation8 + $0x190] sm:$0xff]   ;;  %v7612_v0 = vld [vmem:[#allocation8 + $0x188] sm:$0xff]  }
 0x488   : > { %7140 = vmatpush3.bf16.msra.mxu0 %v7570_v27  ;;  %5681 = vmatprep.mubr.bf16.mxu0 %v5518_v17  ;;  %v7611_v27 = vld [vmem:[#allocation8 + $0x1c8] sm:$0xff]   ;;  %v7614_v17 = vld [vmem:[#allocation8 + $0x180] sm:$0xff]  }
 0x489   : > { %7163 = vmatprep.subr.bf16.mxu1 %v7571_v61  ;;  %7141 = vmatprep.subr.bf16.mxu0 %v7573_v8  ;;  %v5713_v11 = vrot.slane %v5706_v63, %v9225_v45  ;;  %v5940_v46 = vrot.slane %v5933_v44, %v9225_v45  ;;  %v7613_v61 = vld [vmem:[#allocation8 + $0x1c0] sm:$0xff]   ;;  %v5910_v8 = vcombine.low %v9255_v7, %v9239_v9 }
 0x48a   : > { %7164 = vmatpush3.bf16.msra.mxu1 %v7572_v2 }
 0x48b   : > { %7165 = vmatprep.subr.bf16.mxu1 %v7575_v54  ;;  %v5917_v2 = vrot.slane %v5910_v8, %v9225_v45 }
 0x48c   : > { %7142 = vmatpush3.bf16.msra.mxu0 %v7574_v52 }
 0x48d   : > { %7143 = vmatprep.subr.bf16.mxu0 %v7577_v60  ;;  %v5924_v54 = vrot.slane %v5917_v2, %v9225_v45 }
 0x48e   : > { %7166 = vmatpush3.bf16.msra.mxu1 %v7576_v22 }
 0x48f   : > { %7167 = vmatprep.subr.bf16.mxu1 %v7579_v59 }
 0x490   : > { %7144 = vmatpush3.bf16.msra.mxu0 %v7578_v1 }
 0x491   : > { %7145 = vmatprep.subr.bf16.mxu0 %v7581_v15 }
 0x492   : > { %7168 = vmatpush3.bf16.msra.mxu1 %v7580_v47 }
 0x493   : > { %7169 = vmatprep.subr.bf16.mxu1 %v7583_v20 }
 0x494   : > { %7146 = vmatpush3.bf16.msra.mxu0 %v7582_v53 }
 0x495   : > { %7147 = vmatprep.subr.bf16.mxu0 %v7585_v36 }
 0x496   : > { %7170 = vmatpush3.bf16.msra.mxu1 %v7584_v38 }
 0x497   : > { %7171 = vmatprep.subr.bf16.mxu1 %v7587_v55 }
 0x498   : > { %7148 = vmatpush3.bf16.msra.mxu0 %v7586_v58 }
 0x499   : > { %7149 = vmatprep.subr.bf16.mxu0 %v7589_v30 }
 0x49a   : > { %7172 = vmatpush3.bf16.msra.mxu1 %v7588_v39 }
 0x49b   : > { %7173 = vmatprep.subr.bf16.mxu1 %v7591_v40 }
 0x49c   : > { %7150 = vmatpush3.bf16.msra.mxu0 %v7590_v57 }
 0x49d   : > { %7151 = vmatprep.subr.bf16.mxu0 %v7593_v37 }
 0x49e   : > { %7174 = vmatpush3.bf16.msra.mxu1 %v7592_v62 }
 0x49f   : > { %7175 = vmatprep.subr.bf16.mxu1 %v7595_v28 }
 0x4a0   : > { %7152 = vmatpush3.bf16.msra.mxu0 %v7594_v50 }
 0x4a1   : > { %7153 = vmatprep.subr.bf16.mxu0 %v7597_v42 }
 0x4a2   : > { %7176 = vmatpush3.bf16.msra.mxu1 %v7596_v41 }
 0x4a4   : > { %7154 = vmatpush3.bf16.msra.mxu0 %v7598_v25 }
 0x4a5   : > { %5893 = vmatmul.mubr.bf16.vlgmr.msra.gmra.mxu1 %v5713_v11  ;;  %7183 = vmatprep.subr.bf16.mxu0 %v7599_v29 }
 0x4a7   : > { %5682 = vmatmul.mubr.bf16.vlgmr.msra.gmra.mxu0 %v5502_v34 }
 0x4a8   : > { %7184 = vmatpush3.bf16.msra.mxu0 %v7600_v33  ;;  %6103 = vmatprep.mubr.bf16.mxu0 %v5940_v46 }
 0x4a9   : > { %7185 = vmatprep.subr.bf16.mxu0 %v7601_v16 }
 0x4ac   : > { %7186 = vmatpush3.bf16.msra.mxu0 %v7602_v35 }
 0x4ad   : > { %7187 = vmatprep.subr.bf16.mxu0 %v7603_v4 }
 0x4b0   : > { %7188 = vmatpush3.bf16.msra.mxu0 %v7604_v31 }
 0x4b1   : > { %7189 = vmatprep.subr.bf16.mxu0 %v7605_v19 }
 0x4b4   : > { %7190 = vmatpush3.bf16.msra.mxu0 %v7606_v26 }
 0x4b5   : > { %7191 = vmatprep.subr.bf16.mxu0 %v7607_v5 }
 0x4b8   : > { %7192 = vmatpush3.bf16.msra.mxu0 %v7608_v43 }
 0x4b9   : > { %7193 = vmatprep.subr.bf16.mxu0 %v7609_v49 }
 0x4bc   : > { %7194 = vmatpush3.bf16.msra.mxu0 %v7610_v21 }
 0x4bd   : > { %7195 = vmatprep.subr.bf16.mxu0 %v7611_v27 }
 0x4c0   : > { %7196 = vmatpush3.bf16.msra.mxu0 %v7612_v0 }
 0x4c1   : > { %7197 = vmatprep.subr.bf16.mxu0 %v7613_v61 }
 0x4c4   : > { %7198 = vmatpush3.bf16.msra.mxu0 %v7614_v17 }
 0x4c7   : > { %6104 = vmatmul.mubr.bf16.vlgmr.msra.gmra.mxu0 %v5924_v54 }
 0x545   : > { %v5482_v52 = vpop.f32.mrf.mxu1 }
 0x547   : > { %v7124_v60 = vpop.f32.mrf.mxu0  ;;  %v7301_v22 = vpop.f32.mrf.mxu1 }
 0x549   : > { %v7125_v59 = vpop.f32.mrf.mxu0  ;;  %v5485_v1 = vpop.f32.mrf.mxu1 }
 0x54a   : > { %v7126_v56 = vadd.f32 %v7125_v59, %v7124_v60 }
 0x54b   : > { %v7127_v15 = vpop.f32.mrf.mxu0  ;;  %v7302_v47 = vpop.f32.mrf.mxu1 }
 0x54c   : > { %v5483_v45 = vadd.f32 %v7126_v56, %v5482_v52 }
 0x54d   : > { %v7128_v20 = vpop.f32.mrf.mxu0 }
 0x565   : > { %v7177_v32 = vpop.f32.mrf.mxu1 }
 0x567   : > { %v7155_v53 = vpop.f32.mrf.mxu0  ;;  %v7178_v9 = vpop.f32.mrf.mxu1 }
 0x568   : > { %v7179_v39 = vadd.f32 %v7178_v9, %v7177_v32 }
 0x569   : > { %v7156_v7 = vpop.f32.mrf.mxu0  ;;  %v7180_v36 = vpop.f32.mrf.mxu1 }
 0x56a   : > { %v7157_v58 = vadd.f32 %v7156_v7, %v7155_v53 }
 0x56b   : > { %v7158_v38 = vpop.f32.mrf.mxu0  ;;  %v7181_v55 = vpop.f32.mrf.mxu1 }
 0x56c   : > { %v5689_v30 = vadd.f32 %v7157_v58, %v5483_v45 }
 0x56d   : > { %v7159_v18 = vpop.f32.mrf.mxu0 }
 0x56e   : > { %v5900_v24 = vadd.f32 %v7179_v39, %v5689_v30 }
 0x587   : > { %v7199_v51 = vpop.f32.mrf.mxu0 }
 0x589   : > { %v7200_v40 = vpop.f32.mrf.mxu0 }
 0x58a   : > { %v7201_v48 = vadd.f32 %v7200_v40, %v7199_v51 }
 0x58b   : > { %v7202_v57 = vpop.f32.mrf.mxu0 }
 0x58c   : > { %v6111_v37 = vadd.f32 %v7201_v48, %v5900_v24 }
 0x58d   : > { %v7203_v62 = vpop.f32.mrf.mxu0 }
 0x58e   : > { %v6119_v13 = vadd.f32 %v6729_v6, %v6111_v37 }
 0x590   : > { %v6120_v28 = vmax.f32 %v6119_v13, 0.0 }
 0x592   : > { %v6128_v23 = vrot.slane %v6120_v28, %v8048_v12 }
 0x594   : > { %v6129_v50 = vcombine.high %v6128_v23, %v6128_v23  ;;  %v6132_v42 = vsel %vm1327_vm8, %v6128_v23, -inf }
 0x596   : > { %v6133_v14 = vsel %vm1327_vm8, %v6129_v50, -inf }
 0x597   : > { %v6134_v41 = vmax.f32 %v6132_v42, %v6133_v14 }
 0x599   : > { %v6135_v3 = vsel %vm1327_vm8, %v6134_v41, -inf }
 0x59a   : > { %v6136_v63 = vrot.slane %v6135_v3, 4 }
 0x59c   : > { %v6137_v25 = vmax.f32 %v6135_v3, %v6136_v63 }
 0x59e   : > { %v6138_v10 = vrot.slane %v6137_v25, 2 }
 0x5a0   : > { %v6139_v29 = vmax.f32 %v6137_v25, %v6138_v10 }
 0x5a2   : > { %v6140_v44 = vrot.slane %v6139_v29, 1 }
 0x5a4   : > { %v6141_v11 = vmax.f32 %v6139_v29, %v6140_v44 }
 0x5a6   : > { %6142 = vst [vmem:[%s435_s16] sm:$0x1] %v6141_v11 }
 0x5a7   : > { %7681 = shalt.err (!%p7678_p3)
}
 0x5a8   : > { %s7682_s0 = scalar_lea.hbm %s6154_s30, 16  ;;  %s7686_s16 = scalar_lea.hbm %s9360_s12, 32 }
 0x5a9   : > { %p7683_p2 = scmp.ne.s32.totalorder %s6154_s30, %s7682_s0  ;;  %p7687_p7 = scmp.lt.s32.totalorder %s6154_s30, %s9360_s12 }
 0x5aa   : > { %p7688_p6 = scmp.lt.s32.totalorder %s7686_s16, %s7682_s0 }
 0x5ab   : > { %p7684_p4 = pnand %p7683_p2, %p7852_p5 }
 0x5ac   : > { %p7689_p9 = por %p7688_p6, %p7687_p7 }
 0x5ad   : > { %p7685_p13 = pneg %p7684_p4 }
 0x5af   : > { %p7690_p10 = pnand %p7689_p9, %p7685_p13 }
 0x5b1   : > { %7693 = shalt.err (!%p7690_p10)
}
 0x5b2   : > { %7311 = dma.vmem_to_hbm [thread:$0]  (%p7852_p5), %s6157_s19, 16, %s6154_s30, %s6144_s15  }
 0x5b3 PF: > { %p7328_p12 = scmp.ge.s32.totalorder %s7736_s24, 2  ;;  %s6168_s17 = sand.u32 1, %s7724_s21  }
 0x5b4   : > { %p9406_p8 = scmp.ne.s32.totalorder %s9369_s14, 0  ;;  %s6169_s18 = scalar_lea.sflag [#allocation7], %s6168_s17 }
 0x5b6   : > { %p7321_p11 = pnand %p7328_p12, %p9406_p8 }
 0x5b8   : > { %p7322_p0 = pneg %p7321_p11 }
 0x5ba   : > { %7719 = dma.done.wait (%p7322_p0), %s6169_s18, 16  }
 0x5bb   : > { %7721 = vsyncadd (%p7322_p0), %s6169_s18, 4294967280  ;;  %s9407_s0 = sld [smem:[#allocation14_spill]]  ;;  %p24_p1 = scmp.ge.s32.totalorder %s7839_s27, 4  }
 0x5bc   : > { %s9408_s23 = sld [smem:[#allocation15_spill]]  ;;  %s9409_s21 = smov %s7728_s22 }
 0x5bd   : > { %s9411_s24 = smov %s7839_s27  ;;  %26 = sbr.rel (!%p24_p1) target bundleno = 7 (0x7), region = 127 }
 0x5c1   : > { %s9410_s22 = smov %s9407_s0 }
 0x5c2   :  { %6173 = vsyncpa [#allocation6], 1 }
 0x5c3   :  { %6175 = vsyncpa [#allocation6 + $0x1], 1 }
 0x5c4   :  { %6176 = vsyncpa [#allocation9], 1 }
 0x5c5   :  { %6177 = vsyncpa [#allocation7], 1 }
 0x5c6   :  { %6179 = vsyncpa [#allocation7 + $0x1], 1 }

</bundles_post_ra>
